<compile_context>
chip_gen: v7x
topology: tpu7x:2x2x1
jax: 0.10.0
libtpu: 0.0.40
codegen_flags: <defaults>
</compile_context>

<pallas_src>
import functools

import jax
import jax.numpy as jnp
from jax import lax
from jax.experimental import pallas as pl
from jax.experimental.pallas import tpu as pltpu


def _conv3x3_acc(xs, w_ref, out_rows, width, cin):
    """3x3 'valid' conv of xs (rows, width+2, cin) against folded weights.

    w_ref holds the weight as (3, 3*cin, cout) with (kw, cin) flattened into the
    contraction dim (kw-major).  Returns an f32 accumulator (out_rows*width, cout).
    """
    cout = w_ref.shape[-1]
    acc = jnp.zeros((out_rows * width, cout), jnp.float32)
    if cin % 128 == 0:
        # Lane-aligned channels: fold the 3 kw taps into K -> 3 deep matmuls.
        for kh in range(3):
            rows = xs[kh:kh + out_rows]                               # (R, W+2, cin)
            a = jnp.concatenate([rows[:, kw:kw + width] for kw in range(3)],
                                axis=-1)                              # (R, W, 3*cin)
            acc = acc + jnp.dot(a.reshape(out_rows * width, 3 * cin), w_ref[kh],
                                preferred_element_type=jnp.float32)
    else:
        # Small / unaligned cin: 9 shifted matmuls (per-tap operands are tiny).
        for kh in range(3):
            rows = xs[kh:kh + out_rows]
            wk = w_ref[kh]                                            # (3*cin, cout)
            for kw in range(3):
                a = rows[:, kw:kw + width].reshape(out_rows * width, cin)
                acc = acc + jnp.dot(a, wk[kw * cin:(kw + 1) * cin],
                                    preferred_element_type=jnp.float32)
    return acc


def _double_conv_kernel(xp_ref, w1_ref, s1_ref, b1_ref, w2_ref, s2_ref, b2_ref,
                        o_ref, y1_ref, *, row_tile):
    """One (batch image, row tile) step of the fused DoubleConv.

    xp_ref: (1, H+4, W+2, Cin)   zero-padded input image (native dtype)
    w1_ref: (3, 3*Cin,  Coutp)   stage-1 weights, (kw, cin) folded into K
    w2_ref: (3, 3*Coutp, Coutp)  stage-2 weights
    s*/b*:  (1, Coutp) float32   folded BatchNorm scale / bias
    o_ref:  (1, TH, W, Coutp)    output row tile (lane-dense Coutp)
    y1_ref: (TH+2, W+2, Coutp)   VMEM scratch: stage-1 activation + halo
    """
    t = pl.program_id(1)
    _, _, wp2, cin = xp_ref.shape
    width = wp2 - 2
    cout = o_ref.shape[-1]
    th = row_tile

    row0 = t * th
    if th % 8 == 0:
        row0 = pl.multiple_of(row0, 8)

    # ---- stage 1: conv3x3 + BN + ReLU on rows [t*TH-1, t*TH+TH] (1 halo row on
    #      each side is recomputed; rows outside the image are zeroed below). ----
    xs = xp_ref[0, pl.ds(row0, th + 4), :, :]                 # (TH+4, W+2, Cin)
    acc1 = _conv3x3_acc(xs, w1_ref, th + 2, width, cin)
    y1 = jnp.maximum(acc1 * s1_ref[...] + b1_ref[...], 0.0)   # ((TH+2)*W, Coutp) f32
    y1_ref[:, 1:width + 1, :] = y1.reshape(th + 2, width, cout).astype(y1_ref.dtype)

    # zero-padding the stage-2 input: side columns + halo rows outside the image
    zcol = jnp.zeros((th + 2, 1, cout), y1_ref.dtype)
    y1_ref[:, 0:1, :] = zcol
    y1_ref[:, width + 1:width + 2, :] = zcol

    @pl.when(t == 0)
    def _():
        y1_ref[0:1, :, :] = jnp.zeros((1, width + 2, cout), y1_ref.dtype)

    @pl.when(t == pl.num_programs(1) - 1)
    def _():
        y1_ref[th + 1:th + 2, :, :] = jnp.zeros((1, width + 2, cout), y1_ref.dtype)

    # ---- stage 2: conv3x3 + BN + ReLU on the row tile ----
    ys = y1_ref[...]                                          # (TH+2, W+2, Coutp)
    acc2 = _conv3x3_acc(ys, w2_ref, th, width, cout)
    y2 = jnp.maximum(acc2 * s2_ref[...] + b2_ref[...], 0.0)
    o_ref[...] = y2.reshape(1, th, width, cout).astype(o_ref.dtype)


def _fold_bn(gamma, beta, running_mean, running_var, eps=1e-5):
    scale = gamma / jnp.sqrt(running_var + eps)
    bias = beta - running_mean * scale
    return scale, bias


def _round_up(x, m):
    return (x + m - 1) // m * m


def _pick_row_tile(h, w, cin, cout_p, itemsize):
    """Largest divisor of H whose per-tile working set fits comfortably in VMEM."""
    budget = 22 * 1024 * 1024          # headroom under the 32 MiB scoped limit
    img = 2 * (h + 4) * (w + 2) * cin * itemsize    # double-buffered input image block
    # TODO(synk): for very large H*W*Cin the per-image input block itself should be
    # row-tiled with a manually DMA'd halo window; not needed at these sizes.

    def need(th):
        y1 = (th + 2) * (w + 2) * cout_p * itemsize          # stage-1 scratch
        out = 2 * th * w * cout_p * itemsize                 # double-buffered output
        tmp = (th + 2) * w * 3 * max(cin, cout_p) * itemsize  # folded matmul operand
        acc = (th + 2) * w * cout_p * 4                      # f32 accumulator
        return img + y1 + out + tmp + acc

    best = 1
    for th in range(1, h + 1):
        if h % th == 0 and need(th) <= budget:
            best = th
    return best


@functools.partial(jax.jit, static_argnames=("row_tile",))
def double_conv(x_nchw, params, row_tile=None):
    """Eval-mode DoubleConv forward. x_nchw: (N, Cin, H, W) like PyTorch."""
    x = jnp.transpose(x_nchw, (0, 2, 3, 1))                  # NCHW -> NHWC
    # TODO(synk): if the surrounding model keeps activations NHWC end-to-end, the
    # boundary transposes (and the NCHW contract) can be dropped entirely.
    n, h, w, cin = x.shape
    dt = x.dtype
    w1, w2 = params["w1"], params["w2"]
    cout = w1.shape[-1]
    cout_p = _round_up(cout, 128)
    pc = cout_p - cout

    s1, b1 = _fold_bn(params["bn1_gamma"], params["bn1_beta"],
                      params["bn1_mean"], params["bn1_var"])
    s2, b2 = _fold_bn(params["bn2_gamma"], params["bn2_beta"],
                      params["bn2_mean"], params["bn2_var"])

    # Fold the kw tap into the contraction dim; pad Cout (and stage-2 Cin) to a
    # lane-dense multiple of 128.  Padded channels get scale=bias=0 -> stay zero.
    w1f = jnp.pad(w1, ((0, 0), (0, 0), (0, 0), (0, pc))).astype(dt).reshape(3, 3 * cin, cout_p)
    w2f = jnp.pad(w2, ((0, 0), (0, 0), (0, pc), (0, pc))).astype(dt).reshape(3, 3 * cout_p, cout_p)
    s1p = jnp.pad(s1, (0, pc)).reshape(1, cout_p).astype(jnp.float32)
    b1p = jnp.pad(b1, (0, pc)).reshape(1, cout_p).astype(jnp.float32)
    s2p = jnp.pad(s2, (0, pc)).reshape(1, cout_p).astype(jnp.float32)
    b2p = jnp.pad(b2, (0, pc)).reshape(1, cout_p).astype(jnp.float32)

    # Zero-pad once: 2 halo rows (stage-1 halo of the stage-2 halo), 1 halo column.
    xp = jnp.pad(x, ((0, 0), (2, 2), (1, 1), (0, 0)))

    th = row_tile if row_tile is not None else _pick_row_tile(h, w, cin, cout_p, dt.itemsize)
    if h % th != 0:
        raise ValueError(f"row_tile={th} must divide H={h}")
    t_tiles = h // th

    kernel = functools.partial(_double_conv_kernel, row_tile=th)
    y = pl.pallas_call(
        kernel,
        out_shape=jax.ShapeDtypeStruct((n, h, w, cout_p), dt),
        grid=(n, t_tiles),
        in_specs=[
            pl.BlockSpec((1, h + 4, w + 2, cin), lambda i, j: (i, 0, 0, 0)),
            pl.BlockSpec((3, 3 * cin, cout_p), lambda i, j: (0, 0, 0)),
            pl.BlockSpec((1, cout_p), lambda i, j: (0, 0)),
            pl.BlockSpec((1, cout_p), lambda i, j: (0, 0)),
            pl.BlockSpec((3, 3 * cout_p, cout_p), lambda i, j: (0, 0, 0)),
            pl.BlockSpec((1, cout_p), lambda i, j: (0, 0)),
            pl.BlockSpec((1, cout_p), lambda i, j: (0, 0)),
        ],
        out_specs=pl.BlockSpec((1, th, w, cout_p), lambda i, j: (i, j, 0, 0)),
        scratch_shapes=[pltpu.VMEM((th + 2, w + 2, cout_p), dt)],
        compiler_params=pltpu.CompilerParams(
            dimension_semantics=("parallel", "parallel"),
            vmem_limit_bytes=32 * 1024 * 1024),
    )(xp, w1f, s1p, b1p, w2f, s2p, b2p)

    y = y[..., :cout]
    return jnp.transpose(y, (0, 3, 1, 2))                    # NHWC -> NCHW


def _reference(x_nchw, params):
    """Pure-JAX reference (lax.conv) for verification."""
    def stage(x, w, gamma, beta, mean, var):
        w_oihw = jnp.transpose(w, (3, 2, 0, 1))              # (KH,KW,Cin,Cout) -> OIHW
        y = lax.conv_general_dilated(
            x, w_oihw, window_strides=(1, 1), padding=((1, 1), (1, 1)),
            dimension_numbers=("NCHW", "OIHW", "NCHW"))
        s, b = _fold_bn(gamma, beta, mean, var)
        y = y * s[None, :, None, None] + b[None, :, None, None]
        return jnp.maximum(y, 0.0)

    y = stage(x_nchw, params["w1"], params["bn1_gamma"], params["bn1_beta"],
              params["bn1_mean"], params["bn1_var"])
    y = stage(y, params["w2"], params["bn2_gamma"], params["bn2_beta"],
              params["bn2_mean"], params["bn2_var"])
    return y


def init_params(key, in_channels, out_channels):
    ks = jax.random.split(key, 8)
    return {
        # conv weights stored as (KH, KW, Cin, Cout)
        "w1": 0.1 * jax.random.normal(ks[0], (3, 3, in_channels, out_channels),
                                      jnp.float32),
        "w2": 0.1 * jax.random.normal(ks[1], (3, 3, out_channels, out_channels),
                                      jnp.float32),
        "bn1_gamma": 1.0 + 0.1 * jax.random.normal(ks[2], (out_channels,), jnp.float32),
        "bn1_beta": 0.1 * jax.random.normal(ks[3], (out_channels,), jnp.float32),
        "bn1_mean": 0.05 * jax.random.normal(ks[4], (out_channels,), jnp.float32),
        "bn1_var": jnp.abs(1.0 + 0.1 * jax.random.normal(ks[5], (out_channels,),
                                                         jnp.float32)),
        "bn2_gamma": 1.0 + 0.1 * jax.random.normal(ks[6], (out_channels,), jnp.float32),
        "bn2_beta": 0.1 * jax.random.normal(ks[7], (out_channels,), jnp.float32),
        "bn2_mean": jnp.zeros((out_channels,), jnp.float32),
        "bn2_var": jnp.ones((out_channels,), jnp.float32),
    }


if __name__ == "__main__":
    key = jax.random.PRNGKey(0)
    k_x, k_p = jax.random.split(key)

    N, Cin, Cout, H, W = 2, 4, 8, 16, 16
    x = jax.random.normal(k_x, (N, Cin, H, W), jnp.float32)
    params = init_params(k_p, Cin, Cout)

    ref = _reference(x, params)

    # auto-chosen row tile (single tile per image at this size)
    out = jax.block_until_ready(double_conv(x, params))
    assert out.shape == (N, Cout, H, W), out.shape
    assert jnp.allclose(out, ref, atol=1e-4, rtol=1e-4), float(
        jnp.max(jnp.abs(out - ref)))

    # explicitly exercise the multi-row-tile halo path
    out2 = jax.block_until_ready(double_conv(x, params, row_tile=8))
    assert jnp.allclose(out2, ref, atol=1e-4, rtol=1e-4), float(
        jnp.max(jnp.abs(out2 - ref)))

    print("KERNEL_OK")
</pallas_src>

<mosaic_0001>
module attributes {stable_mosaic.version = 11 : i64} {
  func.func @_double_conv_kernel(%arg0: i32, %arg1: i32, %arg2: memref<1x20x18x4xf32, #tpu.memory_space<vmem>>, %arg3: memref<3x12x128xf32, #tpu.memory_space<vmem>>, %arg4: memref<1x128xf32, #tpu.memory_space<vmem>>, %arg5: memref<1x128xf32, #tpu.memory_space<vmem>>, %arg6: memref<3x384x128xf32, #tpu.memory_space<vmem>>, %arg7: memref<1x128xf32, #tpu.memory_space<vmem>>, %arg8: memref<1x128xf32, #tpu.memory_space<vmem>>, %arg9: memref<1x16x16x128xf32, #tpu.memory_space<vmem>>, %arg10: memref<18x18x128xf32, #tpu.memory_space<vmem>>) attributes {dimension_semantics = [#tpu.dimension_semantics<parallel>, #tpu.dimension_semantics<parallel>], iteration_bounds = array<i64: 2, 1>, scalar_prefetch = 0 : i64, scratch_operands = 1 : i64, tpu.core_type = #tpu.core_type<tc>, window_params = [{transform_indices = @transform_0, window_bounds = array<i64: 1, 20, 18, 4>}, {pipeline_mode = #tpu.pipeline_mode<synchronous>, transform_indices = @transform_1, window_bounds = array<i64: 3, 12, 128>}, {pipeline_mode = #tpu.pipeline_mode<synchronous>, transform_indices = @transform_2, window_bounds = array<i64: 1, 128>}, {pipeline_mode = #tpu.pipeline_mode<synchronous>, transform_indices = @transform_3, window_bounds = array<i64: 1, 128>}, {pipeline_mode = #tpu.pipeline_mode<synchronous>, transform_indices = @transform_4, window_bounds = array<i64: 3, 384, 128>}, {pipeline_mode = #tpu.pipeline_mode<synchronous>, transform_indices = @transform_5, window_bounds = array<i64: 1, 128>}, {pipeline_mode = #tpu.pipeline_mode<synchronous>, transform_indices = @transform_6, window_bounds = array<i64: 1, 128>}, {transform_indices = @transform_7, window_bounds = array<i64: 1, 16, 16, 128>}]} {
    %c16_i32 = arith.constant 16 : i32
    %0 = arith.muli %arg1, %c16_i32 : i32
    %1 = tpu.assume_multiple %0, 8 : i32
    %c0 = arith.constant 0 : index
    %2 = arith.index_cast %1 : i32 to index
    %c0_0 = arith.constant 0 : index
    %c0_1 = arith.constant 0 : index
    %3 = vector.load %arg2[%c0, %2, %c0_0, %c0_1] : memref<1x20x18x4xf32, #tpu.memory_space<vmem>>, vector<1x20x18x4xf32>
    %4 = vector.shape_cast %3 : vector<1x20x18x4xf32> to vector<20x18x4xf32>
    %cst = arith.constant 0.000000e+00 : f32
    %5 = vector.broadcast %cst : f32 to vector<288x128xf32>
    %6 = vector.extract_strided_slice %4 {offsets = [0, 0, 0], sizes = [18, 18, 4], strides = [1, 1, 1]} : vector<20x18x4xf32> to vector<18x18x4xf32>
    %c0_2 = arith.constant 0 : index
    %c0_3 = arith.constant 0 : index
    %c0_4 = arith.constant 0 : index
    %7 = vector.load %arg3[%c0_2, %c0_3, %c0_4] : memref<3x12x128xf32, #tpu.memory_space<vmem>>, vector<1x12x128xf32>
    %8 = vector.shape_cast %7 : vector<1x12x128xf32> to vector<12x128xf32>
    %9 = vector.extract_strided_slice %6 {offsets = [0, 0, 0], sizes = [18, 16, 4], strides = [1, 1, 1]} : vector<18x18x4xf32> to vector<18x16x4xf32>
    %10 = vector.shape_cast %9 : vector<18x16x4xf32> to vector<288x4xf32>
    %11 = vector.extract_strided_slice %8 {offsets = [0, 0], sizes = [4, 128], strides = [1, 1]} : vector<12x128xf32> to vector<4x128xf32>
    %cst_5 = arith.constant dense<0.000000e+00> : vector<288x128xf32>
    %12 = tpu.matmul %10, %11, %cst_5 {dimension_numbers = #tpu.dot_dimension_numbers<[1], [0], [0], [1], [0, 0, 1, 1], [], []>} : vector<288x4xf32>, vector<4x128xf32>, vector<288x128xf32> -> vector<288x128xf32>
    %13 = arith.addf %5, %12 : vector<288x128xf32>
    %14 = vector.extract_strided_slice %6 {offsets = [0, 1, 0], sizes = [18, 16, 4], strides = [1, 1, 1]} : vector<18x18x4xf32> to vector<18x16x4xf32>
    %15 = vector.shape_cast %14 : vector<18x16x4xf32> to vector<288x4xf32>
    %16 = vector.extract_strided_slice %8 {offsets = [4, 0], sizes = [4, 128], strides = [1, 1]} : vector<12x128xf32> to vector<4x128xf32>
    %cst_6 = arith.constant dense<0.000000e+00> : vector<288x128xf32>
    %17 = tpu.matmul %15, %16, %cst_6 {dimension_numbers = #tpu.dot_dimension_numbers<[1], [0], [0], [1], [0, 0, 1, 1], [], []>} : vector<288x4xf32>, vector<4x128xf32>, vector<288x128xf32> -> vector<288x128xf32>
    %18 = arith.addf %13, %17 : vector<288x128xf32>
    %19 = vector.extract_strided_slice %6 {offsets = [0, 2, 0], sizes = [18, 16, 4], strides = [1, 1, 1]} : vector<18x18x4xf32> to vector<18x16x4xf32>
    %20 = vector.shape_cast %19 : vector<18x16x4xf32> to vector<288x4xf32>
    %21 = vector.extract_strided_slice %8 {offsets = [8, 0], sizes = [4, 128], strides = [1, 1]} : vector<12x128xf32> to vector<4x128xf32>
    %cst_7 = arith.constant dense<0.000000e+00> : vector<288x128xf32>
    %22 = tpu.matmul %20, %21, %cst_7 {dimension_numbers = #tpu.dot_dimension_numbers<[1], [0], [0], [1], [0, 0, 1, 1], [], []>} : vector<288x4xf32>, vector<4x128xf32>, vector<288x128xf32> -> vector<288x128xf32>
    %23 = arith.addf %18, %22 : vector<288x128xf32>
    %24 = vector.extract_strided_slice %4 {offsets = [1, 0, 0], sizes = [18, 18, 4], strides = [1, 1, 1]} : vector<20x18x4xf32> to vector<18x18x4xf32>
    %c1 = arith.constant 1 : index
    %c0_8 = arith.constant 0 : index
    %c0_9 = arith.constant 0 : index
    %25 = vector.load %arg3[%c1, %c0_8, %c0_9] : memref<3x12x128xf32, #tpu.memory_space<vmem>>, vector<1x12x128xf32>
    %26 = vector.shape_cast %25 : vector<1x12x128xf32> to vector<12x128xf32>
    %27 = vector.extract_strided_slice %24 {offsets = [0, 0, 0], sizes = [18, 16, 4], strides = [1, 1, 1]} : vector<18x18x4xf32> to vector<18x16x4xf32>
    %28 = vector.shape_cast %27 : vector<18x16x4xf32> to vector<288x4xf32>
    %29 = vector.extract_strided_slice %26 {offsets = [0, 0], sizes = [4, 128], strides = [1, 1]} : vector<12x128xf32> to vector<4x128xf32>
    %cst_10 = arith.constant dense<0.000000e+00> : vector<288x128xf32>
    %30 = tpu.matmul %28, %29, %cst_10 {dimension_numbers = #tpu.dot_dimension_numbers<[1], [0], [0], [1], [0, 0, 1, 1], [], []>} : vector<288x4xf32>, vector<4x128xf32>, vector<288x128xf32> -> vector<288x128xf32>
    %31 = arith.addf %23, %30 : vector<288x128xf32>
    %32 = vector.extract_strided_slice %24 {offsets = [0, 1, 0], sizes = [18, 16, 4], strides = [1, 1, 1]} : vector<18x18x4xf32> to vector<18x16x4xf32>
    %33 = vector.shape_cast %32 : vector<18x16x4xf32> to vector<288x4xf32>
    %34 = vector.extract_strided_slice %26 {offsets = [4, 0], sizes = [4, 128], strides = [1, 1]} : vector<12x128xf32> to vector<4x128xf32>
    %cst_11 = arith.constant dense<0.000000e+00> : vector<288x128xf32>
    %35 = tpu.matmul %33, %34, %cst_11 {dimension_numbers = #tpu.dot_dimension_numbers<[1], [0], [0], [1], [0, 0, 1, 1], [], []>} : vector<288x4xf32>, vector<4x128xf32>, vector<288x128xf32> -> vector<288x128xf32>
    %36 = arith.addf %31, %35 : vector<288x128xf32>
    %37 = vector.extract_strided_slice %24 {offsets = [0, 2, 0], sizes = [18, 16, 4], strides = [1, 1, 1]} : vector<18x18x4xf32> to vector<18x16x4xf32>
    %38 = vector.shape_cast %37 : vector<18x16x4xf32> to vector<288x4xf32>
    %39 = vector.extract_strided_slice %26 {offsets = [8, 0], sizes = [4, 128], strides = [1, 1]} : vector<12x128xf32> to vector<4x128xf32>
    %cst_12 = arith.constant dense<0.000000e+00> : vector<288x128xf32>
    %40 = tpu.matmul %38, %39, %cst_12 {dimension_numbers = #tpu.dot_dimension_numbers<[1], [0], [0], [1], [0, 0, 1, 1], [], []>} : vector<288x4xf32>, vector<4x128xf32>, vector<288x128xf32> -> vector<288x128xf32>
    %41 = arith.addf %36, %40 : vector<288x128xf32>
    %42 = vector.extract_strided_slice %4 {offsets = [2, 0, 0], sizes = [18, 18, 4], strides = [1, 1, 1]} : vector<20x18x4xf32> to vector<18x18x4xf32>
    %c2 = arith.constant 2 : index
    %c0_13 = arith.constant 0 : index
    %c0_14 = arith.constant 0 : index
    %43 = vector.load %arg3[%c2, %c0_13, %c0_14] : memref<3x12x128xf32, #tpu.memory_space<vmem>>, vector<1x12x128xf32>
    %44 = vector.shape_cast %43 : vector<1x12x128xf32> to vector<12x128xf32>
    %45 = vector.extract_strided_slice %42 {offsets = [0, 0, 0], sizes = [18, 16, 4], strides = [1, 1, 1]} : vector<18x18x4xf32> to vector<18x16x4xf32>
    %46 = vector.shape_cast %45 : vector<18x16x4xf32> to vector<288x4xf32>
    %47 = vector.extract_strided_slice %44 {offsets = [0, 0], sizes = [4, 128], strides = [1, 1]} : vector<12x128xf32> to vector<4x128xf32>
    %cst_15 = arith.constant dense<0.000000e+00> : vector<288x128xf32>
    %48 = tpu.matmul %46, %47, %cst_15 {dimension_numbers = #tpu.dot_dimension_numbers<[1], [0], [0], [1], [0, 0, 1, 1], [], []>} : vector<288x4xf32>, vector<4x128xf32>, vector<288x128xf32> -> vector<288x128xf32>
    %49 = arith.addf %41, %48 : vector<288x128xf32>
    %50 = vector.extract_strided_slice %42 {offsets = [0, 1, 0], sizes = [18, 16, 4], strides = [1, 1, 1]} : vector<18x18x4xf32> to vector<18x16x4xf32>
    %51 = vector.shape_cast %50 : vector<18x16x4xf32> to vector<288x4xf32>
    %52 = vector.extract_strided_slice %44 {offsets = [4, 0], sizes = [4, 128], strides = [1, 1]} : vector<12x128xf32> to vector<4x128xf32>
    %cst_16 = arith.constant dense<0.000000e+00> : vector<288x128xf32>
    %53 = tpu.matmul %51, %52, %cst_16 {dimension_numbers = #tpu.dot_dimension_numbers<[1], [0], [0], [1], [0, 0, 1, 1], [], []>} : vector<288x4xf32>, vector<4x128xf32>, vector<288x128xf32> -> vector<288x128xf32>
    %54 = arith.addf %49, %53 : vector<288x128xf32>
    %55 = vector.extract_strided_slice %42 {offsets = [0, 2, 0], sizes = [18, 16, 4], strides = [1, 1, 1]} : vector<18x18x4xf32> to vector<18x16x4xf32>
    %56 = vector.shape_cast %55 : vector<18x16x4xf32> to vector<288x4xf32>
    %57 = vector.extract_strided_slice %44 {offsets = [8, 0], sizes = [4, 128], strides = [1, 1]} : vector<12x128xf32> to vector<4x128xf32>
    %cst_17 = arith.constant dense<0.000000e+00> : vector<288x128xf32>
    %58 = tpu.matmul %56, %57, %cst_17 {dimension_numbers = #tpu.dot_dimension_numbers<[1], [0], [0], [1], [0, 0, 1, 1], [], []>} : vector<288x4xf32>, vector<4x128xf32>, vector<288x128xf32> -> vector<288x128xf32>
    %59 = arith.addf %54, %58 : vector<288x128xf32>
    %c0_18 = arith.constant 0 : index
    %c0_19 = arith.constant 0 : index
    %60 = vector.load %arg4[%c0_18, %c0_19] : memref<1x128xf32, #tpu.memory_space<vmem>>, vector<1x128xf32>
    %61 = vector.broadcast %60 : vector<1x128xf32> to vector<288x128xf32>
    %62 = arith.mulf %59, %61 : vector<288x128xf32>
    %c0_20 = arith.constant 0 : index
    %c0_21 = arith.constant 0 : index
    %63 = vector.load %arg5[%c0_20, %c0_21] : memref<1x128xf32, #tpu.memory_space<vmem>>, vector<1x128xf32>
    %64 = vector.broadcast %63 : vector<1x128xf32> to vector<288x128xf32>
    %65 = arith.addf %62, %64 : vector<288x128xf32>
    %cst_22 = arith.constant 0.000000e+00 : f32
    %66 = vector.broadcast %cst_22 : f32 to vector<288x128xf32>
    %67 = arith.maximumf %65, %66 : vector<288x128xf32>
    %68 = vector.shape_cast %67 : vector<288x128xf32> to vector<18x16x128xf32>
    %c0_23 = arith.constant 0 : index
    %c1_24 = arith.constant 1 : index
    %c0_25 = arith.constant 0 : index
    %69 = vector.load %arg10[%c0_23, %c1_24, %c0_25] : memref<18x18x128xf32, #tpu.memory_space<vmem>>, vector<18x16x128xf32>
    tpu.vector_store %arg10[%c0_23, %c1_24, %c0_25], %68 {strides = array<i32>} : memref<18x18x128xf32, #tpu.memory_space<vmem>>, vector<18x16x128xf32>,
    %cst_26 = arith.constant 0.000000e+00 : f32
    %70 = vector.broadcast %cst_26 : f32 to vector<18x1x128xf32>
    %c0_27 = arith.constant 0 : index
    %c0_28 = arith.constant 0 : index
    %c0_29 = arith.constant 0 : index
    %71 = vector.load %arg10[%c0_27, %c0_28, %c0_29] : memref<18x18x128xf32, #tpu.memory_space<vmem>>, vector<18x1x128xf32>
    tpu.vector_store %arg10[%c0_27, %c0_28, %c0_29], %70 {strides = array<i32>} : memref<18x18x128xf32, #tpu.memory_space<vmem>>, vector<18x1x128xf32>,
    %c0_30 = arith.constant 0 : index
    %c17 = arith.constant 17 : index
    %c0_31 = arith.constant 0 : index
    %72 = vector.load %arg10[%c0_30, %c17, %c0_31] : memref<18x18x128xf32, #tpu.memory_space<vmem>>, vector<18x1x128xf32>
    tpu.vector_store %arg10[%c0_30, %c17, %c0_31], %70 {strides = array<i32>} : memref<18x18x128xf32, #tpu.memory_space<vmem>>, vector<18x1x128xf32>,
    %c0_i32 = arith.constant 0 : i32
    %73 = arith.cmpi eq, %arg1, %c0_i32 : i32
    %74 = arith.extui %73 : i1 to i32
    %c0_i32_32 = arith.constant 0 : i32
    %75 = arith.cmpi ne, %74, %c0_i32_32 : i32
    scf.if %75 {
      %cst_60 = arith.constant 0.000000e+00 : f32
      %121 = vector.broadcast %cst_60 : f32 to vector<1x18x128xf32>
      %c0_61 = arith.constant 0 : index
      %c0_62 = arith.constant 0 : index
      %c0_63 = arith.constant 0 : index
      %122 = vector.load %arg10[%c0_61, %c0_62, %c0_63] : memref<18x18x128xf32, #tpu.memory_space<vmem>>, vector<1x18x128xf32>
      tpu.vector_store %arg10[%c0_61, %c0_62, %c0_63], %121 {strides = array<i32>} : memref<18x18x128xf32, #tpu.memory_space<vmem>>, vector<1x18x128xf32>,
    } else {
    }
    %c0_i32_33 = arith.constant 0 : i32
    %76 = arith.cmpi eq, %arg1, %c0_i32_33 : i32
    %77 = arith.extui %76 : i1 to i32
    %c0_i32_34 = arith.constant 0 : i32
    %78 = arith.cmpi ne, %77, %c0_i32_34 : i32
    scf.if %78 {
      %cst_60 = arith.constant 0.000000e+00 : f32
      %121 = vector.broadcast %cst_60 : f32 to vector<1x18x128xf32>
      %c17_61 = arith.constant 17 : index
      %c0_62 = arith.constant 0 : index
      %c0_63 = arith.constant 0 : index
      %122 = vector.load %arg10[%c17_61, %c0_62, %c0_63] : memref<18x18x128xf32, #tpu.memory_space<vmem>>, vector<1x18x128xf32>
      tpu.vector_store %arg10[%c17_61, %c0_62, %c0_63], %121 {strides = array<i32>} : memref<18x18x128xf32, #tpu.memory_space<vmem>>, vector<1x18x128xf32>,
    } else {
    }
    %c0_35 = arith.constant 0 : index
    %c0_36 = arith.constant 0 : index
    %c0_37 = arith.constant 0 : index
    %79 = vector.load %arg10[%c0_35, %c0_36, %c0_37] : memref<18x18x128xf32, #tpu.memory_space<vmem>>, vector<18x18x128xf32>
    %cst_38 = arith.constant 0.000000e+00 : f32
    %80 = vector.broadcast %cst_38 : f32 to vector<256x128xf32>
    %81 = vector.extract_strided_slice %79 {offsets = [0, 0, 0], sizes = [16, 18, 128], strides = [1, 1, 1]} : vector<18x18x128xf32> to vector<16x18x128xf32>
    %82 = vector.extract_strided_slice %81 {offsets = [0, 0, 0], sizes = [16, 16, 128], strides = [1, 1, 1]} : vector<16x18x128xf32> to vector<16x16x128xf32>
    %83 = vector.extract_strided_slice %81 {offsets = [0, 1, 0], sizes = [16, 16, 128], strides = [1, 1, 1]} : vector<16x18x128xf32> to vector<16x16x128xf32>
    %84 = vector.extract_strided_slice %81 {offsets = [0, 2, 0], sizes = [16, 16, 128], strides = [1, 1, 1]} : vector<16x18x128xf32> to vector<16x16x128xf32>
    %85 = tpu.concatenate %82, %83, %84 in 2 : vector<16x16x128xf32>, vector<16x16x128xf32>, vector<16x16x128xf32> -> vector<16x16x384xf32>
    %86 = vector.shape_cast %85 : vector<16x16x384xf32> to vector<256x384xf32>
    %c0_39 = arith.constant 0 : index
    %c0_40 = arith.constant 0 : index
    %c0_41 = arith.constant 0 : index
    %87 = vector.load %arg6[%c0_39, %c0_40, %c0_41] : memref<3x384x128xf32, #tpu.memory_space<vmem>>, vector<1x384x128xf32>
    %88 = vector.shape_cast %87 : vector<1x384x128xf32> to vector<384x128xf32>
    %cst_42 = arith.constant dense<0.000000e+00> : vector<256x128xf32>
    %89 = tpu.matmul %86, %88, %cst_42 {dimension_numbers = #tpu.dot_dimension_numbers<[1], [0], [0], [1], [0, 0, 1, 1], [], []>} : vector<256x384xf32>, vector<384x128xf32>, vector<256x128xf32> -> vector<256x128xf32>
    %90 = arith.addf %80, %89 : vector<256x128xf32>
    %91 = vector.extract_strided_slice %79 {offsets = [1, 0, 0], sizes = [16, 18, 128], strides = [1, 1, 1]} : vector<18x18x128xf32> to vector<16x18x128xf32>
    %92 = vector.extract_strided_slice %91 {offsets = [0, 0, 0], sizes = [16, 16, 128], strides = [1, 1, 1]} : vector<16x18x128xf32> to vector<16x16x128xf32>
    %93 = vector.extract_strided_slice %91 {offsets = [0, 1, 0], sizes = [16, 16, 128], strides = [1, 1, 1]} : vector<16x18x128xf32> to vector<16x16x128xf32>
    %94 = vector.extract_strided_slice %91 {offsets = [0, 2, 0], sizes = [16, 16, 128], strides = [1, 1, 1]} : vector<16x18x128xf32> to vector<16x16x128xf32>
    %95 = tpu.concatenate %92, %93, %94 in 2 : vector<16x16x128xf32>, vector<16x16x128xf32>, vector<16x16x128xf32> -> vector<16x16x384xf32>
    %96 = vector.shape_cast %95 : vector<16x16x384xf32> to vector<256x384xf32>
    %c1_43 = arith.constant 1 : index
    %c0_44 = arith.constant 0 : index
    %c0_45 = arith.constant 0 : index
    %97 = vector.load %arg6[%c1_43, %c0_44, %c0_45] : memref<3x384x128xf32, #tpu.memory_space<vmem>>, vector<1x384x128xf32>
    %98 = vector.shape_cast %97 : vector<1x384x128xf32> to vector<384x128xf32>
    %cst_46 = arith.constant dense<0.000000e+00> : vector<256x128xf32>
    %99 = tpu.matmul %96, %98, %cst_46 {dimension_numbers = #tpu.dot_dimension_numbers<[1], [0], [0], [1], [0, 0, 1, 1], [], []>} : vector<256x384xf32>, vector<384x128xf32>, vector<256x128xf32> -> vector<256x128xf32>
    %100 = arith.addf %90, %99 : vector<256x128xf32>
    %101 = vector.extract_strided_slice %79 {offsets = [2, 0, 0], sizes = [16, 18, 128], strides = [1, 1, 1]} : vector<18x18x128xf32> to vector<16x18x128xf32>
    %102 = vector.extract_strided_slice %101 {offsets = [0, 0, 0], sizes = [16, 16, 128], strides = [1, 1, 1]} : vector<16x18x128xf32> to vector<16x16x128xf32>
    %103 = vector.extract_strided_slice %101 {offsets = [0, 1, 0], sizes = [16, 16, 128], strides = [1, 1, 1]} : vector<16x18x128xf32> to vector<16x16x128xf32>
    %104 = vector.extract_strided_slice %101 {offsets = [0, 2, 0], sizes = [16, 16, 128], strides = [1, 1, 1]} : vector<16x18x128xf32> to vector<16x16x128xf32>
    %105 = tpu.concatenate %102, %103, %104 in 2 : vector<16x16x128xf32>, vector<16x16x128xf32>, vector<16x16x128xf32> -> vector<16x16x384xf32>
    %106 = vector.shape_cast %105 : vector<16x16x384xf32> to vector<256x384xf32>
    %c2_47 = arith.constant 2 : index
    %c0_48 = arith.constant 0 : index
    %c0_49 = arith.constant 0 : index
    %107 = vector.load %arg6[%c2_47, %c0_48, %c0_49] : memref<3x384x128xf32, #tpu.memory_space<vmem>>, vector<1x384x128xf32>
    %108 = vector.shape_cast %107 : vector<1x384x128xf32> to vector<384x128xf32>
    %cst_50 = arith.constant dense<0.000000e+00> : vector<256x128xf32>
    %109 = tpu.matmul %106, %108, %cst_50 {dimension_numbers = #tpu.dot_dimension_numbers<[1], [0], [0], [1], [0, 0, 1, 1], [], []>} : vector<256x384xf32>, vector<384x128xf32>, vector<256x128xf32> -> vector<256x128xf32>
    %110 = arith.addf %100, %109 : vector<256x128xf32>
    %c0_51 = arith.constant 0 : index
    %c0_52 = arith.constant 0 : index
    %111 = vector.load %arg7[%c0_51, %c0_52] : memref<1x128xf32, #tpu.memory_space<vmem>>, vector<1x128xf32>
    %112 = vector.broadcast %111 : vector<1x128xf32> to vector<256x128xf32>
    %113 = arith.mulf %110, %112 : vector<256x128xf32>
    %c0_53 = arith.constant 0 : index
    %c0_54 = arith.constant 0 : index
    %114 = vector.load %arg8[%c0_53, %c0_54] : memref<1x128xf32, #tpu.memory_space<vmem>>, vector<1x128xf32>
    %115 = vector.broadcast %114 : vector<1x128xf32> to vector<256x128xf32>
    %116 = arith.addf %113, %115 : vector<256x128xf32>
    %cst_55 = arith.constant 0.000000e+00 : f32
    %117 = vector.broadcast %cst_55 : f32 to vector<256x128xf32>
    %118 = arith.maximumf %116, %117 : vector<256x128xf32>
    %119 = vector.shape_cast %118 : vector<256x128xf32> to vector<1x16x16x128xf32>
    %c0_56 = arith.constant 0 : index
    %c0_57 = arith.constant 0 : index
    %c0_58 = arith.constant 0 : index
    %c0_59 = arith.constant 0 : index
    %120 = vector.load %arg9[%c0_56, %c0_57, %c0_58, %c0_59] : memref<1x16x16x128xf32, #tpu.memory_space<vmem>>, vector<1x16x16x128xf32>
    tpu.vector_store %arg9[%c0_56, %c0_57, %c0_58, %c0_59], %119 {strides = array<i32>} : memref<1x16x16x128xf32, #tpu.memory_space<vmem>>, vector<1x16x16x128xf32>,
    return
  }
  func.func @transform_0(%arg0: i32, %arg1: i32) -> (i32, i32, i32, i32) {
    %c0_i32 = arith.constant 0 : i32
    %c0_i32_0 = arith.constant 0 : i32
    %c0_i32_1 = arith.constant 0 : i32
    %c0_i32_2 = arith.constant 0 : i32
    return %arg0, %c0_i32, %c0_i32_0, %c0_i32_1 : i32, i32, i32, i32
  }
  func.func @transform_1(%arg0: i32, %arg1: i32) -> (i32, i32, i32) {
    %c0_i32 = arith.constant 0 : i32
    %c0_i32_0 = arith.constant 0 : i32
    %c0_i32_1 = arith.constant 0 : i32
    %c0_i32_2 = arith.constant 0 : i32
    return %c0_i32, %c0_i32_0, %c0_i32_1 : i32, i32, i32
  }
  func.func @transform_2(%arg0: i32, %arg1: i32) -> (i32, i32) {
    %c0_i32 = arith.constant 0 : i32
    %c0_i32_0 = arith.constant 0 : i32
    %c0_i32_1 = arith.constant 0 : i32
    return %c0_i32, %c0_i32_0 : i32, i32
  }
  func.func @transform_3(%arg0: i32, %arg1: i32) -> (i32, i32) {
    %c0_i32 = arith.constant 0 : i32
    %c0_i32_0 = arith.constant 0 : i32
    %c0_i32_1 = arith.constant 0 : i32
    return %c0_i32, %c0_i32_0 : i32, i32
  }
  func.func @transform_4(%arg0: i32, %arg1: i32) -> (i32, i32, i32) {
    %c0_i32 = arith.constant 0 : i32
    %c0_i32_0 = arith.constant 0 : i32
    %c0_i32_1 = arith.constant 0 : i32
    %c0_i32_2 = arith.constant 0 : i32
    return %c0_i32, %c0_i32_0, %c0_i32_1 : i32, i32, i32
  }
  func.func @transform_5(%arg0: i32, %arg1: i32) -> (i32, i32) {
    %c0_i32 = arith.constant 0 : i32
    %c0_i32_0 = arith.constant 0 : i32
    %c0_i32_1 = arith.constant 0 : i32
    return %c0_i32, %c0_i32_0 : i32, i32
  }
  func.func @transform_6(%arg0: i32, %arg1: i32) -> (i32, i32) {
    %c0_i32 = arith.constant 0 : i32
    %c0_i32_0 = arith.constant 0 : i32
    %c0_i32_1 = arith.constant 0 : i32
    return %c0_i32, %c0_i32_0 : i32, i32
  }
  func.func @transform_7(%arg0: i32, %arg1: i32) -> (i32, i32, i32, i32) {
    %c0_i32 = arith.constant 0 : i32
    %c0_i32_0 = arith.constant 0 : i32
    %c0_i32_1 = arith.constant 0 : i32
    return %arg0, %arg1, %c0_i32, %c0_i32_0 : i32, i32, i32, i32
  }
}

</mosaic_0001>

<bundles_post_ra>
// kernel: double_conv.1
= control target key start
LH: loop header
LB: loop body
LE: loop exit
PB: predicated region body
PF: predicated region fallthrough
CT: control target
= control target key end

     0   :  { %s8045_s24 = smov 0   ;;  %s8047_s25 = smov 0   ;;  %s11293_s0 = inlined_call_operand.vmem [shape: f32[2,20,18,4], index: 0, kind: input, shape index: {}]   ;;  %s11294_s1 = inlined_call_operand.vmem [shape: f32[3,12,128], index: 1, kind: input, shape index: {}]   ;;  %s11295_s2 = inlined_call_operand.vmem [shape: f32[1,128], index: 2, kind: input, shape index: {}]   ;;  %s11296_s3 = inlined_call_operand.vmem [shape: f32[1,128], index: 3, kind: input, shape index: {}]   ;;  %s11297_s4 = inlined_call_operand.vmem [shape: f32[3,384,128], index: 4, kind: input, shape index: {}]   ;;  %s11298_s5 = inlined_call_operand.vmem [shape: f32[1,128], index: 5, kind: input, shape index: {}]   ;;  %s11299_s6 = inlined_call_operand.vmem [shape: f32[1,128], index: 6, kind: input, shape index: {}]   ;;  %s11300_s7 = inlined_call_operand.vmem [shape: f32[2,16,16,128], index: 7, kind: output, shape index: {}]  }
   0x1   :  { %s8049_s26 = smov 0  }
   0x2 LB: > { %s29_s27 = sadd.s32 1, %s7997_s25  ;;  %p5691_p0 = scmp.ge.s32.totalorder %s8001_s26, 1  ;;  %s8001_s26 = sphi %s8049_s26, %s17_s26   ;;  %s7997_s25 = sphi %s8047_s25, %s11807_s25   ;;  %s7993_s24 = sphi %s8045_s24, %s11806_s24  }
   0x3   : > { %p31_p1 = scmp.ge.s32.totalorder %s29_s27, 2  ;;  %p251_p2 = scmp.lt.s32.totalorder %s8001_s26, 3 }
   0x5   : > { %s11809_s27 = smov (%p31_p1, %s29_s27), 0  ;;  %p252_p3 = pnand %p5691_p0, %p251_p2 }
   0x7   : > { %255 = sbr.rel (%p252_p3) target bundleno = 1554 (0x612), region = 48 }
   0xe   : > { %v367_v0 = vld [vmem:[%s11294_s1] sm:$0xff]  ;;  %vm589_vm0 = vcmask 1043456   ;;  %p288_p4 = scmp.lt.s32.totalorder %s7993_s24, 1  ;;  %vm423_vm1 = vcmask 1046528   ;;  %vm516_vm2 = vcmask 31744   ;;  %vm1156_vm3 = vcmask 1045504  }
   0xf   : > { %v515_v1 = vrot.slane %v367_v0, 4  ;;  %v368_v13 = vld [vmem:[%s11294_s1 + $0x8] sm:$0xf]  ;;  %v8104_v17 = vld [vmem:[%s11294_s1 + $0x10] sm:$0xff] }
  0x10   : > { %s11811_s24 = smov (!%p288_p4, %s7993_s24), 1  ;;  %v11301_v55 = vrot.slane %v8104_v17, 4 }
  0x11   : > { %6612 = vmatprep.subr.msk.mxu0 %vm589_vm0, %v515_v1  ;;  %7596 = vmatprep.subr.msk.mxu1 %vm589_vm0, %v515_v1  ;;  %s7918_s30 = smul.u32 480, %s11811_s24  ;;  %s6134_s15 = sshll.u32 %s11811_s24, 8 }
  0x12   : > { %6613 = vmatpush3.msk.msra.mxu0 %vm589_vm0, %v515_v1  ;;  %7597 = vmatpush3.msk.msra.mxu1 %vm589_vm0, %v515_v1  ;;  %s11132_s18 = scalar_lea.vmem %s11300_s7, %s6134_s15 }
  0x13   : > { %6668 = vmatprep.subr.msk.mxu0 %vm589_vm0, %v367_v0  ;;  %s8077_s10 = scalar_lea.vmem %s11293_s0, %s7918_s30 }
  0x14   : > { %v307_v2 = vld [vmem:[%s8077_s10] sm:$0xff]  ;;  %v308_v3 = vld [vmem:[%s8077_s10 + $0x8] sm:$0xff]  ;;  %v309_v4 = vld [vmem:[%s8077_s10 + $0x10] sm:$0x3] }
  0x15   : > { %v424_v5 = vrot.slane %v307_v2, 1  ;;  %v425_v6 = vrot.slane %v308_v3, 1  ;;  %v427_v7 = vrot.slane %v309_v4, 1  ;;  %v1160_v8 = vrot.slane %v309_v4, 2  ;;  %v8099_v16 = vld [vmem:[%s8077_s10 + $0x18] sm:$0xff]  ;;  %v8111_v18 = vld [vmem:[%s8077_s10 + $0x20] sm:$0xff] }
  0x16   : > { %v1157_v11 = vrot.slane %v307_v2, 2  ;;  %v1158_v12 = vrot.slane %v308_v3, 2  ;;  %v8114_v19 = vld [vmem:[%s8077_s10 + $0x30] sm:$0xff]  ;;  %v8123_v20 = vld [vmem:[%s8077_s10 + $0x38] sm:$0xff]  ;;  %v8126_v21 = vld [vmem:[%s8077_s10 + $0x48] sm:$0xff]  ;;  %v1162_v51 = vrot.slane %v8099_v16, 2 }
  0x17   : > { %v426_v9 = vsel %vm423_vm1, %v424_v5, %v425_v6  ;;  %v428_v10 = vsel %vm423_vm1, %v425_v6, %v427_v7  ;;  %v8133_v22 = vld [vmem:[%s8077_s10 + $0x50] sm:$0xff]  ;;  %v8136_v23 = vld [vmem:[%s8077_s10 + $0x60] sm:$0xff]  ;;  %v8143_v24 = vld [vmem:[%s8077_s10 + $0x68] sm:$0xff]  ;;  %v1163_v52 = vrot.slane %v8111_v18, 2  ;;  %v1167_v57 = vrot.slane %v8114_v19, 2 }
  0x18   : > { %6614 = vmatprep.mubr.msk.f32.mxu0 %vm516_vm2, %v426_v9  ;;  %v8090_v14 = vsel %vm1156_vm3, %v1157_v11, %v1158_v12  ;;  %v8093_v15 = vsel %vm1156_vm3, %v1158_v12, %v1160_v8  ;;  %v8146_v25 = vld [vmem:[%s8077_s10 + $0x78] sm:$0xff]  ;;  %v8153_v26 = vld [vmem:[%s8077_s10 + $0x80] sm:$0xff]  ;;  %v8156_v27 = vld [vmem:[%s8077_s10 + $0x90] sm:$0xff]  ;;  %v1168_v58 = vrot.slane %v8123_v20, 2  ;;  %v1172_v63 = vrot.slane %v8126_v21, 2 }
  0x19   : > { %6615 = vmatmul.mubr.msk.f32.vlgmr.msra.gmra.mrb[0].mxu0 %vm516_vm2, %v428_v10  ;;  %v8163_v28 = vld [vmem:[%s8077_s10 + $0x98] sm:$0xff]  ;;  %v8166_v29 = vld [vmem:[%s8077_s10 + $0xa8] sm:$0xff]  ;;  %v8173_v30 = vld [vmem:[%s8077_s10 + $0xb0] sm:$0xff]  ;;  %v8284_v56 = vsel %vm1156_vm3, %v1162_v51, %v1163_v52  ;;  %v1177_v5 = vrot.slane %v8136_v23, 2  ;;  %v1178_v6 = vrot.slane %v8143_v24, 2  ;;  %v429_v8 = vrot.slane %v8099_v16, 1 }
  0x1a   : > { %6669 = vmatpush3.msk.msra.mxu0 %vm589_vm0, %v367_v0  ;;  %6670 = vmatprep.mubr.msk.f32.mxu0 %vm516_vm2, %v307_v2  ;;  %v8176_v31 = vld [vmem:[%s8077_s10 + $0xc0] sm:$0xff]  ;;  %v8183_v32 = vld [vmem:[%s8077_s10 + $0xc8] sm:$0xff]  ;;  %v8186_v33 = vld [vmem:[%s8077_s10 + $0xd8] sm:$0xff]  ;;  %11493 = vst [vmem:[#allocation3_spill] sm:$0xff] %v8284_v56  ;;  %v8299_v62 = vsel %vm1156_vm3, %v1167_v57, %v1168_v58  ;;  %v1173_v0 = vrot.slane %v8133_v22, 2  ;;  %v430_v9 = vrot.slane %v8111_v18, 1 }
  0x1b   : > { %6724 = vmatprep.subr.msk.mxu0 %vm589_vm0, %v368_v13  ;;  %v8193_v34 = vld [vmem:[%s8077_s10 + $0xe0] sm:$0xff]  ;;  %v8196_v35 = vld [vmem:[%s8077_s10 + $0xf0] sm:$0xff]  ;;  %v8203_v36 = vld [vmem:[%s8077_s10 + $0xf8] sm:$0xff]  ;;  %11495 = vst [vmem:[#allocation5_spill] sm:$0xff] %v8299_v62 }
  0x1c   : > { %v8206_v37 = vld [vmem:[%s8077_s10 + $0x108] sm:$0xff]  ;;  %v8213_v38 = vld [vmem:[%s8077_s10 + $0x110] sm:$0xff]  ;;  %v8216_v39 = vld [vmem:[%s8077_s10 + $0x120] sm:$0xff]  ;;  %v8315_v4 = vsel %vm1156_vm3, %v1172_v63, %v1173_v0  ;;  %v1188_v63 = vrot.slane %v8163_v28, 2 }
  0x1d   : > { %v8223_v40 = vld [vmem:[%s8077_s10 + $0x128] sm:$0xff]  ;;  %v8226_v41 = vld [vmem:[%s8077_s10 + $0x138] sm:$0xff]  ;;  %v8233_v42 = vld [vmem:[%s8077_s10 + $0x140] sm:$0xff]  ;;  %11497 = vst [vmem:[#allocation7_spill] sm:$0xff] %v8315_v4 }
  0x1e   : > { %v8236_v43 = vld [vmem:[%s8077_s10 + $0x150] sm:$0xff]  ;;  %v8243_v44 = vld [vmem:[%s8077_s10 + $0x158] sm:$0xff]  ;;  %v8246_v45 = vld [vmem:[%s8077_s10 + $0x168] sm:$0xff] }
  0x1f   : > { %v8253_v46 = vld [vmem:[%s8077_s10 + $0x170] sm:$0xff]  ;;  %v8256_v47 = vld [vmem:[%s8077_s10 + $0x180] sm:$0xff]  ;;  %v8263_v48 = vld [vmem:[%s8077_s10 + $0x188] sm:$0xff] }
  0x20   : > { %v8266_v49 = vld [vmem:[%s8077_s10 + $0x198] sm:$0xff]  ;;  %v8273_v50 = vld [vmem:[%s8077_s10 + $0x1a0] sm:$0xff]  ;;  %v312_v53 = vld [vmem:[%s8077_s10 + $0x28] sm:$0x3] }
  0x21   : > { %6671 = vmatmul.mubr.msk.f32.vlgmr.msra.gmra.mrb[0].mxu0 %vm516_vm2, %v308_v3  ;;  %v1165_v54 = vrot.slane %v312_v53, 2  ;;  %v315_v59 = vld [vmem:[%s8077_s10 + $0x40] sm:$0x3]  ;;  %v318_v1 = vld [vmem:[%s8077_s10 + $0x58] sm:$0x3]  ;;  %v432_v10 = vrot.slane %v312_v53, 1 }
  0x22   : > { %6725 = vmatpush3.msk.msra.mxu0 %vm589_vm0, %v368_v13  ;;  %6673 = vmatprep.mubr.msk.f32.mxu0 %vm516_vm2, %v8099_v16  ;;  %v1170_v61 = vrot.slane %v315_v59, 2  ;;  %v1175_v3 = vrot.slane %v318_v1, 2  ;;  %v8320_v7 = vld [vmem:[%s8077_s10 + $0x70] sm:$0x3]  ;;  %v8333_v13 = vsel %vm1156_vm3, %v1177_v5, %v1178_v6  ;;  %v8338_v51 = vld [vmem:[%s8077_s10 + $0x88] sm:$0x3] }
  0x23   : > { %6780 = vmatprep.subr.msk.mxu0 %vm589_vm0, %v8104_v17  ;;  %v8296_v60 = vsel %vm1156_vm3, %v1163_v52, %v1165_v54  ;;  %v1180_v12 = vrot.slane %v8320_v7, 2  ;;  %11499 = vst [vmem:[#allocation9_spill] sm:$0xff] %v8333_v13  ;;  %v8343_v52 = vsel %vm423_vm1, %v429_v8, %v430_v9  ;;  %v1185_v54 = vrot.slane %v8338_v51, 2 }
  0x24   : > { %11494 = vst [vmem:[#allocation4_spill] sm:$0xff] %v8296_v60  ;;  %v8312_v2 = vsel %vm1156_vm3, %v1168_v58, %v1170_v61  ;;  %v8329_v11 = vsel %vm1156_vm3, %v1173_v0, %v1175_v3  ;;  %v8352_v57 = vsel %vm423_vm1, %v430_v9, %v432_v10  ;;  %6617 = vmatprep.mubr.msk.f32.mxu1 %vm516_vm2, %v8343_v52  ;;  %v1187_v61 = vrot.slane %v8156_v27, 2  ;;  %v8362_v0 = vld [vmem:[%s8077_s10 + $0xa0] sm:$0x3] }
  0x25   : > { %6674 = vmatmul.mubr.msk.f32.gmra.mrb[2].mxu0 %vm516_vm2, %v8111_v18  ;;  %11496 = vst [vmem:[#allocation6_spill] sm:$0xff] %v8312_v2  ;;  %11498 = vst [vmem:[#allocation8_spill] sm:$0xff] %v8329_v11  ;;  %v8348_v53 = vsel %vm1156_vm3, %v1178_v6, %v1180_v12  ;;  %6618 = vmatmul.mubr.msk.f32.vlgmr.msra.gmra.mrb[0].mxu1 %vm516_vm2, %v8352_v57  ;;  %v434_v3 = vrot.slane %v8114_v19, 1  ;;  %v435_v5 = vrot.slane %v8123_v20, 1  ;;  %v1190_v8 = vrot.slane %v8362_v0, 2 }
  0x26   : > { %6676 = vmatprep.mubr.msk.f32.mxu0 %vm516_vm2, %v8114_v19  ;;  %11500 = vst [vmem:[#allocation10_spill] sm:$0xff] %v8348_v53  ;;  %v437_v9 = vrot.slane %v315_v59, 1  ;;  %v8377_v10 = vsel %vm1156_vm3, %v1187_v61, %v1188_v63  ;;  %v1192_v12 = vrot.slane %v8166_v29, 2  ;;  %v439_v59 = vrot.slane %v8126_v21, 1 }
  0x27   : > { %11503 = vst [vmem:[#allocation13_spill] sm:$0xff] %v8377_v10 }
  0x29   : > { %6677 = vmatmul.mubr.msk.f32.gmra.mrb[4].mxu0 %vm516_vm2, %v8123_v20 }
  0x2a   : > { %6679 = vmatprep.mubr.msk.f32.mxu0 %vm516_vm2, %v8126_v21 }
  0x2d   : > { %6680 = vmatmul.mubr.msk.f32.gmra.mrb[6].mxu0 %vm516_vm2, %v8133_v22 }
  0x2e   : > { %6682 = vmatprep.mubr.msk.f32.mxu0 %vm516_vm2, %v8136_v23 }
  0x31   : > { %6683 = vmatmul.mubr.msk.f32.gmra.mrb[8].mxu0 %vm516_vm2, %v8143_v24 }
  0x32   : > { %6685 = vmatprep.mubr.msk.f32.mxu0 %vm516_vm2, %v8146_v25 }
  0x35   : > { %6686 = vmatmul.mubr.msk.f32.gmra.mrb[10].mxu0 %vm516_vm2, %v8153_v26 }
  0x36   : > { %6688 = vmatprep.mubr.msk.f32.mxu0 %vm516_vm2, %v8156_v27 }
  0x39   : > { %6689 = vmatmul.mubr.msk.f32.gmra.mrb[12].mxu0 %vm516_vm2, %v8163_v28 }
  0x3a   : > { %6691 = vmatprep.mubr.msk.f32.mxu0 %vm516_vm2, %v8166_v29 }
  0x3d   : > { %6692 = vmatmul.mubr.msk.f32.gmra.mrb[14].mxu0 %vm516_vm2, %v8173_v30 }
  0x3e   : > { %6694 = vmatprep.mubr.msk.f32.mxu0 %vm516_vm2, %v8176_v31 }
  0x41   : > { %6695 = vmatmul.mubr.msk.f32.gmra.mrb[16].mxu0 %vm516_vm2, %v8183_v32 }
  0x42   : > { %6697 = vmatprep.mubr.msk.f32.mxu0 %vm516_vm2, %v8186_v33 }
  0x45   : > { %6698 = vmatmul.mubr.msk.f32.gmra.mrb[18].mxu0 %vm516_vm2, %v8193_v34 }
  0x46   : > { %6700 = vmatprep.mubr.msk.f32.mxu0 %vm516_vm2, %v8196_v35 }
  0x49   : > { %6701 = vmatmul.mubr.msk.f32.gmra.mrb[20].mxu0 %vm516_vm2, %v8203_v36 }
  0x4a   : > { %6703 = vmatprep.mubr.msk.f32.mxu0 %vm516_vm2, %v8206_v37 }
  0x4d   : > { %6704 = vmatmul.mubr.msk.f32.gmra.mrb[22].mxu0 %vm516_vm2, %v8213_v38 }
  0x4e   : > { %6706 = vmatprep.mubr.msk.f32.mxu0 %vm516_vm2, %v8216_v39 }
  0x51   : > { %6707 = vmatmul.mubr.msk.f32.gmra.mrb[24].mxu0 %vm516_vm2, %v8223_v40 }
  0x52   : > { %6709 = vmatprep.mubr.msk.f32.mxu0 %vm516_vm2, %v8226_v41 }
  0x55   : > { %6710 = vmatmul.mubr.msk.f32.gmra.mrb[26].mxu0 %vm516_vm2, %v8233_v42 }
  0x56   : > { %6712 = vmatprep.mubr.msk.f32.mxu0 %vm516_vm2, %v8236_v43 }
  0x59   : > { %6713 = vmatmul.mubr.msk.f32.gmra.mrb[28].mxu0 %vm516_vm2, %v8243_v44 }
  0x5a   : > { %6715 = vmatprep.mubr.msk.f32.mxu0 %vm516_vm2, %v8246_v45 }
  0x5d   : > { %6716 = vmatmul.mubr.msk.f32.gmra.mrb[30].mxu0 %vm516_vm2, %v8253_v46 }
  0x5e   : > { %6718 = vmatprep.mubr.msk.f32.mxu0 %vm516_vm2, %v8256_v47 }
  0x61   : > { %6719 = vmatmul.mubr.msk.f32.gmra.mrb[32].mxu0 %vm516_vm2, %v8263_v48 }
  0x62   : > { %6721 = vmatprep.mubr.msk.f32.mxu0 %vm516_vm2, %v8266_v49 }
  0x65   : > { %6722 = vmatmul.mubr.msk.f32.gmra.mrb[34].mxu0 %vm516_vm2, %v8273_v50 }
  0x66   : > { %6726 = vmatprep.mubr.msk.f32.mxu0 %vm516_vm2, %v8090_v14  ;;  %v1182_v14 = vrot.slane %v8146_v25, 2 }
  0x69   : > { %6727 = vmatmul.mubr.msk.f32.vlgmr.msra.gmra.mrb[0].mxu0 %vm516_vm2, %v8093_v15  ;;  %v1183_v15 = vrot.slane %v8153_v26, 2 }
  0x6a   : > { %6781 = vmatpush3.msk.msra.mxu0 %vm589_vm0, %v8104_v17  ;;  %6729 = vmatprep.mubr.msk.f32.mxu0 %vm516_vm2, %v8284_v56  ;;  %v8497_v56 = vld [vmem:[%s8077_s10 + $0x118] sm:$0x3] }
  0x6b   : > { %6836 = vmatprep.subr.msk.mxu0 %vm589_vm0, %v11301_v55  ;;  %v8357_v58 = vsel %vm1156_vm3, %v1182_v14, %v1183_v15  ;;  %v8373_v6 = vsel %vm1156_vm3, %v1183_v15, %v1185_v54  ;;  %v1193_v14 = vrot.slane %v8173_v30, 2  ;;  %v8382_v55 = vld [vmem:[%s8077_s10 + $0xb8] sm:$0x3]  ;;  %v440_v15 = vrot.slane %v8133_v22, 1 }
  0x6c   : > { %11501 = vst [vmem:[#allocation11_spill] sm:$0xff] %v8357_v58  ;;  %11502 = vst [vmem:[#allocation12_spill] sm:$0xff] %v8373_v6  ;;  %v8401_v54 = vsel %vm1156_vm3, %v1188_v63, %v1190_v8  ;;  %v1195_v61 = vrot.slane %v8382_v55, 2  ;;  %v445_v63 = vrot.slane %v8143_v24, 1 }
  0x6d   : > { %6730 = vmatmul.mubr.msk.f32.gmra.mrb[2].mxu0 %vm516_vm2, %v8296_v60  ;;  %11504 = vst [vmem:[#allocation14_spill] sm:$0xff] %v8401_v54 }
  0x6e   : > { %6732 = vmatprep.mubr.msk.f32.mxu0 %vm516_vm2, %v8299_v62  ;;  %v8429_v8 = vsel %vm1156_vm3, %v1193_v14, %v1195_v61  ;;  %v450_v61 = vrot.slane %v8153_v26, 1  ;;  %v8468_v62 = vld [vmem:[%s8077_s10 + $0x100] sm:$0x3] }
  0x6f   : > { %11506 = vst [vmem:[#allocation16_spill] sm:$0xff] %v8429_v8 }
  0x71   : > { %6733 = vmatmul.mubr.msk.f32.gmra.mrb[4].mxu0 %vm516_vm2, %v8312_v2 }
  0x72   : > { %6735 = vmatprep.mubr.msk.f32.mxu0 %vm516_vm2, %v8315_v4  ;;  %v8439_v4 = vld [vmem:[%s8077_s10 + $0xe8] sm:$0x3] }
  0x75   : > { %6736 = vmatmul.mubr.msk.f32.gmra.mrb[6].mxu0 %vm516_vm2, %v8329_v11  ;;  %v8413_v11 = vsel %vm423_vm1, %v439_v59, %v440_v15  ;;  %v447_v59 = vrot.slane %v8320_v7, 1  ;;  %v449_v7 = vrot.slane %v8146_v25, 1 }
  0x76   : > { %6738 = vmatprep.mubr.msk.f32.mxu0 %vm516_vm2, %v8333_v13  ;;  %v8410_v13 = vld [vmem:[%s8077_s10 + $0xd0] sm:$0x3] }
  0x77   : > { %v8471_v60 = vsel %vm423_vm1, %v449_v7, %v450_v61  ;;  %v1210_v7 = vrot.slane %v8468_v62, 2 }
  0x78   : > { %11511 = vst [vmem:[#allocation21_spill] sm:$0xff] %v8471_v60 }
  0x79   : > { %6739 = vmatmul.mubr.msk.f32.gmra.mrb[8].mxu0 %vm516_vm2, %v8348_v53  ;;  %v8385_v53 = vsel %vm423_vm1, %v434_v3, %v435_v5  ;;  %v442_v3 = vrot.slane %v318_v1, 1  ;;  %v444_v1 = vrot.slane %v8136_v23, 1 }
  0x7a   : > { %6741 = vmatprep.mubr.msk.f32.mxu0 %vm516_vm2, %v8357_v58  ;;  %v8388_v58 = vsel %vm423_vm1, %v435_v5, %v437_v9  ;;  %6620 = vmatprep.mubr.msk.f32.mxu1 %vm516_vm2, %v8385_v53  ;;  %v8405_v5 = vsel %vm1156_vm3, %v1192_v12, %v1193_v14  ;;  %v1197_v9 = vrot.slane %v8176_v31, 2  ;;  %v1200_v12 = vrot.slane %v8410_v13, 2 }
  0x7b   : > { %6621 = vmatmul.mubr.msk.f32.gmra.mrb[2].mxu1 %vm516_vm2, %v8388_v58  ;;  %11505 = vst [vmem:[#allocation15_spill] sm:$0xff] %v8405_v5  ;;  %v8442_v2 = vsel %vm423_vm1, %v444_v1, %v445_v63  ;;  %v8445_v14 = vsel %vm423_vm1, %v445_v63, %v447_v59  ;;  %v1205_v1 = vrot.slane %v8439_v4, 2  ;;  %v452_v63 = vrot.slane %v8338_v51, 1 }
  0x7c   : > { %6623 = vmatprep.mubr.msk.f32.mxu1 %vm516_vm2, %v8413_v11  ;;  %11508 = vst [vmem:[#allocation18_spill] sm:$0xff] %v8445_v14  ;;  %v454_v51 = vrot.slane %v8156_v27, 1 }
  0x7d   : > { %6742 = vmatmul.mubr.msk.f32.gmra.mrb[10].mxu0 %vm516_vm2, %v8373_v6  ;;  %v1198_v6 = vrot.slane %v8183_v32, 2 }
  0x7e   : > { %6744 = vmatprep.mubr.msk.f32.mxu0 %vm516_vm2, %v8377_v10  ;;  %v8416_v10 = vsel %vm423_vm1, %v440_v15, %v442_v3  ;;  %v1202_v3 = vrot.slane %v8186_v33, 2 }
  0x7f   : > { %6624 = vmatmul.mubr.msk.f32.gmra.mrb[4].mxu1 %vm516_vm2, %v8416_v10  ;;  %v8434_v15 = vsel %vm1156_vm3, %v1197_v9, %v1198_v6  ;;  %v8458_v9 = vsel %vm1156_vm3, %v1198_v6, %v1200_v12  ;;  %v8474_v6 = vsel %vm423_vm1, %v450_v61, %v452_v63  ;;  %v455_v12 = vrot.slane %v8163_v28, 1 }
  0x80   : > { %11507 = vst [vmem:[#allocation17_spill] sm:$0xff] %v8434_v15  ;;  %6626 = vmatprep.mubr.msk.f32.mxu1 %vm516_vm2, %v8442_v2  ;;  %11509 = vst [vmem:[#allocation19_spill] sm:$0xff] %v8458_v9  ;;  %v457_v61 = vrot.slane %v8362_v0, 1  ;;  %v459_v0 = vrot.slane %v8166_v29, 1 }
  0x81   : > { %6745 = vmatmul.mubr.msk.f32.gmra.mrb[12].mxu0 %vm516_vm2, %v8401_v54  ;;  %v1203_v54 = vrot.slane %v8193_v34, 2  ;;  %11512 = vst [vmem:[#allocation22_spill] sm:$0xff] %v8474_v6 }
  0x82   : > { %6747 = vmatprep.mubr.msk.f32.mxu0 %vm516_vm2, %v8405_v5  ;;  %v1208_v5 = vrot.slane %v8203_v36, 2 }
  0x83   : > { %6627 = vmatmul.mubr.msk.f32.gmra.mrb[6].mxu1 %vm516_vm2, %v8445_v14  ;;  %v8463_v59 = vsel %vm1156_vm3, %v1202_v3, %v1203_v54  ;;  %v8487_v3 = vsel %vm1156_vm3, %v1203_v54, %v1205_v1  ;;  %v8503_v54 = vsel %vm423_vm1, %v455_v12, %v457_v61 }
  0x84   : > { %11510 = vst [vmem:[#allocation20_spill] sm:$0xff] %v8463_v59  ;;  %6629 = vmatprep.mubr.msk.f32.mxu1 %vm516_vm2, %v8471_v60  ;;  %11513 = vst [vmem:[#allocation23_spill] sm:$0xff] %v8487_v3  ;;  %v8516_v1 = vsel %vm1156_vm3, %v1208_v5, %v1210_v7 }
  0x85   : > { %6748 = vmatmul.mubr.msk.f32.gmra.mrb[14].mxu0 %vm516_vm2, %v8429_v8  ;;  %v1207_v8 = vrot.slane %v8196_v35, 2  ;;  %11516 = vst [vmem:[#allocation26_spill] sm:$0xff] %v8503_v54  ;;  %11517 = vst [vmem:[#allocation27_spill] sm:$0xff] %v8516_v1 }
  0x86   : > { %6750 = vmatprep.mubr.msk.f32.mxu0 %vm516_vm2, %v8434_v15  ;;  %v1213_v15 = vrot.slane %v8213_v38, 2 }
  0x87   : > { %6630 = vmatmul.mubr.msk.f32.gmra.mrb[8].mxu1 %vm516_vm2, %v8474_v6  ;;  %v8492_v63 = vsel %vm1156_vm3, %v1207_v8, %v1208_v5  ;;  %v8500_v6 = vsel %vm423_vm1, %v454_v51, %v455_v12  ;;  %v460_v8 = vrot.slane %v8173_v30, 1  ;;  %v1215_v51 = vrot.slane %v8497_v56, 2 }
  0x88   : > { %11514 = vst [vmem:[#allocation24_spill] sm:$0xff] %v8492_v63  ;;  %11515 = vst [vmem:[#allocation25_spill] sm:$0xff] %v8500_v6  ;;  %6632 = vmatprep.mubr.msk.f32.mxu1 %vm516_vm2, %v8500_v6  ;;  %v462_v12 = vrot.slane %v8382_v55, 1  ;;  %v8526_v6 = vld [vmem:[%s8077_s10 + $0x130] sm:$0x3]  ;;  %v464_v55 = vrot.slane %v8176_v31, 1 }
  0x89   : > { %6751 = vmatmul.mubr.msk.f32.gmra.mrb[16].mxu0 %vm516_vm2, %v8458_v9  ;;  %v1212_v9 = vrot.slane %v8206_v37, 2  ;;  %v8545_v7 = vsel %vm1156_vm3, %v1213_v15, %v1215_v51 }
  0x8a   : > { %6753 = vmatprep.mubr.msk.f32.mxu0 %vm516_vm2, %v8463_v59  ;;  %v1218_v59 = vrot.slane %v8223_v40, 2  ;;  %v8532_v5 = vsel %vm423_vm1, %v460_v8, %v462_v12  ;;  %11521 = vst [vmem:[#allocation31_spill] sm:$0xff] %v8545_v7 }
  0x8b   : > { %6633 = vmatmul.mubr.msk.f32.gmra.mrb[10].mxu1 %vm516_vm2, %v8503_v54  ;;  %v8521_v61 = vsel %vm1156_vm3, %v1212_v9, %v1213_v15  ;;  %v8529_v54 = vsel %vm423_vm1, %v459_v0, %v460_v8  ;;  %11520 = vst [vmem:[#allocation30_spill] sm:$0xff] %v8532_v5  ;;  %v465_v9 = vrot.slane %v8183_v32, 1  ;;  %v1220_v0 = vrot.slane %v8526_v6, 2 }
  0x8c   : > { %11518 = vst [vmem:[#allocation28_spill] sm:$0xff] %v8521_v61  ;;  %11519 = vst [vmem:[#allocation29_spill] sm:$0xff] %v8529_v54  ;;  %6635 = vmatprep.mubr.msk.f32.mxu1 %vm516_vm2, %v8529_v54  ;;  %v467_v8 = vrot.slane %v8410_v13, 1  ;;  %v8555_v54 = vld [vmem:[%s8077_s10 + $0x148] sm:$0x3]  ;;  %v469_v13 = vrot.slane %v8186_v33, 1 }
  0x8d   : > { %6754 = vmatmul.mubr.msk.f32.gmra.mrb[18].mxu0 %vm516_vm2, %v8487_v3  ;;  %v1217_v3 = vrot.slane %v8216_v39, 2  ;;  %v8574_v51 = vsel %vm1156_vm3, %v1218_v59, %v1220_v0 }
  0x8e   : > { %6756 = vmatprep.mubr.msk.f32.mxu0 %vm516_vm2, %v8492_v63  ;;  %v1223_v63 = vrot.slane %v8233_v42, 2  ;;  %v8561_v15 = vsel %vm423_vm1, %v465_v9, %v467_v8  ;;  %11525 = vst [vmem:[#allocation35_spill] sm:$0xff] %v8574_v51 }
  0x8f   : > { %6636 = vmatmul.mubr.msk.f32.gmra.mrb[12].mxu1 %vm516_vm2, %v8532_v5  ;;  %v8550_v12 = vsel %vm1156_vm3, %v1217_v3, %v1218_v59  ;;  %v8558_v5 = vsel %vm423_vm1, %v464_v55, %v465_v9  ;;  %11524 = vst [vmem:[#allocation34_spill] sm:$0xff] %v8561_v15  ;;  %v470_v3 = vrot.slane %v8193_v34, 1  ;;  %v1225_v55 = vrot.slane %v8555_v54, 2 }
  0x90   : > { %11522 = vst [vmem:[#allocation32_spill] sm:$0xff] %v8550_v12  ;;  %11523 = vst [vmem:[#allocation33_spill] sm:$0xff] %v8558_v5  ;;  %6638 = vmatprep.mubr.msk.f32.mxu1 %vm516_vm2, %v8558_v5  ;;  %v472_v9 = vrot.slane %v8439_v4, 1  ;;  %v8584_v5 = vld [vmem:[%s8077_s10 + $0x160] sm:$0x3]  ;;  %v474_v4 = vrot.slane %v8196_v35, 1 }
  0x91   : > { %6757 = vmatmul.mubr.msk.f32.gmra.mrb[20].mxu0 %vm516_vm2, %v8516_v1  ;;  %v1222_v1 = vrot.slane %v8226_v41, 2  ;;  %v8603_v0 = vsel %vm1156_vm3, %v1223_v63, %v1225_v55 }
  0x92   : > { %6759 = vmatprep.mubr.msk.f32.mxu0 %vm516_vm2, %v8521_v61  ;;  %v1228_v61 = vrot.slane %v8243_v44, 2  ;;  %v8590_v59 = vsel %vm423_vm1, %v470_v3, %v472_v9  ;;  %11529 = vst [vmem:[#allocation39_spill] sm:$0xff] %v8603_v0 }
  0x93   : > { %6639 = vmatmul.mubr.msk.f32.gmra.mrb[14].mxu1 %vm516_vm2, %v8561_v15  ;;  %v8579_v8 = vsel %vm1156_vm3, %v1222_v1, %v1223_v63  ;;  %v8587_v15 = vsel %vm423_vm1, %v469_v13, %v470_v3  ;;  %11528 = vst [vmem:[#allocation38_spill] sm:$0xff] %v8590_v59  ;;  %v475_v1 = vrot.slane %v8203_v36, 1  ;;  %v1230_v13 = vrot.slane %v8584_v5, 2 }
  0x94   : > { %11526 = vst [vmem:[#allocation36_spill] sm:$0xff] %v8579_v8  ;;  %11527 = vst [vmem:[#allocation37_spill] sm:$0xff] %v8587_v15  ;;  %6641 = vmatprep.mubr.msk.f32.mxu1 %vm516_vm2, %v8587_v15  ;;  %v477_v3 = vrot.slane %v8468_v62, 1  ;;  %v8613_v15 = vld [vmem:[%s8077_s10 + $0x178] sm:$0x3]  ;;  %v479_v62 = vrot.slane %v8206_v37, 1 }
  0x95   : > { %6760 = vmatmul.mubr.msk.f32.gmra.mrb[22].mxu0 %vm516_vm2, %v8545_v7  ;;  %v1227_v7 = vrot.slane %v8236_v43, 2  ;;  %v8632_v55 = vsel %vm1156_vm3, %v1228_v61, %v1230_v13 }
  0x96   : > { %6762 = vmatprep.mubr.msk.f32.mxu0 %vm516_vm2, %v8550_v12  ;;  %v1233_v12 = vrot.slane %v8253_v46, 2  ;;  %v8619_v63 = vsel %vm423_vm1, %v475_v1, %v477_v3  ;;  %11533 = vst [vmem:[#allocation43_spill] sm:$0xff] %v8632_v55 }
  0x97   : > { %6642 = vmatmul.mubr.msk.f32.gmra.mrb[16].mxu1 %vm516_vm2, %v8590_v59  ;;  %v8608_v9 = vsel %vm1156_vm3, %v1227_v7, %v1228_v61  ;;  %v8616_v59 = vsel %vm423_vm1, %v474_v4, %v475_v1  ;;  %11532 = vst [vmem:[#allocation42_spill] sm:$0xff] %v8619_v63  ;;  %v480_v7 = vrot.slane %v8213_v38, 1  ;;  %v1235_v4 = vrot.slane %v8613_v15, 2 }
  0x98   : > { %11530 = vst [vmem:[#allocation40_spill] sm:$0xff] %v8608_v9  ;;  %11531 = vst [vmem:[#allocation41_spill] sm:$0xff] %v8616_v59  ;;  %6644 = vmatprep.mubr.msk.f32.mxu1 %vm516_vm2, %v8616_v59  ;;  %v482_v1 = vrot.slane %v8497_v56, 1  ;;  %v357_v59 = vld [vmem:[%s8077_s10 + $0x190] sm:$0x3]  ;;  %v484_v56 = vrot.slane %v8216_v39, 1 }
  0x99   : > { %6763 = vmatmul.mubr.msk.f32.gmra.mrb[24].mxu0 %vm516_vm2, %v8574_v51  ;;  %v1232_v51 = vrot.slane %v8246_v45, 2  ;;  %v485_v61 = vrot.slane %v8223_v40, 1  ;;  %v1240_v13 = vrot.slane %v357_v59, 2 }
  0x9a   : > { %6765 = vmatprep.mubr.msk.f32.mxu0 %vm516_vm2, %v8579_v8  ;;  %v1238_v8 = vrot.slane %v8263_v48, 2 }
  0x9b   : > { %6645 = vmatmul.mubr.msk.f32.gmra.mrb[18].mxu1 %vm516_vm2, %v8619_v63  ;;  %v8637_v3 = vsel %vm1156_vm3, %v1232_v51, %v1233_v12  ;;  %v8643_v63 = vsel %vm423_vm1, %v479_v62, %v480_v7  ;;  %v8659_v51 = vsel %vm1156_vm3, %v1233_v12, %v1235_v4  ;;  %v487_v62 = vrot.slane %v8526_v6, 1 }
  0x9c   : > { %11534 = vst [vmem:[#allocation44_spill] sm:$0xff] %v8643_v63  ;;  %6647 = vmatprep.mubr.msk.f32.mxu1 %vm516_vm2, %v8643_v63  ;;  %11536 = vst [vmem:[#allocation46_spill] sm:$0xff] %v8659_v51  ;;  %v360_v63 = vld [vmem:[%s8077_s10 + $0x1a8] sm:$0x3]  ;;  %v8669_v60 = vsel %vm423_vm1, %v484_v56, %v485_v61  ;;  %v489_v6 = vrot.slane %v8226_v41, 1  ;;  %v490_v12 = vrot.slane %v8233_v42, 1 }
  0x9d   : > { %6766 = vmatmul.mubr.msk.f32.gmra.mrb[26].mxu0 %vm516_vm2, %v8603_v0  ;;  %v1237_v0 = vrot.slane %v8256_v47, 2  ;;  %v1245_v4 = vrot.slane %v360_v63, 2  ;;  %v492_v56 = vrot.slane %v8555_v54, 1 }
  0x9e   : > { %6768 = vmatprep.mubr.msk.f32.mxu0 %vm516_vm2, %v8608_v9  ;;  %v8646_v9 = vsel %vm423_vm1, %v480_v7, %v482_v1  ;;  %v1242_v1 = vrot.slane %v8266_v49, 2 }
  0x9f   : > { %11535 = vst [vmem:[#allocation45_spill] sm:$0xff] %v8646_v9  ;;  %6648 = vmatmul.mubr.msk.f32.gmra.mrb[20].mxu1 %vm516_vm2, %v8646_v9  ;;  %v8663_v7 = vsel %vm1156_vm3, %v1237_v0, %v1238_v8  ;;  %v8672_v9 = vsel %vm423_vm1, %v485_v61, %v487_v62  ;;  %v8685_v0 = vsel %vm1156_vm3, %v1238_v8, %v1240_v13  ;;  %v494_v8 = vrot.slane %v8236_v43, 1 }
  0xa0   : > { %11537 = vst [vmem:[#allocation47_spill] sm:$0xff] %v8663_v7  ;;  %11538 = vst [vmem:[#allocation48_spill] sm:$0xff] %v8672_v9  ;;  %6650 = vmatprep.mubr.msk.f32.mxu1 %vm516_vm2, %v8669_v60  ;;  %v8692_v62 = vsel %vm423_vm1, %v489_v6, %v490_v12  ;;  %v495_v13 = vrot.slane %v8243_v44, 1 }
  0xa1   : > { %6769 = vmatmul.mubr.msk.f32.gmra.mrb[28].mxu0 %vm516_vm2, %v8632_v55  ;;  %v1243_v55 = vrot.slane %v8273_v50, 2  ;;  %11540 = vst [vmem:[#allocation50_spill] sm:$0xff] %v8692_v62 }
  0xa2   : > { %6771 = vmatprep.mubr.msk.f32.mxu0 %vm516_vm2, %v8637_v3  ;;  %v8712_v6 = vsel %vm423_vm1, %v494_v8, %v495_v13 }
  0xa3   : > { %6651 = vmatmul.mubr.msk.f32.gmra.mrb[22].mxu1 %vm516_vm2, %v8672_v9  ;;  %v8689_v61 = vsel %vm1156_vm3, %v1242_v1, %v1243_v55  ;;  %v8708_v54 = vsel %vm1156_vm3, %v1243_v55, %v1245_v4  ;;  %v497_v1 = vrot.slane %v8584_v5, 1  ;;  %v502_v5 = vrot.slane %v8613_v15, 1  ;;  %v5807_v4 = vld [vmem:[%s11294_s1 + $0x18] sm:$0xf] }
  0xa4   : > { %11539 = vst [vmem:[#allocation49_spill] sm:$0xff] %v8689_v61  ;;  %6653 = vmatprep.mubr.msk.f32.mxu1 %vm516_vm2, %v8692_v62  ;;  %v505_v15 = vrot.slane %v8263_v48, 1 }
  0xa5   : > { %6772 = vmatmul.mubr.msk.f32.gmra.mrb[30].mxu0 %vm516_vm2, %v8659_v51  ;;  %v8695_v51 = vsel %vm423_vm1, %v490_v12, %v492_v56  ;;  %v8715_v12 = vsel %vm423_vm1, %v495_v13, %v497_v1  ;;  %v499_v56 = vrot.slane %v8246_v45, 1  ;;  %v11545_v13 = vrot.slane %v8104_v17, 4 }
  0xa6   : > { %6774 = vmatprep.mubr.msk.f32.mxu0 %vm516_vm2, %v8663_v7  ;;  %11541 = vst [vmem:[#allocation51_spill] sm:$0xff] %v8695_v51  ;;  %11542 = vst [vmem:[#allocation52_spill] sm:$0xff] %v8715_v12  ;;  %v509_v17 = vrot.slane %v8266_v49, 1 }
  0xa7   : > { %6654 = vmatmul.mubr.msk.f32.gmra.mrb[24].mxu1 %vm516_vm2, %v8695_v51 }
  0xa8   : > { %6656 = vmatprep.mubr.msk.f32.mxu1 %vm516_vm2, %v8712_v6 }
  0xa9   : > { %6775 = vmatmul.mubr.msk.f32.gmra.mrb[32].mxu0 %vm516_vm2, %v8685_v0 }
  0xaa   : > { %6777 = vmatprep.mubr.msk.f32.mxu0 %vm516_vm2, %v8689_v61  ;;  %v500_v61 = vrot.slane %v8253_v46, 1 }
  0xab   : > { %6657 = vmatmul.mubr.msk.f32.gmra.mrb[26].mxu1 %vm516_vm2, %v8715_v12 }
  0xac   : > { %v8729_v55 = vsel %vm423_vm1, %v499_v56, %v500_v61  ;;  %v8735_v8 = vsel %vm423_vm1, %v500_v61, %v502_v5  ;;  %v507_v61 = vrot.slane %v357_v59, 1  ;;  %v510_v56 = vrot.slane %v8273_v50, 1 }
  0xad   : > { %6778 = vmatmul.mubr.msk.f32.gmra.mrb[34].mxu0 %vm516_vm2, %v8708_v54  ;;  %11543 = vst [vmem:[#allocation53_spill] sm:$0xff] %v8729_v55  ;;  %11544 = vst [vmem:[#allocation54_spill] sm:$0xff] %v8735_v8  ;;  %6659 = vmatprep.mubr.msk.f32.mxu1 %vm516_vm2, %v8729_v55  ;;  %v512_v59 = vrot.slane %v360_v63, 1  ;;  %v8834_v63 = vld [vmem:[%s8077_s10 + $0x1b0] sm:$0xff] }
  0xae   : > { %6782 = vmatprep.mubr.msk.f32.mxu0 %vm516_vm2, %v8099_v16  ;;  %v504_v16 = vrot.slane %v8256_v47, 1  ;;  %v8768_v5 = vsel %vm423_vm1, %v509_v17, %v510_v56  ;;  %v11553_v17 = vld [vmem:[#allocation29_spill] sm:$0xff] }
  0xaf   : > { %6660 = vmatmul.mubr.msk.f32.gmra.mrb[28].mxu1 %vm516_vm2, %v8735_v8  ;;  %11548 = vst [vmem:[#allocation57_spill] sm:$0xff] %v8768_v5 }
  0xb0   : > { %v8752_v1 = vsel %vm423_vm1, %v504_v16, %v505_v15  ;;  %v8771_v16 = vsel %vm423_vm1, %v510_v56, %v512_v59  ;;  %v11554_v56 = vld [vmem:[#allocation30_spill] sm:$0xff]  ;;  %v11555_v59 = vld [vmem:[#allocation33_spill] sm:$0xff] }
  0xb1   : > { %6783 = vmatmul.mubr.msk.f32.vlgmr.msra.gmra.mrb[0].mxu0 %vm516_vm2, %v8111_v18  ;;  %11546 = vst [vmem:[#allocation55_spill] sm:$0xff] %v8752_v1  ;;  %v8755_v18 = vsel %vm423_vm1, %v505_v15, %v507_v61  ;;  %6662 = vmatprep.mubr.msk.f32.mxu1 %vm516_vm2, %v8752_v1  ;;  %v8841_v15 = vld [vmem:[%s8077_s10 + $0x1b8] sm:$0xff]  ;;  %v11552_v61 = vld [vmem:[#allocation26_spill] sm:$0xff] }
  0xb2   : > { %6837 = vmatpush3.msk.msra.mxu0 %vm589_vm0, %v11545_v13  ;;  %6785 = vmatprep.mubr.msk.f32.mxu0 %vm516_vm2, %v8114_v19  ;;  %11547 = vst [vmem:[#allocation56_spill] sm:$0xff] %v8755_v18  ;;  %v8850_v13 = vld [vmem:[%s11294_s1 + $0x20] sm:$0xff] }
  0xb3   : > { %6892 = vmatprep.subr.msk.mxu0 %vm589_vm0, %v5807_v4  ;;  %6663 = vmatmul.mubr.msk.f32.gmra.mrb[30].mxu1 %vm516_vm2, %v8755_v18 }
  0xb4   : > { %6665 = vmatprep.mubr.msk.f32.mxu1 %vm516_vm2, %v8768_v5 }
  0xb5   : > { %6786 = vmatmul.mubr.msk.f32.gmra.mrb[2].mxu0 %vm516_vm2, %v8123_v20 }
  0xb6   : > { %6788 = vmatprep.mubr.msk.f32.mxu0 %vm516_vm2, %v8126_v21 }
  0xb7   : > { %6666 = vmatmul.mubr.msk.f32.gmra.mrb[32].mxu1 %vm516_vm2, %v8771_v16 }
  0xb9   : > { %6789 = vmatmul.mubr.msk.f32.gmra.mrb[4].mxu0 %vm516_vm2, %v8133_v22 }
  0xba   : > { %6791 = vmatprep.mubr.msk.f32.mxu0 %vm516_vm2, %v8136_v23 }
  0xbd   : > { %6792 = vmatmul.mubr.msk.f32.gmra.mrb[6].mxu0 %vm516_vm2, %v8143_v24 }
  0xbe   : > { %6794 = vmatprep.mubr.msk.f32.mxu0 %vm516_vm2, %v8146_v25 }
  0xc1   : > { %6795 = vmatmul.mubr.msk.f32.gmra.mrb[8].mxu0 %vm516_vm2, %v8153_v26 }
  0xc2   : > { %6797 = vmatprep.mubr.msk.f32.mxu0 %vm516_vm2, %v8156_v27 }
  0xc5   : > { %6798 = vmatmul.mubr.msk.f32.gmra.mrb[10].mxu0 %vm516_vm2, %v8163_v28 }
  0xc6   : > { %6800 = vmatprep.mubr.msk.f32.mxu0 %vm516_vm2, %v8166_v29 }
  0xc9   : > { %6801 = vmatmul.mubr.msk.f32.gmra.mrb[12].mxu0 %vm516_vm2, %v8173_v30 }
  0xca   : > { %6803 = vmatprep.mubr.msk.f32.mxu0 %vm516_vm2, %v8176_v31 }
  0xcd   : > { %6804 = vmatmul.mubr.msk.f32.gmra.mrb[14].mxu0 %vm516_vm2, %v8183_v32 }
  0xce   : > { %6806 = vmatprep.mubr.msk.f32.mxu0 %vm516_vm2, %v8186_v33 }
  0xd1   : > { %6807 = vmatmul.mubr.msk.f32.gmra.mrb[16].mxu0 %vm516_vm2, %v8193_v34 }
  0xd2   : > { %6809 = vmatprep.mubr.msk.f32.mxu0 %vm516_vm2, %v8196_v35 }
  0xd5   : > { %6810 = vmatmul.mubr.msk.f32.gmra.mrb[18].mxu0 %vm516_vm2, %v8203_v36 }
  0xd6   : > { %6812 = vmatprep.mubr.msk.f32.mxu0 %vm516_vm2, %v8206_v37 }
  0xd9   : > { %6813 = vmatmul.mubr.msk.f32.gmra.mrb[20].mxu0 %vm516_vm2, %v8213_v38 }
  0xda   : > { %6815 = vmatprep.mubr.msk.f32.mxu0 %vm516_vm2, %v8216_v39 }
  0xdd   : > { %6816 = vmatmul.mubr.msk.f32.gmra.mrb[22].mxu0 %vm516_vm2, %v8223_v40 }
  0xde   : > { %6818 = vmatprep.mubr.msk.f32.mxu0 %vm516_vm2, %v8226_v41 }
  0xe1   : > { %6819 = vmatmul.mubr.msk.f32.gmra.mrb[24].mxu0 %vm516_vm2, %v8233_v42 }
  0xe2   : > { %6821 = vmatprep.mubr.msk.f32.mxu0 %vm516_vm2, %v8236_v43 }
  0xe5   : > { %6822 = vmatmul.mubr.msk.f32.gmra.mrb[26].mxu0 %vm516_vm2, %v8243_v44 }
  0xe6   : > { %6824 = vmatprep.mubr.msk.f32.mxu0 %vm516_vm2, %v8246_v45 }
  0xe9   : > { %6825 = vmatmul.mubr.msk.f32.gmra.mrb[28].mxu0 %vm516_vm2, %v8253_v46 }
  0xea   : > { %6827 = vmatprep.mubr.msk.f32.mxu0 %vm516_vm2, %v8256_v47 }
  0xed   : > { %6828 = vmatmul.mubr.msk.f32.gmra.mrb[30].mxu0 %vm516_vm2, %v8263_v48 }
  0xee   : > { %6830 = vmatprep.mubr.msk.f32.mxu0 %vm516_vm2, %v8266_v49 }
  0xf1   : > { %6831 = vmatmul.mubr.msk.f32.gmra.mrb[32].mxu0 %vm516_vm2, %v8273_v50 }
  0xf2   : > { %6833 = vmatprep.mubr.msk.f32.mxu0 %vm516_vm2, %v8834_v63 }
  0xf5   : > { %6834 = vmatmul.mubr.msk.f32.gmra.mrb[34].mxu0 %vm516_vm2, %v8841_v15 }
  0xf6   : > { %6838 = vmatprep.mubr.msk.f32.mxu0 %vm516_vm2, %v8343_v52  ;;  %v11549_v52 = vld [vmem:[#allocation21_spill] sm:$0xff] }
  0xf9   : > { %6839 = vmatmul.mubr.msk.f32.vlgmr.msra.gmra.mrb[0].mxu0 %vm516_vm2, %v8352_v57  ;;  %v11550_v57 = vld [vmem:[#allocation22_spill] sm:$0xff] }
  0xfa   : > { %6893 = vmatpush3.msk.msra.mxu0 %vm589_vm0, %v5807_v4  ;;  %6841 = vmatprep.mubr.msk.f32.mxu0 %vm516_vm2, %v8385_v53  ;;  %v11551_v4 = vld [vmem:[#allocation25_spill] sm:$0xff] }
  0xfb   : > { %6948 = vmatprep.subr.msk.mxu0 %vm589_vm0, %v8850_v13 }
  0xfd   : > { %6842 = vmatmul.mubr.msk.f32.gmra.mrb[2].mxu0 %vm516_vm2, %v8388_v58 }
  0xfe   : > { %6844 = vmatprep.mubr.msk.f32.mxu0 %vm516_vm2, %v8413_v11 }
 0x101   : > { %6845 = vmatmul.mubr.msk.f32.gmra.mrb[4].mxu0 %vm516_vm2, %v8416_v10 }
 0x102   : > { %6847 = vmatprep.mubr.msk.f32.mxu0 %vm516_vm2, %v8442_v2 }
 0x105   : > { %6848 = vmatmul.mubr.msk.f32.gmra.mrb[6].mxu0 %vm516_vm2, %v8445_v14  ;;  %v11556_v14 = vld [vmem:[#allocation34_spill] sm:$0xff] }
 0x106   : > { %6850 = vmatprep.mubr.msk.f32.mxu0 %vm516_vm2, %v11549_v52  ;;  %v11557_v52 = vld [vmem:[#allocation37_spill] sm:$0xff] }
 0x109   : > { %6851 = vmatmul.mubr.msk.f32.gmra.mrb[8].mxu0 %vm516_vm2, %v11550_v57  ;;  %v11558_v57 = vld [vmem:[#allocation38_spill] sm:$0xff] }
 0x10a   : > { %6853 = vmatprep.mubr.msk.f32.mxu0 %vm516_vm2, %v11551_v4  ;;  %v11559_v4 = vld [vmem:[#allocation41_spill] sm:$0xff] }
 0x10d   : > { %6854 = vmatmul.mubr.msk.f32.gmra.mrb[10].mxu0 %vm516_vm2, %v11552_v61 }
 0x10e   : > { %6856 = vmatprep.mubr.msk.f32.mxu0 %vm516_vm2, %v11553_v17  ;;  %v11560_v17 = vld [vmem:[#allocation42_spill] sm:$0xff] }
 0x111   : > { %6857 = vmatmul.mubr.msk.f32.gmra.mrb[12].mxu0 %vm516_vm2, %v11554_v56  ;;  %v11561_v56 = vld [vmem:[#allocation44_spill] sm:$0xff] }
 0x112   : > { %6859 = vmatprep.mubr.msk.f32.mxu0 %vm516_vm2, %v11555_v59  ;;  %v11562_v59 = vld [vmem:[#allocation45_spill] sm:$0xff] }
 0x115   : > { %6860 = vmatmul.mubr.msk.f32.gmra.mrb[14].mxu0 %vm516_vm2, %v11556_v14 }
 0x116   : > { %6862 = vmatprep.mubr.msk.f32.mxu0 %vm516_vm2, %v11557_v52 }
 0x119   : > { %6863 = vmatmul.mubr.msk.f32.gmra.mrb[16].mxu0 %vm516_vm2, %v11558_v57 }
 0x11a   : > { %6865 = vmatprep.mubr.msk.f32.mxu0 %vm516_vm2, %v11559_v4 }
 0x11d   : > { %6866 = vmatmul.mubr.msk.f32.gmra.mrb[18].mxu0 %vm516_vm2, %v11560_v17 }
 0x11e   : > { %6868 = vmatprep.mubr.msk.f32.mxu0 %vm516_vm2, %v11561_v56 }
 0x121   : > { %6869 = vmatmul.mubr.msk.f32.gmra.mrb[20].mxu0 %vm516_vm2, %v11562_v59 }
 0x122   : > { %6871 = vmatprep.mubr.msk.f32.mxu0 %vm516_vm2, %v8669_v60 }
 0x125   : > { %6872 = vmatmul.mubr.msk.f32.gmra.mrb[22].mxu0 %vm516_vm2, %v8672_v9  ;;  %v1898_v9 = vrot.slane %v8841_v15, 1 }
 0x126   : > { %6874 = vmatprep.mubr.msk.f32.mxu0 %vm516_vm2, %v8692_v62  ;;  %v1897_v62 = vrot.slane %v8834_v63, 1 }
 0x129   : > { %6875 = vmatmul.mubr.msk.f32.gmra.mrb[24].mxu0 %vm516_vm2, %v8695_v51  ;;  %v363_v51 = vld [vmem:[%s8077_s10 + $0x1c0] sm:$0x3] }
 0x12a   : > { %6877 = vmatprep.mubr.msk.f32.mxu0 %vm516_vm2, %v8712_v6 }
 0x12d   : > { %6878 = vmatmul.mubr.msk.f32.gmra.mrb[26].mxu0 %vm516_vm2, %v8715_v12  ;;  %v1900_v12 = vrot.slane %v363_v51, 1 }
 0x12e   : > { %6880 = vmatprep.mubr.msk.f32.mxu0 %vm516_vm2, %v8729_v55  ;;  %v8923_v55 = vsel %vm423_vm1, %v1897_v62, %v1898_v9  ;;  %v11567_v62 = vld [vmem:[#allocation5_spill] sm:$0xff] }
 0x12f   : > { %11563 = vst [vmem:[#allocation26_spill] sm:$0xff] %v8923_v55 }
 0x131   : > { %6881 = vmatmul.mubr.msk.f32.gmra.mrb[28].mxu0 %vm516_vm2, %v8735_v8  ;;  %v11566_v8 = vld [vmem:[#allocation4_spill] sm:$0xff] }
 0x132   : > { %6883 = vmatprep.mubr.msk.f32.mxu0 %vm516_vm2, %v8752_v1  ;;  %v8930_v1 = vsel %vm423_vm1, %v1898_v9, %v1900_v12  ;;  %v11568_v9 = vld [vmem:[#allocation6_spill] sm:$0xff]  ;;  %v11569_v12 = vld [vmem:[#allocation7_spill] sm:$0xff] }
 0x133   : > { %11564 = vst [vmem:[#allocation34_spill] sm:$0xff] %v8930_v1 }
 0x135   : > { %6884 = vmatmul.mubr.msk.f32.gmra.mrb[30].mxu0 %vm516_vm2, %v8755_v18  ;;  %v11565_v18 = vld [vmem:[#allocation3_spill] sm:$0xff] }
 0x136   : > { %6886 = vmatprep.mubr.msk.f32.mxu0 %vm516_vm2, %v8768_v5  ;;  %v2782_v5 = vrot.slane %v8850_v13, 4 }
 0x139   : > { %6887 = vmatmul.mubr.msk.f32.gmra.mrb[32].mxu0 %vm516_vm2, %v8771_v16 }
 0x13a   : > { %6889 = vmatprep.mubr.msk.f32.mxu0 %vm516_vm2, %v8923_v55  ;;  %v11575_v55 = vld [vmem:[#allocation13_spill] sm:$0xff] }
 0x13d   : > { %6890 = vmatmul.mubr.msk.f32.gmra.mrb[34].mxu0 %vm516_vm2, %v8930_v1  ;;  %v11571_v1 = vld [vmem:[#allocation9_spill] sm:$0xff] }
 0x13e   : > { %6894 = vmatprep.mubr.msk.f32.mxu0 %vm516_vm2, %v11565_v18  ;;  %v11570_v18 = vld [vmem:[#allocation8_spill] sm:$0xff] }
 0x141   : > { %6895 = vmatmul.mubr.msk.f32.vlgmr.msra.gmra.mrb[0].mxu0 %vm516_vm2, %v11566_v8  ;;  %v11572_v8 = vld [vmem:[#allocation10_spill] sm:$0xff] }
 0x142   : > { %6949 = vmatpush3.msk.msra.mxu0 %vm589_vm0, %v8850_v13  ;;  %6897 = vmatprep.mubr.msk.f32.mxu0 %vm516_vm2, %v11567_v62  ;;  %v11573_v13 = vld [vmem:[#allocation11_spill] sm:$0xff]  ;;  %v11574_v62 = vld [vmem:[#allocation12_spill] sm:$0xff] }
 0x143   : > { %7004 = vmatprep.subr.msk.mxu0 %vm589_vm0, %v2782_v5 }
 0x145   : > { %6898 = vmatmul.mubr.msk.f32.gmra.mrb[2].mxu0 %vm516_vm2, %v11568_v9  ;;  %v11576_v9 = vld [vmem:[#allocation14_spill] sm:$0xff] }
 0x146   : > { %6900 = vmatprep.mubr.msk.f32.mxu0 %vm516_vm2, %v11569_v12  ;;  %v11577_v12 = vld [vmem:[#allocation15_spill] sm:$0xff] }
 0x149   : > { %6901 = vmatmul.mubr.msk.f32.gmra.mrb[4].mxu0 %vm516_vm2, %v11570_v18  ;;  %v11578_v18 = vld [vmem:[#allocation16_spill] sm:$0xff] }
 0x14a   : > { %6903 = vmatprep.mubr.msk.f32.mxu0 %vm516_vm2, %v11571_v1  ;;  %v11579_v1 = vld [vmem:[#allocation17_spill] sm:$0xff] }
 0x14d   : > { %6904 = vmatmul.mubr.msk.f32.gmra.mrb[6].mxu0 %vm516_vm2, %v11572_v8  ;;  %v11580_v8 = vld [vmem:[#allocation19_spill] sm:$0xff] }
 0x14e   : > { %6906 = vmatprep.mubr.msk.f32.mxu0 %vm516_vm2, %v11573_v13  ;;  %v11581_v13 = vld [vmem:[#allocation20_spill] sm:$0xff] }
 0x151   : > { %6907 = vmatmul.mubr.msk.f32.gmra.mrb[8].mxu0 %vm516_vm2, %v11574_v62  ;;  %v11582_v62 = vld [vmem:[#allocation23_spill] sm:$0xff] }
 0x152   : > { %6909 = vmatprep.mubr.msk.f32.mxu0 %vm516_vm2, %v11575_v55  ;;  %v11583_v55 = vld [vmem:[#allocation24_spill] sm:$0xff] }
 0x155   : > { %6910 = vmatmul.mubr.msk.f32.gmra.mrb[10].mxu0 %vm516_vm2, %v11576_v9  ;;  %v11584_v9 = vld [vmem:[#allocation27_spill] sm:$0xff] }
 0x156   : > { %6912 = vmatprep.mubr.msk.f32.mxu0 %vm516_vm2, %v11577_v12  ;;  %v11585_v12 = vld [vmem:[#allocation28_spill] sm:$0xff] }
 0x159   : > { %6913 = vmatmul.mubr.msk.f32.gmra.mrb[12].mxu0 %vm516_vm2, %v11578_v18  ;;  %v11586_v18 = vld [vmem:[#allocation31_spill] sm:$0xff] }
 0x15a   : > { %6915 = vmatprep.mubr.msk.f32.mxu0 %vm516_vm2, %v11579_v1  ;;  %v11587_v1 = vld [vmem:[#allocation32_spill] sm:$0xff] }
 0x15d   : > { %6916 = vmatmul.mubr.msk.f32.gmra.mrb[14].mxu0 %vm516_vm2, %v11580_v8  ;;  %v11588_v8 = vld [vmem:[#allocation35_spill] sm:$0xff] }
 0x15e   : > { %6918 = vmatprep.mubr.msk.f32.mxu0 %vm516_vm2, %v11581_v13  ;;  %v11589_v13 = vld [vmem:[#allocation36_spill] sm:$0xff] }
 0x161   : > { %6919 = vmatmul.mubr.msk.f32.gmra.mrb[16].mxu0 %vm516_vm2, %v11582_v62  ;;  %v11590_v62 = vld [vmem:[#allocation39_spill] sm:$0xff] }
 0x162   : > { %6921 = vmatprep.mubr.msk.f32.mxu0 %vm516_vm2, %v11583_v55  ;;  %v11591_v55 = vld [vmem:[#allocation40_spill] sm:$0xff] }
 0x165   : > { %6922 = vmatmul.mubr.msk.f32.gmra.mrb[18].mxu0 %vm516_vm2, %v11584_v9  ;;  %v11592_v9 = vld [vmem:[#allocation43_spill] sm:$0xff] }
 0x166   : > { %6924 = vmatprep.mubr.msk.f32.mxu0 %vm516_vm2, %v11585_v12 }
 0x169   : > { %6925 = vmatmul.mubr.msk.f32.gmra.mrb[20].mxu0 %vm516_vm2, %v11586_v18  ;;  %v11593_v18 = vld [vmem:[#allocation46_spill] sm:$0xff] }
 0x16a   : > { %6927 = vmatprep.mubr.msk.f32.mxu0 %vm516_vm2, %v11587_v1 }
 0x16d   : > { %6928 = vmatmul.mubr.msk.f32.gmra.mrb[22].mxu0 %vm516_vm2, %v11588_v8  ;;  %v2191_v8 = vrot.slane %v8841_v15, 2 }
 0x16e   : > { %6930 = vmatprep.mubr.msk.f32.mxu0 %vm516_vm2, %v11589_v13  ;;  %v2190_v13 = vrot.slane %v8834_v63, 2 }
 0x171   : > { %6931 = vmatmul.mubr.msk.f32.gmra.mrb[24].mxu0 %vm516_vm2, %v11590_v62  ;;  %v9007_v62 = vsel %vm1156_vm3, %v2190_v13, %v2191_v8  ;;  %v11611_v13 = vld [vmem:[#allocation26_spill] sm:$0xff] }
 0x172   : > { %6933 = vmatprep.mubr.msk.f32.mxu0 %vm516_vm2, %v11591_v55  ;;  %v11594_v55 = vld [vmem:[#allocation49_spill] sm:$0xff] }
 0x175   : > { %6934 = vmatmul.mubr.msk.f32.gmra.mrb[26].mxu0 %vm516_vm2, %v11592_v9  ;;  %v2193_v9 = vrot.slane %v363_v51, 2  ;;  %v5920_v51 = vld [vmem:[%s11294_s1 + $0x28] sm:$0xf] }
 0x176   : > { %6936 = vmatprep.mubr.msk.f32.mxu0 %vm516_vm2, %v8637_v3 }
 0x179   : > { %6937 = vmatmul.mubr.msk.f32.gmra.mrb[28].mxu0 %vm516_vm2, %v11593_v18 }
 0x17a   : > { %6939 = vmatprep.mubr.msk.f32.mxu0 %vm516_vm2, %v8663_v7  ;;  %v9014_v7 = vsel %vm1156_vm3, %v2191_v8, %v2193_v9  ;;  %v9263_v8 = vld [vmem:[%s8077_s10 + $0x1d8] sm:$0x3] }
 0x17d   : > { %6940 = vmatmul.mubr.msk.f32.gmra.mrb[30].mxu0 %vm516_vm2, %v8685_v0 }
 0x17e   : > { %6942 = vmatprep.mubr.msk.f32.mxu0 %vm516_vm2, %v11594_v55 }
 0x181   : > { %6943 = vmatmul.mubr.msk.f32.gmra.mrb[32].mxu0 %vm516_vm2, %v8708_v54 }
 0x182   : > { %6945 = vmatprep.mubr.msk.f32.mxu0 %vm516_vm2, %v9007_v62 }
 0x185   : > { %6946 = vmatmul.mubr.msk.f32.gmra.mrb[34].mxu0 %vm516_vm2, %v9014_v7 }
 0x186   : > { %6950 = vmatprep.mubr.msk.f32.mxu0 %vm516_vm2, %v8114_v19  ;;  %v9090_v19 = vld [vmem:[%s8077_s10 + $0x1c8] sm:$0xff] }
 0x189   : > { %6951 = vmatmul.mubr.msk.f32.vlgmr.msra.gmra.mrb[0].mxu0 %vm516_vm2, %v8123_v20  ;;  %v9097_v20 = vld [vmem:[%s8077_s10 + $0x1d0] sm:$0xff] }
 0x18a   : > { %7005 = vmatpush3.msk.msra.mxu0 %vm589_vm0, %v2782_v5  ;;  %6953 = vmatprep.mubr.msk.f32.mxu0 %vm516_vm2, %v8126_v21  ;;  %v11595_v21 = vld [vmem:[#allocation18_spill] sm:$0xff]  ;;  %v2778_v9 = vrot.slane %v9097_v20, 1 }
 0x18b   : > { %7060 = vmatprep.subr.msk.mxu0 %vm589_vm0, %v5920_v51 }
 0x18d   : > { %6954 = vmatmul.mubr.msk.f32.gmra.mrb[2].mxu0 %vm516_vm2, %v8133_v22  ;;  %v11596_v22 = vld [vmem:[#allocation21_spill] sm:$0xff] }
 0x18e   : > { %6956 = vmatprep.mubr.msk.f32.mxu0 %vm516_vm2, %v8136_v23  ;;  %v11597_v23 = vld [vmem:[#allocation22_spill] sm:$0xff] }
 0x191   : > { %6957 = vmatmul.mubr.msk.f32.gmra.mrb[4].mxu0 %vm516_vm2, %v8143_v24  ;;  %v6034_v24 = vld [vmem:[%s11297_s4 + $0x180] sm:$0xff] }
 0x192   : > { %6959 = vmatprep.mubr.msk.f32.mxu0 %vm516_vm2, %v8146_v25  ;;  %v6035_v25 = vld [vmem:[%s11297_s4 + $0x188] sm:$0xff] }
 0x195   : > { %6960 = vmatmul.mubr.msk.f32.gmra.mrb[6].mxu0 %vm516_vm2, %v8153_v26  ;;  %v11598_v26 = vld [vmem:[#allocation25_spill] sm:$0xff] }
 0x196   : > { %6962 = vmatprep.mubr.msk.f32.mxu0 %vm516_vm2, %v8156_v27  ;;  %v11402_v27 = vmov 0.0|0.0  }
 0x197   : > { %7598 = vmatprep.subr.bf16.mxu1 %v11402_v27 }
 0x199   : > { %6963 = vmatmul.mubr.msk.f32.gmra.mrb[8].mxu0 %vm516_vm2, %v8163_v28  ;;  %v9127_v28 = vpack.c.bf16 %v6035_v25, %v6034_v24  ;;  %v11613_v24 = vld [vmem:[#allocation5_spill] sm:$0xff]  ;;  %v11615_v25 = vld [vmem:[#allocation7_spill] sm:$0xff] }
 0x19a   : > { %6965 = vmatprep.mubr.msk.f32.mxu0 %vm516_vm2, %v8166_v29  ;;  %v6036_v29 = vld [vmem:[%s11297_s4 + $0x190] sm:$0xff] }
 0x19b   : > { %7614 = vmatpush1.bf16.msra.mxu1 %v9127_v28 }
 0x19c   : > { %7599 = vmatprep.subr.bf16.mxu1 %v11402_v27 }
 0x19d   : > { %6966 = vmatmul.mubr.msk.f32.gmra.mrb[10].mxu0 %vm516_vm2, %v8173_v30  ;;  %v6037_v30 = vld [vmem:[%s11297_s4 + $0x198] sm:$0xff] }
 0x19e   : > { %6968 = vmatprep.mubr.msk.f32.mxu0 %vm516_vm2, %v8176_v31  ;;  %v11599_v31 = vld [vmem:[#allocation29_spill] sm:$0xff] }
 0x1a1   : > { %6969 = vmatmul.mubr.msk.f32.gmra.mrb[12].mxu0 %vm516_vm2, %v8183_v32  ;;  %v9142_v32 = vpack.c.bf16 %v6037_v30, %v6036_v29  ;;  %v11617_v29 = vld [vmem:[#allocation9_spill] sm:$0xff]  ;;  %v11618_v30 = vld [vmem:[#allocation10_spill] sm:$0xff] }
 0x1a2   : > { %6971 = vmatprep.mubr.msk.f32.mxu0 %vm516_vm2, %v8186_v33  ;;  %v6038_v33 = vld [vmem:[%s11297_s4 + $0x1a0] sm:$0xff] }
 0x1a3   : > { %7615 = vmatpush1.bf16.msra.mxu1 %v9142_v32 }
 0x1a4   : > { %7600 = vmatprep.subr.bf16.mxu1 %v11402_v27 }
 0x1a5   : > { %6972 = vmatmul.mubr.msk.f32.gmra.mrb[14].mxu0 %vm516_vm2, %v8193_v34  ;;  %v6039_v34 = vld [vmem:[%s11297_s4 + $0x1a8] sm:$0xff] }
 0x1a6   : > { %6974 = vmatprep.mubr.msk.f32.mxu0 %vm516_vm2, %v8196_v35  ;;  %v11600_v35 = vld [vmem:[#allocation30_spill] sm:$0xff] }
 0x1a9   : > { %6975 = vmatmul.mubr.msk.f32.gmra.mrb[16].mxu0 %vm516_vm2, %v8203_v36  ;;  %v11601_v36 = vld [vmem:[#allocation33_spill] sm:$0xff] }
 0x1aa   : > { %6977 = vmatprep.mubr.msk.f32.mxu0 %vm516_vm2, %v8206_v37  ;;  %v9156_v37 = vpack.c.bf16 %v6039_v34, %v6038_v33  ;;  %v11621_v33 = vld [vmem:[#allocation13_spill] sm:$0xff]  ;;  %v11623_v34 = vld [vmem:[#allocation15_spill] sm:$0xff] }
 0x1ac   : > { %7616 = vmatpush1.bf16.msra.mxu1 %v9156_v37 }
 0x1ad   : > { %6978 = vmatmul.mubr.msk.f32.gmra.mrb[18].mxu0 %vm516_vm2, %v8213_v38  ;;  %v6040_v38 = vld [vmem:[%s11297_s4 + $0x1b0] sm:$0xff]  ;;  %7601 = vmatprep.subr.bf16.mxu1 %v11402_v27 }
 0x1ae   : > { %6980 = vmatprep.mubr.msk.f32.mxu0 %vm516_vm2, %v8216_v39  ;;  %v6041_v39 = vld [vmem:[%s11297_s4 + $0x1b8] sm:$0xff] }
 0x1b1   : > { %6981 = vmatmul.mubr.msk.f32.gmra.mrb[20].mxu0 %vm516_vm2, %v8223_v40  ;;  %v9170_v40 = vpack.c.bf16 %v6041_v39, %v6040_v38  ;;  %v11627_v38 = vld [vmem:[#allocation20_spill] sm:$0xff]  ;;  %v11628_v39 = vld [vmem:[#allocation23_spill] sm:$0xff] }
 0x1b2   : > { %6983 = vmatprep.mubr.msk.f32.mxu0 %vm516_vm2, %v8226_v41  ;;  %v6042_v41 = vld [vmem:[%s11297_s4 + $0x1c0] sm:$0xff] }
 0x1b3   : > { %7617 = vmatpush1.bf16.msra.mxu1 %v9170_v40 }
 0x1b4   : > { %7602 = vmatprep.subr.bf16.mxu1 %v11402_v27 }
 0x1b5   : > { %6984 = vmatmul.mubr.msk.f32.gmra.mrb[22].mxu0 %vm516_vm2, %v8233_v42  ;;  %v6043_v42 = vld [vmem:[%s11297_s4 + $0x1c8] sm:$0xff] }
 0x1b6   : > { %6986 = vmatprep.mubr.msk.f32.mxu0 %vm516_vm2, %v8236_v43  ;;  %v9184_v43 = vpack.c.bf16 %v6043_v42, %v6042_v41  ;;  %v11630_v41 = vld [vmem:[#allocation27_spill] sm:$0xff] }
 0x1b7   : > { %v11631_v42 = vld [vmem:[#allocation31_spill] sm:$0xff] }
 0x1b8   : > { %7618 = vmatpush1.bf16.msra.mxu1 %v9184_v43 }
 0x1b9   : > { %6987 = vmatmul.mubr.msk.f32.gmra.mrb[24].mxu0 %vm516_vm2, %v8243_v44  ;;  %v6044_v44 = vld [vmem:[%s11297_s4 + $0x1d0] sm:$0xff]  ;;  %7603 = vmatprep.subr.bf16.mxu1 %v11402_v27 }
 0x1ba   : > { %6989 = vmatprep.mubr.msk.f32.mxu0 %vm516_vm2, %v8246_v45  ;;  %v6045_v45 = vld [vmem:[%s11297_s4 + $0x1d8] sm:$0xff] }
 0x1bd   : > { %6990 = vmatmul.mubr.msk.f32.gmra.mrb[26].mxu0 %vm516_vm2, %v8253_v46  ;;  %v9198_v46 = vpack.c.bf16 %v6045_v45, %v6044_v44  ;;  %v11633_v44 = vld [vmem:[#allocation36_spill] sm:$0xff]  ;;  %v11634_v45 = vld [vmem:[#allocation39_spill] sm:$0xff] }
 0x1be   : > { %6992 = vmatprep.mubr.msk.f32.mxu0 %vm516_vm2, %v8256_v47  ;;  %v6046_v47 = vld [vmem:[%s11297_s4 + $0x1e0] sm:$0xff] }
 0x1bf   : > { %7619 = vmatpush1.bf16.msra.mxu1 %v9198_v46 }
 0x1c0   : > { %7604 = vmatprep.subr.bf16.mxu1 %v11402_v27 }
 0x1c1   : > { %6993 = vmatmul.mubr.msk.f32.gmra.mrb[28].mxu0 %vm516_vm2, %v8263_v48  ;;  %v6047_v48 = vld [vmem:[%s11297_s4 + $0x1e8] sm:$0xff] }
 0x1c2   : > { %6995 = vmatprep.mubr.msk.f32.mxu0 %vm516_vm2, %v8266_v49  ;;  %v9212_v49 = vpack.c.bf16 %v6047_v48, %v6046_v47  ;;  %v3070_v47 = vrot.slane %v9090_v19, 2  ;;  %v3071_v48 = vrot.slane %v9097_v20, 2 }
 0x1c4   : > { %7620 = vmatpush1.bf16.msra.mxu1 %v9212_v49 }
 0x1c5   : > { %6996 = vmatmul.mubr.msk.f32.gmra.mrb[30].mxu0 %vm516_vm2, %v8273_v50  ;;  %v6048_v50 = vld [vmem:[%s11297_s4 + $0x1f0] sm:$0xff]  ;;  %7605 = vmatprep.subr.bf16.mxu1 %v11402_v27 }
 0x1c6   : > { %6998 = vmatprep.mubr.msk.f32.mxu0 %vm516_vm2, %v8834_v63  ;;  %v6052_v63 = vld [vmem:[%s11297_s4 + $0x210] sm:$0xff] }
 0x1c9   : > { %6999 = vmatmul.mubr.msk.f32.gmra.mrb[32].mxu0 %vm516_vm2, %v8841_v15  ;;  %v6053_v15 = vld [vmem:[%s11297_s4 + $0x218] sm:$0xff] }
 0x1ca   : > { %7001 = vmatprep.mubr.msk.f32.mxu0 %vm516_vm2, %v9090_v19 }
 0x1cd   : > { %7002 = vmatmul.mubr.msk.f32.gmra.mrb[34].mxu0 %vm516_vm2, %v9097_v20  ;;  %v6056_v20 = vld [vmem:[%s11297_s4 + $0x230] sm:$0xff] }
 0x1ce   : > { %7006 = vmatprep.mubr.msk.f32.mxu0 %vm516_vm2, %v8385_v53  ;;  %v11603_v53 = vld [vmem:[#allocation50_spill] sm:$0xff] }
 0x1d1   : > { %7007 = vmatmul.mubr.msk.f32.vlgmr.msra.gmra.mrb[0].mxu0 %vm516_vm2, %v8388_v58  ;;  %v6050_v58 = vld [vmem:[%s11297_s4 + $0x200] sm:$0xff] }
 0x1d2   : > { %7061 = vmatpush3.msk.msra.mxu0 %vm589_vm0, %v5920_v51  ;;  %7009 = vmatprep.mubr.msk.f32.mxu0 %vm516_vm2, %v8413_v11  ;;  %v11602_v11 = vld [vmem:[#allocation48_spill] sm:$0xff]  ;;  %v2780_v51 = vrot.slane %v9263_v8, 1 }
 0x1d3   : > { %7356 = vmatprep.subr.bf16.mxu0 %v11402_v27 }
 0x1d5   : > { %7010 = vmatmul.mubr.msk.f32.gmra.mrb[2].mxu0 %vm516_vm2, %v8416_v10  ;;  %v6051_v10 = vld [vmem:[%s11297_s4 + $0x208] sm:$0xff] }
 0x1d6   : > { %7012 = vmatprep.mubr.msk.f32.mxu0 %vm516_vm2, %v8442_v2  ;;  %v6049_v2 = vld [vmem:[%s11297_s4 + $0x1f8] sm:$0xff]  ;;  %v7381_v5 = vpack.c.bf16 %v6051_v10, %v6050_v58  ;;  %v6059_v58 = vld [vmem:[%s11297_s4 + $0x248] sm:$0xff] }
 0x1d9   : > { %7013 = vmatmul.mubr.msk.f32.gmra.mrb[4].mxu0 %vm516_vm2, %v11595_v21 }
 0x1da   : > { %7015 = vmatprep.mubr.msk.f32.mxu0 %vm516_vm2, %v11596_v22  ;;  %v11612_v22 = vld [vmem:[#allocation34_spill] sm:$0xff] }
 0x1dd   : > { %7016 = vmatmul.mubr.msk.f32.gmra.mrb[6].mxu0 %vm516_vm2, %v11597_v23  ;;  %v2781_v23 = vsel %vm423_vm1, %v2778_v9, %v2780_v51 }
 0x1de   : > { %7018 = vmatprep.mubr.msk.f32.mxu0 %vm516_vm2, %v11598_v26  ;;  %v11616_v26 = vld [vmem:[#allocation8_spill] sm:$0xff] }
 0x1e1   : > { %7019 = vmatmul.mubr.msk.f32.gmra.mrb[8].mxu0 %vm516_vm2, %v11552_v61  ;;  %v11608_v61 = vld [vmem:[#allocation55_spill] sm:$0xff] }
 0x1e2   : > { %7021 = vmatprep.mubr.msk.f32.mxu0 %vm516_vm2, %v11599_v31  ;;  %v11619_v31 = vld [vmem:[#allocation11_spill] sm:$0xff] }
 0x1e5   : > { %7022 = vmatmul.mubr.msk.f32.gmra.mrb[10].mxu0 %vm516_vm2, %v11600_v35  ;;  %v11624_v35 = vld [vmem:[#allocation16_spill] sm:$0xff] }
 0x1e6   : > { %7024 = vmatprep.mubr.msk.f32.mxu0 %vm516_vm2, %v11601_v36  ;;  %v11625_v36 = vld [vmem:[#allocation17_spill] sm:$0xff] }
 0x1e9   : > { %7025 = vmatmul.mubr.msk.f32.gmra.mrb[12].mxu0 %vm516_vm2, %v11556_v14  ;;  %v11604_v14 = vld [vmem:[#allocation51_spill] sm:$0xff] }
 0x1ea   : > { %7027 = vmatprep.mubr.msk.f32.mxu0 %vm516_vm2, %v11557_v52  ;;  %v11605_v52 = vld [vmem:[#allocation52_spill] sm:$0xff] }
 0x1ed   : > { %7028 = vmatmul.mubr.msk.f32.gmra.mrb[14].mxu0 %vm516_vm2, %v11558_v57  ;;  %v11606_v57 = vld [vmem:[#allocation53_spill] sm:$0xff] }
 0x1ee   : > { %7030 = vmatprep.mubr.msk.f32.mxu0 %vm516_vm2, %v11559_v4  ;;  %v11607_v4 = vld [vmem:[#allocation54_spill] sm:$0xff] }
 0x1f1   : > { %7031 = vmatmul.mubr.msk.f32.gmra.mrb[16].mxu0 %vm516_vm2, %v11560_v17  ;;  %v11609_v17 = vld [vmem:[#allocation56_spill] sm:$0xff] }
 0x1f2   : > { %7033 = vmatprep.mubr.msk.f32.mxu0 %vm516_vm2, %v11561_v56  ;;  %v11610_v56 = vld [vmem:[#allocation57_spill] sm:$0xff] }
 0x1f5   : > { %7034 = vmatmul.mubr.msk.f32.gmra.mrb[18].mxu0 %vm516_vm2, %v11562_v59  ;;  %v2777_v59 = vrot.slane %v9090_v19, 1  ;;  %v9375_v19 = vpop.f32.mrb[0].mxu1 }
 0x1f6   : > { %7036 = vmatprep.mubr.msk.f32.mxu0 %vm516_vm2, %v8669_v60  ;;  %v9226_v60 = vpack.c.bf16 %v6049_v2, %v6048_v50 }
 0x1f7   : > { %v2779_v21 = vsel %vm423_vm1, %v2777_v59, %v2778_v9  ;;  %v6064_v9 = vld [vmem:[%s11297_s4 + $0x270] sm:$0xff] }
 0x1f8   : > { %7621 = vmatpush1.bf16.msra.mxu1 %v9226_v60 }
 0x1f9   : > { %7037 = vmatmul.mubr.msk.f32.gmra.mrb[20].mxu0 %vm516_vm2, %v11602_v11  ;;  %7606 = vmatprep.subr.bf16.mxu1 %v11402_v27  ;;  %v11401_v11 = vmov 0.0  }
 0x1fa   : > { %7039 = vmatprep.mubr.msk.f32.mxu0 %vm516_vm2, %v11603_v53  ;;  %3539 = vst [vmem:[#allocation2 + $0x11] sm:$0x1] %v11401_v11  ;;  %3521 = vst [vmem:[#allocation2] sm:$0x1] %v11401_v11 }
 0x1fb   : > { %3522 = vst [vmem:[#allocation2 + $0x18] sm:$0x1] %v11401_v11  ;;  %3523 = vst [vmem:[#allocation2 + $0x30] sm:$0x1] %v11401_v11 }
 0x1fc   : > { %7622 = vmatpush1.bf16.msra.mxu1 %v7381_v5  ;;  %3524 = vst [vmem:[#allocation2 + $0x48] sm:$0x1] %v11401_v11  ;;  %3525 = vst [vmem:[#allocation2 + $0x60] sm:$0x1] %v11401_v11 }
 0x1fd   : > { %7040 = vmatmul.mubr.msk.f32.gmra.mrb[22].mxu0 %vm516_vm2, %v11604_v14  ;;  %7607 = vmatprep.subr.bf16.mxu1 %v11402_v27  ;;  %3526 = vst [vmem:[#allocation2 + $0x78] sm:$0x1] %v11401_v11  ;;  %3527 = vst [vmem:[#allocation2 + $0x90] sm:$0x1] %v11401_v11 }
 0x1fe   : > { %7042 = vmatprep.mubr.msk.f32.mxu0 %vm516_vm2, %v8712_v6  ;;  %v7384_v6 = vpack.c.bf16 %v6053_v15, %v6052_v63  ;;  %3528 = vst [vmem:[#allocation2 + $0xa8] sm:$0x1] %v11401_v11  ;;  %3529 = vst [vmem:[#allocation2 + $0xc0] sm:$0x1] %v11401_v11  ;;  %v6060_v63 = vld [vmem:[%s11297_s4 + $0x250] sm:$0xff]  ;;  %v6061_v15 = vld [vmem:[%s11297_s4 + $0x258] sm:$0xff] }
 0x1ff   : > { %3530 = vst [vmem:[#allocation2 + $0xd8] sm:$0x1] %v11401_v11  ;;  %3531 = vst [vmem:[#allocation2 + $0xf0] sm:$0x1] %v11401_v11 }
 0x200   : > { %7623 = vmatpush1.bf16.msra.mxu1 %v7384_v6  ;;  %3532 = vst [vmem:[#allocation2 + $0x108] sm:$0x1] %v11401_v11  ;;  %3533 = vst [vmem:[#allocation2 + $0x120] sm:$0x1] %v11401_v11 }
 0x201   : > { %7043 = vmatmul.mubr.msk.f32.gmra.mrb[24].mxu0 %vm516_vm2, %v11605_v52  ;;  %7608 = vmatprep.subr.bf16.mxu1 %v11402_v27  ;;  %3534 = vst [vmem:[#allocation2 + $0x138] sm:$0x1] %v11401_v11  ;;  %3535 = vst [vmem:[#allocation2 + $0x150] sm:$0x1] %v11401_v11  ;;  %v7396_v52 = vpack.c.bf16 %v6061_v15, %v6060_v63 }
 0x202   : > { %7045 = vmatprep.mubr.msk.f32.mxu0 %vm516_vm2, %v11606_v57  ;;  %3536 = vst [vmem:[#allocation2 + $0x168] sm:$0x1] %v11401_v11  ;;  %3537 = vst [vmem:[#allocation2 + $0x180] sm:$0x1] %v11401_v11 }
 0x203   : > { %3540 = vst [vmem:[#allocation2 + $0x29] sm:$0x1] %v11401_v11  ;;  %3541 = vst [vmem:[#allocation2 + $0x41] sm:$0x1] %v11401_v11 }
 0x204   : > { %3542 = vst [vmem:[#allocation2 + $0x59] sm:$0x1] %v11401_v11  ;;  %3543 = vst [vmem:[#allocation2 + $0x71] sm:$0x1] %v11401_v11 }
 0x205   : > { %7046 = vmatmul.mubr.msk.f32.gmra.mrb[26].mxu0 %vm516_vm2, %v11607_v4  ;;  %3544 = vst [vmem:[#allocation2 + $0x89] sm:$0x1] %v11401_v11  ;;  %3545 = vst [vmem:[#allocation2 + $0xa1] sm:$0x1] %v11401_v11  ;;  %v6062_v4 = vld [vmem:[%s11297_s4 + $0x260] sm:$0xff] }
 0x206   : > { %7048 = vmatprep.mubr.msk.f32.mxu0 %vm516_vm2, %v11608_v61  ;;  %3546 = vst [vmem:[#allocation2 + $0xb9] sm:$0x1] %v11401_v11  ;;  %3547 = vst [vmem:[#allocation2 + $0xd1] sm:$0x1] %v11401_v11  ;;  %v6063_v61 = vld [vmem:[%s11297_s4 + $0x268] sm:$0xff] }
 0x207   : > { %3548 = vst [vmem:[#allocation2 + $0xe9] sm:$0x1] %v11401_v11  ;;  %3549 = vst [vmem:[#allocation2 + $0x101] sm:$0x1] %v11401_v11 }
 0x208   : > { %3550 = vst [vmem:[#allocation2 + $0x119] sm:$0x1] %v11401_v11  ;;  %3551 = vst [vmem:[#allocation2 + $0x131] sm:$0x1] %v11401_v11 }
 0x209   : > { %7049 = vmatmul.mubr.msk.f32.gmra.mrb[28].mxu0 %vm516_vm2, %v11609_v17  ;;  %3552 = vst [vmem:[#allocation2 + $0x149] sm:$0x1] %v11401_v11  ;;  %3553 = vst [vmem:[#allocation2 + $0x161] sm:$0x1] %v11401_v11  ;;  %v7399_v17 = vpack.c.bf16 %v6063_v61, %v6062_v4 }
 0x20a   : > { %7051 = vmatprep.mubr.msk.f32.mxu0 %vm516_vm2, %v11610_v56  ;;  %3554 = vst [vmem:[#allocation2 + $0x179] sm:$0x1] %v11401_v11  ;;  %3555 = vst [vmem:[#allocation2 + $0x191] sm:$0x1] %v11401_v11 }
 0x20b   : > { %3556 = vst [vmem:[#allocation2 + $0x1a9] sm:$0x1] %v11401_v11 }
 0x20d   : > { %7052 = vmatmul.mubr.msk.f32.gmra.mrb[30].mxu0 %vm516_vm2, %v8771_v16  ;;  %v11614_v16 = vld [vmem:[#allocation6_spill] sm:$0xff] }
 0x20e   : > { %7054 = vmatprep.mubr.msk.f32.mxu0 %vm516_vm2, %v11611_v13 }
 0x211   : > { %7055 = vmatmul.mubr.msk.f32.gmra.mrb[32].mxu0 %vm516_vm2, %v11612_v22 }
 0x212   : > { %7057 = vmatprep.mubr.msk.f32.mxu0 %vm516_vm2, %v2779_v21 }
 0x215   : > { %7058 = vmatmul.mubr.msk.f32.gmra.mrb[34].mxu0 %vm516_vm2, %v2781_v23 }
 0x216   : > { %7062 = vmatprep.mubr.msk.f32.mxu0 %vm516_vm2, %v11613_v24 }
 0x219   : > { %7063 = vmatmul.mubr.msk.f32.vlgmr.msra.gmra.mrb[0].mxu0 %vm516_vm2, %v11614_v16 }
 0x21a   : > { %7065 = vmatprep.mubr.msk.f32.mxu0 %vm516_vm2, %v11615_v25  ;;  %7358 = vmatpush1.bf16.msra.mxu0 %v9127_v28  ;;  %v11620_v28 = vld [vmem:[#allocation12_spill] sm:$0xff] }
 0x21b   : > { %7359 = vmatprep.subr.bf16.mxu0 %v11402_v27 }
 0x21d   : > { %7066 = vmatmul.mubr.msk.f32.gmra.mrb[2].mxu0 %vm516_vm2, %v11616_v26 }
 0x21e   : > { %7068 = vmatprep.mubr.msk.f32.mxu0 %vm516_vm2, %v11617_v29  ;;  %7361 = vmatpush1.bf16.msra.mxu0 %v9142_v32  ;;  %v11622_v32 = vld [vmem:[#allocation14_spill] sm:$0xff] }
 0x21f   : > { %7362 = vmatprep.subr.bf16.mxu0 %v11402_v27 }
 0x221   : > { %7069 = vmatmul.mubr.msk.f32.gmra.mrb[4].mxu0 %vm516_vm2, %v11618_v30 }
 0x222   : > { %7071 = vmatprep.mubr.msk.f32.mxu0 %vm516_vm2, %v11619_v31  ;;  %7364 = vmatpush1.bf16.msra.mxu0 %v9156_v37  ;;  %v11626_v37 = vld [vmem:[#allocation19_spill] sm:$0xff] }
 0x223   : > { %7365 = vmatprep.subr.bf16.mxu0 %v11402_v27 }
 0x225   : > { %7072 = vmatmul.mubr.msk.f32.gmra.mrb[6].mxu0 %vm516_vm2, %v11620_v28 }
 0x226   : > { %7074 = vmatprep.mubr.msk.f32.mxu0 %vm516_vm2, %v11621_v33  ;;  %7367 = vmatpush1.bf16.msra.mxu0 %v9170_v40  ;;  %v11629_v40 = vld [vmem:[#allocation24_spill] sm:$0xff] }
 0x227   : > { %7368 = vmatprep.subr.bf16.mxu0 %v11402_v27 }
 0x229   : > { %7075 = vmatmul.mubr.msk.f32.gmra.mrb[8].mxu0 %vm516_vm2, %v11622_v32  ;;  %v6066_v32 = vld [vmem:[%s11297_s4 + $0x280] sm:$0xff] }
 0x22a   : > { %7077 = vmatprep.mubr.msk.f32.mxu0 %vm516_vm2, %v11623_v34  ;;  %7370 = vmatpush1.bf16.msra.mxu0 %v9184_v43  ;;  %v11632_v43 = vld [vmem:[#allocation35_spill] sm:$0xff]  ;;  %v6067_v34 = vld [vmem:[%s11297_s4 + $0x288] sm:$0xff] }
 0x22b   : > { %7371 = vmatprep.subr.bf16.mxu0 %v11402_v27 }
 0x22d   : > { %7078 = vmatmul.mubr.msk.f32.gmra.mrb[10].mxu0 %vm516_vm2, %v11624_v35 }
 0x22e   : > { %7080 = vmatprep.mubr.msk.f32.mxu0 %vm516_vm2, %v11625_v36  ;;  %7373 = vmatpush1.bf16.msra.mxu0 %v9198_v46  ;;  %v11636_v46 = vld [vmem:[#allocation43_spill] sm:$0xff]  ;;  %v9504_v36 = vpack.c.bf16 %v6067_v34, %v6066_v32 }
 0x22f   : > { %7374 = vmatprep.subr.bf16.mxu0 %v11402_v27 }
 0x231   : > { %7081 = vmatmul.mubr.msk.f32.gmra.mrb[12].mxu0 %vm516_vm2, %v11626_v37 }
 0x232   : > { %7083 = vmatprep.mubr.msk.f32.mxu0 %vm516_vm2, %v11627_v38  ;;  %7376 = vmatpush1.bf16.msra.mxu0 %v9212_v49  ;;  %v6057_v49 = vld [vmem:[%s11297_s4 + $0x238] sm:$0xff] }
 0x233   : > { %7377 = vmatprep.subr.bf16.mxu0 %v11402_v27  ;;  %v7390_v50 = vpack.c.bf16 %v6057_v49, %v6056_v20 }
 0x235   : > { %7084 = vmatmul.mubr.msk.f32.gmra.mrb[14].mxu0 %vm516_vm2, %v11628_v39 }
 0x236   : > { %7086 = vmatprep.mubr.msk.f32.mxu0 %vm516_vm2, %v11629_v40  ;;  %7379 = vmatpush1.bf16.msra.mxu0 %v9226_v60  ;;  %v6058_v60 = vld [vmem:[%s11297_s4 + $0x240] sm:$0xff] }
 0x237   : > { %7380 = vmatprep.subr.bf16.mxu0 %v11402_v27  ;;  %v7393_v10 = vpack.c.bf16 %v6059_v58, %v6058_v60 }
 0x239   : > { %7087 = vmatmul.mubr.msk.f32.gmra.mrb[16].mxu0 %vm516_vm2, %v11630_v41 }
 0x23a   : > { %7089 = vmatprep.mubr.msk.f32.mxu0 %vm516_vm2, %v11585_v12  ;;  %7382 = vmatpush1.bf16.msra.mxu0 %v7381_v5  ;;  %v11635_v12 = vld [vmem:[#allocation40_spill] sm:$0xff] }
 0x23b   : > { %7383 = vmatprep.subr.bf16.mxu0 %v11402_v27 }
 0x23d   : > { %7090 = vmatmul.mubr.msk.f32.gmra.mrb[18].mxu0 %vm516_vm2, %v11631_v42 }
 0x23e   : > { %7092 = vmatprep.mubr.msk.f32.mxu0 %vm516_vm2, %v11587_v1  ;;  %7385 = vmatpush1.bf16.msra.mxu0 %v7384_v6  ;;  %v11637_v1 = vld [vmem:[#allocation47_spill] sm:$0xff] }
 0x23f   : > { %7386 = vmatprep.subr.bf16.mxu0 %v11402_v27 }
 0x241   : > { %7093 = vmatmul.mubr.msk.f32.gmra.mrb[20].mxu0 %vm516_vm2, %v11632_v43 }
 0x242   : > { %7095 = vmatprep.mubr.msk.f32.mxu0 %vm516_vm2, %v11633_v44 }
 0x245   : > { %7096 = vmatmul.mubr.msk.f32.gmra.mrb[22].mxu0 %vm516_vm2, %v11634_v45 }
 0x246   : > { %7098 = vmatprep.mubr.msk.f32.mxu0 %vm516_vm2, %v11635_v12 }
 0x249   : > { %7099 = vmatmul.mubr.msk.f32.gmra.mrb[24].mxu0 %vm516_vm2, %v11636_v46  ;;  %v9528_v46 = vld [vmem:[%s11295_s2] ss:$0 sm:$0xff] }
 0x24a   : > { %7101 = vmatprep.mubr.msk.f32.mxu0 %vm516_vm2, %v8637_v3  ;;  %v3073_v3 = vrot.slane %v9263_v8, 2  ;;  %v6065_v8 = vld [vmem:[%s11297_s4 + $0x278] sm:$0xff] }
 0x24b   : > { %v7402_v13 = vpack.c.bf16 %v6065_v8, %v6064_v9 }
 0x24d   : > { %7102 = vmatmul.mubr.msk.f32.gmra.mrb[26].mxu0 %vm516_vm2, %v11593_v18  ;;  %v3072_v18 = vsel %vm1156_vm3, %v3070_v47, %v3071_v48  ;;  %v9533_v47 = vld [vmem:[%s11296_s3] ss:$0 sm:$0xff] }
 0x24e   : > { %7104 = vmatprep.mubr.msk.f32.mxu0 %vm516_vm2, %v11637_v1 }
 0x251   : > { %7105 = vmatmul.mubr.msk.f32.gmra.mrb[28].mxu0 %vm516_vm2, %v8685_v0  ;;  %v3074_v0 = vsel %vm1156_vm3, %v3071_v48, %v3073_v3 }
 0x252   : > { %7107 = vmatprep.mubr.msk.f32.mxu0 %vm516_vm2, %v11594_v55  ;;  %v6055_v55 = vld [vmem:[%s11297_s4 + $0x228] sm:$0xff] }
 0x255   : > { %7108 = vmatmul.mubr.msk.f32.gmra.mrb[30].mxu0 %vm516_vm2, %v8708_v54  ;;  %v6054_v54 = vld [vmem:[%s11297_s4 + $0x220] sm:$0xff] }
 0x256   : > { %7110 = vmatprep.mubr.msk.f32.mxu0 %vm516_vm2, %v9007_v62  ;;  %v7387_v62 = vpack.c.bf16 %v6055_v55, %v6054_v54 }
 0x258   : > { %7388 = vmatpush1.bf16.msra.mxu0 %v7387_v62  ;;  %7624 = vmatpush1.bf16.msra.mxu1 %v7387_v62 }
 0x259   : > { %7111 = vmatmul.mubr.msk.f32.gmra.mrb[32].mxu0 %vm516_vm2, %v9014_v7  ;;  %v9377_v7 = vpop.f32.mrb[1].mxu1  ;;  %7389 = vmatprep.subr.bf16.mxu0 %v11402_v27 }
 0x25a   : > { %7113 = vmatprep.mubr.msk.f32.mxu0 %vm516_vm2, %v3072_v18  ;;  %7609 = vmatprep.subr.bf16.mxu1 %v11402_v27  ;;  %v9387_v2 = vpop.f32.mrb[2].mxu1 }
 0x25b   : > { %v9424_v53 = vpop.f32.mrb[3].mxu1 }
 0x25c   : > { %7391 = vmatpush1.bf16.msra.mxu0 %v7390_v50  ;;  %7625 = vmatpush1.bf16.msra.mxu1 %v7390_v50  ;;  %v9434_v14 = vpop.f32.mrb[4].mxu1 }
 0x25d   : > { %7114 = vmatmul.mubr.msk.f32.gmra.mrb[34].mxu0 %vm516_vm2, %v3074_v0  ;;  %7392 = vmatprep.subr.bf16.mxu0 %v11402_v27  ;;  %v9436_v5 = vpop.f32.mrb[5].mxu1 }
 0x25e   : > { %7610 = vmatprep.subr.bf16.mxu1 %v11402_v27  ;;  %v9446_v57 = vpop.f32.mrb[6].mxu1 }
 0x25f   : > { %v9448_v6 = vpop.f32.mrb[7].mxu1 }
 0x260   : > { %7394 = vmatpush1.bf16.msra.mxu0 %v7393_v10  ;;  %7626 = vmatpush1.bf16.msra.mxu1 %v7393_v10  ;;  %v9458_v56 = vpop.f32.mrb[8].mxu1 }
 0x261   : > { %7395 = vmatprep.subr.bf16.mxu0 %v11402_v27  ;;  %7611 = vmatprep.subr.bf16.mxu1 %v11402_v27  ;;  %v9460_v59 = vpop.f32.mrb[9].mxu1 }
 0x262   : > { %v9470_v51 = vpop.f32.mrb[10].mxu1 }
 0x263   : > { %v9472_v21 = vpop.f32.mrb[11].mxu1 }
 0x264   : > { %7397 = vmatpush1.bf16.msra.mxu0 %v7396_v52  ;;  %7627 = vmatpush1.bf16.msra.mxu1 %v7396_v52  ;;  %v9474_v22 = vpop.f32.mrb[12].mxu1 }
 0x265   : > { %7398 = vmatprep.subr.bf16.mxu0 %v11402_v27  ;;  %7612 = vmatprep.subr.bf16.mxu1 %v11402_v27  ;;  %v9476_v23 = vpop.f32.mrb[13].mxu1 }
 0x266   : > { %v9478_v24 = vpop.f32.mrb[14].mxu1 }
 0x267   : > { %v9480_v16 = vpop.f32.mrb[15].mxu1 }
 0x268   : > { %7400 = vmatpush1.bf16.msra.mxu0 %v7399_v17  ;;  %7628 = vmatpush1.bf16.msra.mxu1 %v7399_v17  ;;  %v9482_v25 = vpop.f32.mrb[16].mxu1 }
 0x269   : > { %7401 = vmatprep.subr.bf16.mxu0 %v11402_v27  ;;  %7613 = vmatprep.subr.bf16.mxu1 %v11402_v27  ;;  %v9484_v26 = vpop.f32.mrb[17].mxu1 }
 0x26a   : > { %v9486_v29 = vpop.f32.mrb[18].mxu1 }
 0x26b   : > { %v9488_v30 = vpop.f32.mrb[19].mxu1 }
 0x26c   : > { %7403 = vmatpush1.bf16.msra.mxu0 %v7402_v13  ;;  %7629 = vmatpush1.bf16.msra.mxu1 %v7402_v13  ;;  %v9490_v31 = vpop.f32.mrb[20].mxu1 }
 0x26d   : > { %v9492_v28 = vpop.f32.mrb[21].mxu1  ;;  %7405 = vmatprep.subr.bf16.mxu1 %v9504_v36 }
 0x26e   : > { %v9494_v33 = vpop.f32.mrb[22].mxu1 }
 0x26f   : > { %v9502_v35 = vpop.f32.mrb[23].mxu1 }
 0x270   : > { %v9507_v37 = vpop.f32.mrb[24].mxu1 }
 0x271   : > { %v9509_v38 = vpop.f32.mrb[25].mxu1 }
 0x272   : > { %v9511_v39 = vpop.f32.mrb[26].mxu1 }
 0x273   : > { %v9513_v40 = vpop.f32.mrb[27].mxu1 }
 0x274   : > { %v9515_v41 = vpop.f32.mrb[28].mxu1 }
 0x275   : > { %v9517_v42 = vpop.f32.mrb[29].mxu1 }
 0x276   : > { %v9519_v43 = vpop.f32.mrb[30].mxu1 }
 0x277   : > { %v9521_v44 = vpop.f32.mrb[31].mxu1 }
 0x278   : > { %v9523_v45 = vpop.f32.mrb[32].mxu1 }
 0x279   : > { %v828_v12 = vpop.f32.mrb[33].mxu1 }
 0x2ec   : > { %v7064_v1 = vpop.f32.mrb[0].mxu0 }
 0x2ed   : > { %v3371_v48 = vmul.f32 %v7064_v1, %v9528_v46  ;;  %v3148_v3 = vpop.f32.mrb[1].mxu0 }
 0x2ee   : > { %v3370_v18 = vmul.f32 %v9528_v46, %v3148_v3 }
 0x2ef   : > { %v3414_v0 = vadd.f32 %v9533_v47, %v3371_v48 }
 0x2f0   : > { %v3413_v54 = vadd.f32 %v9533_v47, %v3370_v18  ;;  %v7067_v55 = vpop.f32.mrb[2].mxu0 }
 0x2f1   : > { %v3450_v62 = vmax.f32 %v3414_v0, 0.0  ;;  %v7630_v20 = vadd.f32 %v7067_v55, %v9375_v19  ;;  %v3158_v49 = vpop.f32.mrb[3].mxu0 }
 0x2f2   : > { %v3449_v50 = vmax.f32 %v3413_v54, 0.0  ;;  %v7631_v60 = vadd.f32 %v3158_v49, %v9377_v7 }
 0x2f3   : > { %3486 = vst [vmem:[#allocation2 + $0x9] sm:$0xff] %v3450_v62  ;;  %v3373_v58 = vmul.f32 %v7630_v20, %v9528_v46 }
 0x2f4   : > { %3563 = vst [vmem:[#allocation2 + $0x10] sm:$0x3] %v11401_v11  ;;  %3485 = vst [vmem:[#allocation2 + $0x1] sm:$0xff] %v3449_v50  ;;  %v3372_v10 = vmul.f32 %v7631_v60, %v9528_v46  ;;  %v7070_v63 = vpop.f32.mrb[4].mxu0 }
 0x2f5   : > { %3561 = vst [vmem:[#allocation2] sm:$0xff] %v11401_v11  ;;  %v3416_v15 = vadd.f32 %v9533_v47, %v3373_v58  ;;  %v7632_v52 = vadd.f32 %v7070_v63, %v9387_v2  ;;  %v3168_v19 = vpop.f32.mrb[5].mxu0 }
 0x2f6   : > { %v3415_v4 = vadd.f32 %v9533_v47, %v3372_v10  ;;  %v7633_v7 = vadd.f32 %v3168_v19, %v9424_v53 }
 0x2f7   : > { %v3452_v61 = vmax.f32 %v3416_v15, 0.0  ;;  %v3375_v17 = vmul.f32 %v7632_v52, %v9528_v46 }
 0x2f8   : > { %v3451_v9 = vmax.f32 %v3415_v4, 0.0  ;;  %v3374_v8 = vmul.f32 %v7633_v7, %v9528_v46  ;;  %v7073_v13 = vpop.f32.mrb[6].mxu0 }
 0x2f9   : > { %3488 = vst [vmem:[#allocation2 + $0x21] sm:$0xff] %v3452_v61  ;;  %v3418_v32 = vadd.f32 %v9533_v47, %v3375_v17  ;;  %v7634_v34 = vadd.f32 %v7073_v13, %v9434_v14  ;;  %v3178_v12 = vpop.f32.mrb[7].mxu0 }
 0x2fa   : > { %3487 = vst [vmem:[#allocation2 + $0x19] sm:$0xff] %v3451_v9  ;;  %v3417_v2 = vadd.f32 %v9533_v47, %v3374_v8  ;;  %v7635_v1 = vadd.f32 %v3178_v12, %v9436_v5 }
 0x2fb   : > { %v3454_v48 = vmax.f32 %v3418_v32, 0.0  ;;  %v3377_v53 = vmul.f32 %v7634_v34, %v9528_v46 }
 0x2fc   : > { %v3453_v3 = vmax.f32 %v3417_v2, 0.0  ;;  %v3376_v18 = vmul.f32 %v7635_v1, %v9528_v46  ;;  %v7076_v0 = vpop.f32.mrb[8].mxu0 }
 0x2fd   : > { %3490 = vst [vmem:[#allocation2 + $0x39] sm:$0xff] %v3454_v48  ;;  %v3420_v54 = vadd.f32 %v9533_v47, %v3377_v53  ;;  %v7636_v55 = vadd.f32 %v7076_v0, %v9446_v57  ;;  %v3188_v62 = vpop.f32.mrb[9].mxu0 }
 0x2fe   : > { %3489 = vst [vmem:[#allocation2 + $0x31] sm:$0xff] %v3453_v3  ;;  %v3419_v14 = vadd.f32 %v9533_v47, %v3376_v18  ;;  %v7637_v20 = vadd.f32 %v3188_v62, %v9448_v6 }
 0x2ff   : > { %v3456_v49 = vmax.f32 %v3420_v54, 0.0  ;;  %v3379_v5 = vmul.f32 %v7636_v55, %v9528_v46 }
 0x300   : > { %v3455_v50 = vmax.f32 %v3419_v14, 0.0  ;;  %v3378_v60 = vmul.f32 %v7637_v20, %v9528_v46  ;;  %v7079_v58 = vpop.f32.mrb[10].mxu0  ;;  %v9563_v10 = vld [vmem:[#allocation2 + $0x28] sm:$0x3] }
 0x301   : > { %3492 = vst [vmem:[#allocation2 + $0x51] sm:$0xff] %v3456_v49  ;;  %v3422_v63 = vadd.f32 %v9533_v47, %v3379_v5  ;;  %v7638_v57 = vadd.f32 %v7079_v58, %v9458_v56  ;;  %v3198_v15 = vpop.f32.mrb[11].mxu0  ;;  %v9567_v52 = vld [vmem:[#allocation2 + $0x18] sm:$0xff]  ;;  %v9569_v19 = vld [vmem:[#allocation2 + $0x20] sm:$0xff]  ;;  %v3678_v6 = vrot.slane %v9563_v10, 1 }
 0x302   : > { %3491 = vst [vmem:[#allocation2 + $0x49] sm:$0xff] %v3455_v50  ;;  %v3421_v4 = vadd.f32 %v9533_v47, %v3378_v60  ;;  %v7639_v7 = vadd.f32 %v3198_v15, %v9460_v59  ;;  %v3675_v61 = vrot.slane %v9567_v52, 1  ;;  %v3676_v17 = vrot.slane %v9569_v19, 1 }
 0x303   : > { %v3458_v9 = vmax.f32 %v3422_v63, 0.0  ;;  %v3381_v8 = vmul.f32 %v7638_v57, %v9528_v46 }
 0x304   : > { %v3457_v56 = vmax.f32 %v3421_v4, 0.0  ;;  %v3380_v13 = vmul.f32 %v7639_v7, %v9528_v46  ;;  %v7082_v32 = vpop.f32.mrb[12].mxu0  ;;  %v9579_v34 = vsel %vm423_vm1, %v3675_v61, %v3676_v17  ;;  %v9585_v1 = vsel %vm423_vm1, %v3676_v17, %v3678_v6  ;;  %v9598_v62 = vld [vmem:[#allocation2 + $0x40] sm:$0x3] }
 0x305   : > { %3494 = vst [vmem:[#allocation2 + $0x69] sm:$0xff] %v3458_v9  ;;  %v3424_v12 = vadd.f32 %v9533_v47, %v3381_v8  ;;  %v7640_v2 = vadd.f32 %v7082_v32, %v9470_v51  ;;  %v3208_v59 = vpop.f32.mrb[13].mxu0  ;;  %4072 = vmatprep.mubr.f32.mxu0 %v9579_v34  ;;  %v9587_v48 = vld [vmem:[#allocation2 + $0x30] sm:$0xff]  ;;  %v9589_v53 = vld [vmem:[#allocation2 + $0x38] sm:$0xff]  ;;  %v3683_v57 = vrot.slane %v9598_v62, 1 }
 0x306   : > { %3493 = vst [vmem:[#allocation2 + $0x61] sm:$0xff] %v3457_v56  ;;  %v3423_v3 = vadd.f32 %v9533_v47, %v3380_v13  ;;  %v7641_v18 = vadd.f32 %v3208_v59, %v9472_v21  ;;  %4073 = vmatmul.mubr.f32.vlgmr.msra.gmra.mrb[36].mxu0 %v9567_v52  ;;  %v3680_v0 = vrot.slane %v9587_v48, 1  ;;  %v3681_v51 = vrot.slane %v9589_v53, 1 }
 0x307   : > { %v3460_v54 = vmax.f32 %v3424_v12, 0.0  ;;  %v3383_v55 = vmul.f32 %v7640_v2, %v9528_v46  ;;  %4077 = vmatprep.mubr.f32.mxu0 %v9585_v1 }
 0x308   : > { %v3459_v14 = vmax.f32 %v3423_v3, 0.0  ;;  %v3382_v20 = vmul.f32 %v7641_v18, %v9528_v46  ;;  %v7085_v49 = vpop.f32.mrb[14].mxu0  ;;  %v9607_v63 = vsel %vm423_vm1, %v3680_v0, %v3681_v51  ;;  %v9621_v32 = vld [vmem:[#allocation2 + $0x58] sm:$0x3]  ;;  %v9627_v59 = vsel %vm423_vm1, %v3681_v51, %v3683_v57  ;;  %v6068_v18 = vld [vmem:[%s11297_s4 + $0x290] sm:$0xff] }
 0x309   : > { %3496 = vst [vmem:[#allocation2 + $0x81] sm:$0xff] %v3460_v54  ;;  %v3426_v21 = vadd.f32 %v9533_v47, %v3383_v55  ;;  %v7642_v5 = vadd.f32 %v7085_v49, %v9474_v22  ;;  %v3218_v50 = vpop.f32.mrb[15].mxu0  ;;  %11638 = vst [vmem:[#allocation37_spill] sm:$0xff] %v9607_v63  ;;  %v9610_v15 = vld [vmem:[#allocation2 + $0x48] sm:$0xff]  ;;  %v9612_v6 = vld [vmem:[#allocation2 + $0x50] sm:$0xff] }
 0x30a   : > { %3495 = vst [vmem:[#allocation2 + $0x79] sm:$0xff] %v3459_v14  ;;  %v3425_v60 = vadd.f32 %v9533_v47, %v3382_v20  ;;  %v7643_v58 = vadd.f32 %v3218_v50, %v9476_v23  ;;  %4078 = vmatmul.mubr.f32.gmra.mrb[38].mxu0 %v9569_v19  ;;  %v3685_v56 = vrot.slane %v9610_v15, 1  ;;  %v3686_v13 = vrot.slane %v9612_v6, 1  ;;  %11639 = vst [vmem:[#allocation38_spill] sm:$0xff] %v9627_v59  ;;  %v6069_v51 = vld [vmem:[%s11297_s4 + $0x298] sm:$0xff] }
 0x30b   : > { %v3462_v4 = vmax.f32 %v3426_v21, 0.0  ;;  %v3385_v22 = vmul.f32 %v7642_v5, %v9528_v46  ;;  %4082 = vmatprep.mubr.f32.mxu0 %v9607_v63 }
 0x30c   : > { %v3461_v7 = vmax.f32 %v3425_v60, 0.0  ;;  %v3384_v61 = vmul.f32 %v7643_v58, %v9528_v46  ;;  %v7088_v23 = vpop.f32.mrb[16].mxu0  ;;  %v9644_v5 = vsel %vm423_vm1, %v3685_v56, %v3686_v13 }
 0x30d   : > { %3498 = vst [vmem:[#allocation2 + $0x99] sm:$0xff] %v3462_v4  ;;  %v3428_v17 = vadd.f32 %v9533_v47, %v3385_v22  ;;  %v7644_v9 = vadd.f32 %v7088_v23, %v9478_v24  ;;  %v3228_v8 = vpop.f32.mrb[17].mxu0  ;;  %11640 = vst [vmem:[#allocation41_spill] sm:$0xff] %v9644_v5 }
 0x30e   : > { %3497 = vst [vmem:[#allocation2 + $0x91] sm:$0xff] %v3461_v7  ;;  %v3427_v12 = vadd.f32 %v9533_v47, %v3384_v61  ;;  %v7645_v2 = vadd.f32 %v3228_v8, %v9480_v16  ;;  %4083 = vmatmul.mubr.f32.gmra.mrb[40].mxu0 %v9587_v48  ;;  %v3688_v16 = vrot.slane %v9621_v32, 1  ;;  %v9657_v7 = vld [vmem:[#allocation2 + $0x68] sm:$0xff] }
 0x30f   : > { %v3464_v3 = vmax.f32 %v3428_v17, 0.0  ;;  %v3387_v24 = vmul.f32 %v7644_v9, %v9528_v46  ;;  %4087 = vmatprep.mubr.f32.mxu0 %v9627_v59  ;;  %v7408_v9 = vpack.c.bf16 %v6069_v51, %v6068_v18  ;;  %v3691_v51 = vrot.slane %v9657_v7, 1 }
 0x310   : > { %v3463_v0 = vmax.f32 %v3427_v12, 0.0  ;;  %v3386_v54 = vmul.f32 %v7645_v2, %v9528_v46  ;;  %v7091_v55 = vpop.f32.mrb[18].mxu0  ;;  %v9636_v14 = vld [vmem:[#allocation2 + $0x88] sm:$0x3]  ;;  %v9667_v2 = vsel %vm423_vm1, %v3686_v13, %v3688_v16 }
 0x311   : > { %3500 = vst [vmem:[#allocation2 + $0xb1] sm:$0xff] %v3464_v3  ;;  %v3430_v20 = vadd.f32 %v9533_v47, %v3387_v24  ;;  %v7646_v49 = vadd.f32 %v7091_v55, %v9482_v25  ;;  %v3238_v21 = vpop.f32.mrb[19].mxu0  ;;  %v9646_v50 = vld [vmem:[#allocation2 + $0x78] sm:$0xff]  ;;  %v9648_v60 = vld [vmem:[#allocation2 + $0x80] sm:$0xff]  ;;  %v3698_v17 = vrot.slane %v9636_v14, 1  ;;  %11642 = vst [vmem:[#allocation44_spill] sm:$0xff] %v9667_v2 }
 0x312   : > { %3499 = vst [vmem:[#allocation2 + $0xa9] sm:$0xff] %v3463_v0  ;;  %v3429_v58 = vadd.f32 %v9533_v47, %v3386_v54  ;;  %v7647_v57 = vadd.f32 %v3238_v21, %v9484_v26  ;;  %4088 = vmatmul.mubr.f32.gmra.mrb[42].mxu0 %v9589_v53  ;;  %v3695_v4 = vrot.slane %v9646_v50, 1  ;;  %v3696_v22 = vrot.slane %v9648_v60, 1  ;;  %v9655_v25 = vld [vmem:[#allocation2 + $0x60] sm:$0xff]  ;;  %v9669_v3 = vld [vmem:[#allocation2 + $0x70] sm:$0x3] }
 0x313   : > { %v3466_v61 = vmax.f32 %v3430_v20, 0.0  ;;  %v3389_v23 = vmul.f32 %v7646_v49, %v9528_v46  ;;  %4092 = vmatprep.mubr.f32.mxu0 %v9644_v5  ;;  %v6070_v24 = vld [vmem:[%s11297_s4 + $0x2a0] sm:$0xff]  ;;  %v3690_v55 = vrot.slane %v9655_v25, 1  ;;  %v6071_v20 = vld [vmem:[%s11297_s4 + $0x2a8] sm:$0xff] }
 0x314   : > { %v3465_v8 = vmax.f32 %v3429_v58, 0.0  ;;  %v3388_v26 = vmul.f32 %v7647_v57, %v9528_v46  ;;  %v7094_v56 = vpop.f32.mrb[20].mxu0  ;;  %v9664_v12 = vsel %vm423_vm1, %v3695_v4, %v3696_v22  ;;  %v9692_v57 = vld [vmem:[#allocation2 + $0xa0] sm:$0x3] }
 0x315   : > { %11641 = vst [vmem:[#allocation42_spill] sm:$0xff] %v9664_v12  ;;  %3502 = vst [vmem:[#allocation2 + $0xc9] sm:$0xff] %v3466_v61  ;;  %v3432_v0 = vadd.f32 %v9533_v47, %v3389_v23  ;;  %v7648_v18 = vadd.f32 %v7094_v56, %v9486_v29  ;;  %v3248_v54 = vpop.f32.mrb[21].mxu0  ;;  %4112 = vmatprep.mubr.f32.mxu1 %v9664_v12  ;;  %v9679_v13 = vld [vmem:[#allocation2 + $0x90] sm:$0xff]  ;;  %v9681_v16 = vld [vmem:[#allocation2 + $0x98] sm:$0xff]  ;;  %v9698_v23 = vsel %vm423_vm1, %v3696_v22, %v3698_v17 }
 0x316   : > { %3501 = vst [vmem:[#allocation2 + $0xc1] sm:$0xff] %v3465_v8  ;;  %v3431_v49 = vadd.f32 %v9533_v47, %v3388_v26  ;;  %v7649_v29 = vadd.f32 %v3248_v54, %v9488_v30  ;;  %4093 = vmatmul.mubr.f32.gmra.mrb[44].mxu0 %v9610_v15  ;;  %4113 = vmatmul.mubr.f32.vlgmr.msra.gmra.mrb[34].mxu1 %v9646_v50  ;;  %v3700_v21 = vrot.slane %v9679_v13, 1  ;;  %v3701_v58 = vrot.slane %v9681_v16, 1  ;;  %v6072_v17 = vld [vmem:[%s11297_s4 + $0x2b0] sm:$0xff] }
 0x317   : > { %v3468_v4 = vmax.f32 %v3432_v0, 0.0  ;;  %v3391_v61 = vmul.f32 %v7648_v18, %v9528_v46  ;;  %7407 = vmatpush3.bf16.msra.mxu1 %v9504_v36  ;;  %4097 = vmatprep.mubr.f32.mxu0 %v9667_v2  ;;  %11643 = vst [vmem:[#allocation45_spill] sm:$0xff] %v9698_v23  ;;  %v3693_v56 = vrot.slane %v9669_v3, 1  ;;  %v7412_v54 = vpack.c.bf16 %v6071_v20, %v6070_v24 }
 0x318   : > { %v3467_v30 = vmax.f32 %v3431_v49, 0.0  ;;  %v3390_v8 = vmul.f32 %v7649_v29, %v9528_v46  ;;  %4117 = vmatprep.mubr.f32.mxu1 %v9698_v23  ;;  %v7097_v26 = vpop.f32.mrb[22].mxu0  ;;  %7409 = vmatprep.subr.bf16.mxu1 %v7408_v9  ;;  %v9706_v11 = vsel %vm423_vm1, %v3690_v55, %v3691_v51  ;;  %v3703_v22 = vrot.slane %v9692_v57, 1  ;;  %v6073_v49 = vld [vmem:[%s11297_s4 + $0x2b8] sm:$0xff] }
 0x319   : > { %3504 = vst [vmem:[#allocation2 + $0xe1] sm:$0xff] %v3468_v4  ;;  %v3434_v0 = vadd.f32 %v9533_v47, %v3391_v61  ;;  %v7650_v36 = vadd.f32 %v7097_v26, %v9490_v31  ;;  %v3258_v18 = vpop.f32.mrb[23].mxu0  ;;  %11644 = vst [vmem:[#allocation3_spill] sm:$0xff] %v9706_v11  ;;  %v9720_v31 = vsel %vm423_vm1, %v3700_v21, %v3701_v58  ;;  %v9725_v4 = vld [vmem:[#allocation2 + $0xa8] sm:$0xff]  ;;  %v9727_v61 = vld [vmem:[#allocation2 + $0xb0] sm:$0xff] }
 0x31a   : > { %3503 = vst [vmem:[#allocation2 + $0xd9] sm:$0xff] %v3467_v30  ;;  %v3433_v24 = vadd.f32 %v9533_v47, %v3390_v8  ;;  %v7651_v20 = vadd.f32 %v3258_v18, %v9492_v28  ;;  %4098 = vmatmul.mubr.f32.gmra.mrb[46].mxu0 %v9612_v6  ;;  %4118 = vmatmul.mubr.f32.gmra.mrb[36].mxu1 %v9648_v60  ;;  %11645 = vst [vmem:[#allocation4_spill] sm:$0xff] %v9720_v31 }
 0x31b   : > { %v3470_v55 = vmax.f32 %v3434_v0, 0.0  ;;  %v3393_v29 = vmul.f32 %v7650_v36, %v9528_v46  ;;  %4102 = vmatprep.mubr.f32.mxu0 %v9706_v11  ;;  %4122 = vmatprep.mubr.f32.mxu1 %v9720_v31  ;;  %v7416_v26 = vpack.c.bf16 %v6073_v49, %v6072_v17  ;;  %v9733_v18 = vsel %vm423_vm1, %v3691_v51, %v3693_v56  ;;  %v9744_v17 = vld [vmem:[#allocation2 + $0xb8] sm:$0x3]  ;;  %v6074_v51 = vld [vmem:[%s11297_s4 + $0x2c0] sm:$0xff] }
 0x31c   : > { %v3469_v30 = vmax.f32 %v3433_v24, 0.0  ;;  %v3392_v28 = vmul.f32 %v7651_v20, %v9528_v46  ;;  %v7100_v8 = vpop.f32.mrb[24].mxu0  ;;  %7411 = vmatpush3.bf16.msra.mxu1 %v7408_v9  ;;  %11646 = vst [vmem:[#allocation28_spill] sm:$0xff] %v9733_v18  ;;  %v9736_v27 = vsel %vm423_vm1, %v3701_v58, %v3703_v22  ;;  %v3705_v9 = vrot.slane %v9725_v4, 1  ;;  %v6075_v58 = vld [vmem:[%s11297_s4 + $0x2c8] sm:$0xff] }
 0x31d   : > { %3506 = vst [vmem:[#allocation2 + $0xf9] sm:$0xff] %v3470_v55  ;;  %v3436_v21 = vadd.f32 %v9533_v47, %v3393_v29  ;;  %v7652_v0 = vadd.f32 %v7100_v8, %v9494_v33  ;;  %v3268_v36 = vpop.f32.mrb[25].mxu0  ;;  %11647 = vst [vmem:[#allocation32_spill] sm:$0xff] %v9736_v27  ;;  %7413 = vmatprep.subr.bf16.mxu1 %v7412_v54  ;;  %v3706_v33 = vrot.slane %v9727_v61, 1  ;;  %v3708_v8 = vrot.slane %v9744_v17, 1 }
 0x31e   : > { %3505 = vst [vmem:[#allocation2 + $0xf1] sm:$0xff] %v3469_v30  ;;  %v3435_v24 = vadd.f32 %v9533_v47, %v3392_v28  ;;  %v7653_v20 = vadd.f32 %v3268_v36, %v9502_v35  ;;  %4103 = vmatmul.mubr.f32.gmra.mrb[48].mxu0 %v9655_v25  ;;  %4123 = vmatmul.mubr.f32.gmra.mrb[38].mxu1 %v9679_v13 }
 0x31f   : > { %v3472_v56 = vmax.f32 %v3436_v21, 0.0  ;;  %v3395_v35 = vmul.f32 %v7652_v0, %v9528_v46  ;;  %4107 = vmatprep.mubr.f32.mxu0 %v9733_v18  ;;  %4127 = vmatprep.mubr.f32.mxu1 %v9736_v27  ;;  %v7420_v21 = vpack.c.bf16 %v6075_v58, %v6074_v51  ;;  %v9776_v58 = vld [vmem:[#allocation2 + $0xc8] sm:$0xff] }
 0x320   : > { %v3471_v22 = vmax.f32 %v3435_v24, 0.0  ;;  %v3394_v49 = vmul.f32 %v7653_v20, %v9528_v46  ;;  %v7103_v55 = vpop.f32.mrb[26].mxu0  ;;  %7415 = vmatpush3.bf16.msra.mxu1 %v7412_v54  ;;  %v9764_v54 = vsel %vm423_vm1, %v3705_v9, %v3706_v33  ;;  %v6077_v24 = vld [vmem:[%s11297_s4 + $0x2d8] sm:$0xff]  ;;  %v3895_v18 = vld [vmem:[%s11297_s4 + $0x8] sm:$0xff] }
 0x321   : > { %3508 = vst [vmem:[#allocation2 + $0x111] sm:$0xff] %v3472_v56  ;;  %v3438_v29 = vadd.f32 %v9533_v47, %v3395_v35  ;;  %v7654_v30 = vadd.f32 %v7103_v55, %v9507_v37  ;;  %v3278_v28 = vpop.f32.mrb[27].mxu0  ;;  %7417 = vmatprep.subr.bf16.mxu1 %v7416_v26  ;;  %11648 = vst [vmem:[#allocation46_spill] sm:$0xff] %v9764_v54  ;;  %v6076_v37 = vld [vmem:[%s11297_s4 + $0x2d0] sm:$0xff] }
 0x322   : > { %3507 = vst [vmem:[#allocation2 + $0x109] sm:$0xff] %v3471_v22  ;;  %v3437_v0 = vadd.f32 %v9533_v47, %v3394_v49  ;;  %v7655_v36 = vadd.f32 %v3278_v28, %v9509_v38  ;;  %4108 = vmatmul.mubr.f32.gmra.mrb[50].mxu0 %v9657_v7  ;;  %4128 = vmatmul.mubr.f32.gmra.mrb[40].mxu1 %v9681_v16  ;;  %v9774_v38 = vld [vmem:[#allocation2 + $0xc0] sm:$0xff] }
 0x323   : > { %v3474_v20 = vmax.f32 %v3438_v29, 0.0  ;;  %v3397_v51 = vmul.f32 %v7654_v30, %v9528_v46  ;;  %4132 = vmatprep.mubr.f32.mxu1 %v9764_v54  ;;  %v9782_v29 = vsel %vm423_vm1, %v3706_v33, %v3708_v8  ;;  %v7424_v30 = vpack.c.bf16 %v6077_v24, %v6076_v37  ;;  %v6079_v33 = vld [vmem:[%s11297_s4 + $0x2e8] sm:$0xff] }
 0x324   : > { %v3473_v56 = vmax.f32 %v3437_v0, 0.0  ;;  %v3396_v9 = vmul.f32 %v7655_v36, %v9528_v46  ;;  %v7106_v35 = vpop.f32.mrb[28].mxu0  ;;  %7419 = vmatpush3.bf16.msra.mxu1 %v7416_v26  ;;  %11649 = vst [vmem:[#allocation49_spill] sm:$0xff] %v9782_v29  ;;  %v3710_v26 = vrot.slane %v9774_v38, 1  ;;  %v3711_v36 = vrot.slane %v9776_v58, 1 }
 0x325   : > { %3510 = vst [vmem:[#allocation2 + $0x129] sm:$0xff] %v3474_v20  ;;  %v3440_v22 = vadd.f32 %v9533_v47, %v3397_v51  ;;  %v7656_v49 = vadd.f32 %v7106_v35, %v9511_v39  ;;  %v3288_v55 = vpop.f32.mrb[29].mxu0  ;;  %7421 = vmatprep.subr.bf16.mxu1 %v7420_v21  ;;  %v9789_v20 = vld [vmem:[#allocation2 + $0xd0] sm:$0x3]  ;;  %v6078_v39 = vld [vmem:[%s11297_s4 + $0x2e0] sm:$0xff] }
 0x326   : > { %3509 = vst [vmem:[#allocation2 + $0x121] sm:$0xff] %v3473_v56  ;;  %v3439_v28 = vadd.f32 %v9533_v47, %v3396_v9  ;;  %v7657_v0 = vadd.f32 %v3288_v55, %v9513_v40  ;;  %4133 = vmatmul.mubr.f32.gmra.mrb[42].mxu1 %v9725_v4  ;;  %v3713_v55 = vrot.slane %v9789_v20, 1  ;;  %v7428_v54 = vpack.c.bf16 %v6079_v33, %v6078_v39  ;;  %v9817_v33 = vld [vmem:[#allocation2 + $0xd8] sm:$0xff] }
 0x327   : > { %v3476_v8 = vmax.f32 %v3440_v22, 0.0  ;;  %v3399_v37 = vmul.f32 %v7656_v49, %v9528_v46  ;;  %4137 = vmatprep.mubr.f32.mxu1 %v9782_v29 }
 0x328   : > { %v3475_v40 = vmax.f32 %v3439_v28, 0.0  ;;  %v3398_v24 = vmul.f32 %v7657_v0, %v9528_v46  ;;  %v7109_v51 = vpop.f32.mrb[30].mxu0  ;;  %7423 = vmatpush3.bf16.msra.mxu1 %v7420_v21  ;;  %v9807_v28 = vsel %vm423_vm1, %v3710_v26, %v3711_v36  ;;  %v6080_v21 = vld [vmem:[%s11297_s4 + $0x2f0] sm:$0xff] }
 0x329   : > { %3512 = vst [vmem:[#allocation2 + $0x141] sm:$0xff] %v3476_v8  ;;  %v3442_v56 = vadd.f32 %v9533_v47, %v3399_v37  ;;  %v7658_v9 = vadd.f32 %v7109_v51, %v9515_v41  ;;  %v3298_v35 = vpop.f32.mrb[31].mxu0  ;;  %7425 = vmatprep.subr.bf16.mxu1 %v7424_v30  ;;  %11650 = vst [vmem:[#allocation18_spill] sm:$0xff] %v9807_v28  ;;  %v6081_v41 = vld [vmem:[%s11297_s4 + $0x2f8] sm:$0xff] }
 0x32a   : > { %3511 = vst [vmem:[#allocation2 + $0x139] sm:$0xff] %v3475_v40  ;;  %v3441_v22 = vadd.f32 %v9533_v47, %v3398_v24  ;;  %v7659_v49 = vadd.f32 %v3298_v35, %v9517_v42  ;;  %4138 = vmatmul.mubr.f32.gmra.mrb[44].mxu1 %v9727_v61  ;;  %v9819_v42 = vld [vmem:[#allocation2 + $0xe0] sm:$0xff] }
 0x32b   : > { %v3478_v0 = vmax.f32 %v3442_v56, 0.0  ;;  %v3401_v39 = vmul.f32 %v7658_v9, %v9528_v46  ;;  %4142 = vmatprep.mubr.f32.mxu1 %v9807_v28  ;;  %v9825_v56 = vsel %vm423_vm1, %v3711_v36, %v3713_v55  ;;  %v7432_v9 = vpack.c.bf16 %v6081_v41, %v6080_v21  ;;  %v9834_v36 = vld [vmem:[#allocation2 + $0xe8] sm:$0x3] }
 0x32c   : > { %v3477_v8 = vmax.f32 %v3441_v22, 0.0  ;;  %v3400_v26 = vmul.f32 %v7659_v49, %v9528_v46  ;;  %v7112_v37 = vpop.f32.mrb[32].mxu0  ;;  %7427 = vmatpush3.bf16.msra.mxu1 %v7424_v30  ;;  %11651 = vst [vmem:[#allocation21_spill] sm:$0xff] %v9825_v56  ;;  %v3715_v30 = vrot.slane %v9817_v33, 1  ;;  %v3716_v49 = vrot.slane %v9819_v42, 1 }
 0x32d   : > { %3514 = vst [vmem:[#allocation2 + $0x159] sm:$0xff] %v3478_v0  ;;  %v3444_v40 = vadd.f32 %v9533_v47, %v3401_v39  ;;  %v7660_v24 = vadd.f32 %v7112_v37, %v9519_v43  ;;  %v3308_v51 = vpop.f32.mrb[33].mxu0  ;;  %7429 = vmatprep.subr.bf16.mxu1 %v7428_v54 }
 0x32e   : > { %3513 = vst [vmem:[#allocation2 + $0x151] sm:$0xff] %v3477_v8  ;;  %v3443_v35 = vadd.f32 %v9533_v47, %v3400_v26  ;;  %v7661_v22 = vadd.f32 %v3308_v51, %v9521_v44  ;;  %4143 = vmatmul.mubr.f32.gmra.mrb[46].mxu1 %v9774_v38  ;;  %v9842_v37 = vsel %vm423_vm1, %v3715_v30, %v3716_v49  ;;  %v9847_v51 = vld [vmem:[#allocation2 + $0xf0] sm:$0xff] }
 0x32f   : > { %v3480_v0 = vmax.f32 %v3444_v40, 0.0  ;;  %v3403_v43 = vmul.f32 %v7660_v24, %v9528_v46  ;;  %4147 = vmatprep.mubr.f32.mxu1 %v9825_v56  ;;  %11652 = vst [vmem:[#allocation22_spill] sm:$0xff] %v9842_v37  ;;  %v3718_v40 = vrot.slane %v9834_v36, 1 }
 0x330   : > { %v3479_v55 = vmax.f32 %v3443_v35, 0.0  ;;  %v3402_v21 = vmul.f32 %v7661_v22, %v9528_v46  ;;  %v7115_v41 = vpop.f32.mrb[34].mxu0  ;;  %7431 = vmatpush3.bf16.msra.mxu1 %v7428_v54 }
 0x331   : > { %3516 = vst [vmem:[#allocation2 + $0x171] sm:$0xff] %v3480_v0  ;;  %v3446_v44 = vadd.f32 %v9533_v47, %v3403_v43  ;;  %v7662_v39 = vadd.f32 %v7115_v41, %v9523_v45  ;;  %v3318_v8 = vpop.f32.mrb[35].mxu0  ;;  %7433 = vmatprep.subr.bf16.mxu1 %v7432_v9  ;;  %v9849_v45 = vld [vmem:[#allocation2 + $0xf8] sm:$0xff]  ;;  %v11653_v0 = vmov 0.0|0.0   ;;  %v9855_v30 = vsel %vm423_vm1, %v3716_v49, %v3718_v40  ;;  %v9869_v41 = vld [vmem:[#allocation2 + $0x108] sm:$0xff] }
 0x332   : > { %3515 = vst [vmem:[#allocation2 + $0x169] sm:$0xff] %v3479_v55  ;;  %v3445_v26 = vadd.f32 %v9533_v47, %v3402_v21  ;;  %4148 = vmatmul.mubr.f32.gmra.mrb[48].mxu1 %v9776_v58  ;;  %11654 = vst [vmem:[#allocation25_spill] sm:$0xff] %v9855_v30  ;;  %v3721_v43 = vrot.slane %v9849_v45, 1  ;;  %v9860_v21 = vld [vmem:[#allocation2 + $0x100] sm:$0x3]  ;;  %v3725_v8 = vrot.slane %v9869_v41, 1 }
 0x333   : > { %v3482_v24 = vmax.f32 %v3446_v44, 0.0  ;;  %v3405_v54 = vmul.f32 %v7662_v39, %v9528_v46  ;;  %4152 = vmatprep.mubr.f32.mxu1 %v9842_v37  ;;  %v3720_v46 = vrot.slane %v9847_v51, 1  ;;  %v3723_v49 = vrot.slane %v9860_v21, 1  ;;  %v9871_v44 = vld [vmem:[#allocation2 + $0x110] sm:$0xff]  ;;  %v9880_v40 = vld [vmem:[#allocation2 + $0x118] sm:$0x3] }
 0x334   : > { %v3481_v35 = vmax.f32 %v3445_v26, 0.0  ;;  %7435 = vmatpush3.bf16.msra.mxu1 %v7432_v9  ;;  %v11655_v9 = vmov 0.0   ;;  %v3726_v26 = vrot.slane %v9871_v44, 1 }
 0x335   : > { %3518 = vst [vmem:[#allocation2 + $0x189] sm:$0xff] %v3482_v24  ;;  %v3448_v22 = vadd.f32 %v9533_v47, %v3405_v54  ;;  %7436 = vmatprep.subr.bf16.mxu1 %v11653_v0  ;;  %v9865_v47 = vsel %vm423_vm1, %v3720_v46, %v3721_v43  ;;  %v9875_v39 = vsel %vm423_vm1, %v3721_v43, %v3723_v49  ;;  %v3728_v54 = vrot.slane %v9880_v40, 1 }
 0x336   : > { %3517 = vst [vmem:[#allocation2 + $0x181] sm:$0xff] %v3481_v35  ;;  %4153 = vmatmul.mubr.f32.gmra.mrb[50].mxu1 %v9817_v33  ;;  %11656 = vst [vmem:[#allocation29_spill] sm:$0xff] %v9865_v47  ;;  %v9884_v24 = vsel %vm423_vm1, %v3725_v8, %v3726_v26  ;;  %v9888_v35 = vld [vmem:[#allocation2 + $0x120] sm:$0xff] }
 0x337   : > { %v3484_v55 = vmax.f32 %v3448_v22, 0.0  ;;  %4157 = vmatprep.mubr.f32.mxu1 %v9855_v30  ;;  %11657 = vst [vmem:[#allocation30_spill] sm:$0xff] %v9875_v39  ;;  %11658 = vst [vmem:[#allocation33_spill] sm:$0xff] %v9884_v24  ;;  %v9890_v22 = vld [vmem:[#allocation2 + $0x128] sm:$0xff]  ;;  %v9894_v46 = vsel %vm423_vm1, %v3726_v26, %v3728_v54  ;;  %v3730_v43 = vrot.slane %v9888_v35, 1  ;;  %v9909_v26 = vld [vmem:[#allocation2 + $0x140] sm:$0xff] }
 0x338   : > { %11659 = vst [vmem:[#allocation48_spill] sm:$0xff] %v9894_v46  ;;  %v9926_v30 = vld [vmem:[#allocation2 + $0x150] sm:$0xff] }
 0x339   : > { %3520 = vst [vmem:[#allocation2 + $0x1a1] sm:$0xff] %v3484_v55  ;;  %v3731_v55 = vrot.slane %v9890_v22, 1  ;;  %v9945_v28 = vld [vmem:[#allocation2 + $0x168] sm:$0xff] }
 0x33a   : > { %3567 = vst [vmem:[#allocation2 + $0x1a8] sm:$0x3] %v11655_v9  ;;  %4158 = vmatmul.mubr.f32.gmra.mrb[52].mxu1 %v9819_v42  ;;  %v9899_v9 = vld [vmem:[#allocation2 + $0x130] sm:$0x3] }
 0x33b   : > { %4162 = vmatprep.mubr.f32.mxu1 %v9865_v47  ;;  %v9903_v49 = vsel %vm423_vm1, %v3730_v43, %v3731_v55  ;;  %v3733_v8 = vrot.slane %v9899_v9, 1  ;;  %v9918_v43 = vld [vmem:[#allocation2 + $0x148] sm:$0x3] }
 0x33c   : > { %11660 = vst [vmem:[#allocation50_spill] sm:$0xff] %v9903_v49  ;;  %v3738_v47 = vrot.slane %v9918_v43, 1 }
 0x33d   : > { %v9913_v54 = vsel %vm423_vm1, %v3731_v55, %v3733_v8  ;;  %v9928_v55 = vld [vmem:[#allocation2 + $0x158] sm:$0xff]  ;;  %v9964_v31 = vld [vmem:[#allocation2 + $0x180] sm:$0xff] }
 0x33e   : > { %4163 = vmatmul.mubr.f32.gmra.mrb[54].mxu1 %v9847_v51  ;;  %11661 = vst [vmem:[#allocation51_spill] sm:$0xff] %v9913_v54  ;;  %v3741_v37 = vrot.slane %v9928_v55, 1 }
 0x33f   : > { %4167 = vmatprep.mubr.f32.mxu1 %v9875_v39  ;;  %v3736_v39 = vrot.slane %v9909_v26, 1 }
 0x341   : > { %v9932_v8 = vsel %vm423_vm1, %v3736_v39, %v3738_v47  ;;  %v9947_v47 = vld [vmem:[#allocation2 + $0x170] sm:$0xff] }
 0x342   : > { %4168 = vmatmul.mubr.f32.gmra.mrb[56].mxu1 %v9849_v45  ;;  %11663 = vst [vmem:[#allocation53_spill] sm:$0xff] %v9932_v8  ;;  %v3746_v29 = vrot.slane %v9947_v47, 1 }
 0x343   : > { %4172 = vmatprep.mubr.f32.mxu1 %v9884_v24  ;;  %v9907_v24 = vld [vmem:[#allocation2 + $0x138] sm:$0xff] }
 0x346   : > { %4173 = vmatmul.mubr.f32.gmra.mrb[58].mxu1 %v9869_v41 }
 0x347   : > { %4177 = vmatprep.mubr.f32.mxu1 %v9894_v46  ;;  %v3735_v46 = vrot.slane %v9907_v24, 1 }
 0x34a   : > { %4178 = vmatmul.mubr.f32.gmra.mrb[60].mxu1 %v9871_v44 }
 0x34b   : > { %4182 = vmatprep.mubr.f32.mxu1 %v9903_v49  ;;  %v9922_v49 = vsel %vm423_vm1, %v3735_v46, %v3736_v39  ;;  %v9937_v46 = vld [vmem:[#allocation2 + $0x160] sm:$0x3] }
 0x34c   : > { %11662 = vst [vmem:[#allocation52_spill] sm:$0xff] %v9922_v49  ;;  %v3743_v56 = vrot.slane %v9937_v46, 1 }
 0x34e   : > { %4183 = vmatmul.mubr.f32.gmra.mrb[62].mxu1 %v9888_v35  ;;  %v9951_v39 = vsel %vm423_vm1, %v3741_v37, %v3743_v56  ;;  %v9966_v56 = vld [vmem:[#allocation2 + $0x188] sm:$0xff] }
 0x34f   : > { %4187 = vmatprep.mubr.f32.mxu1 %v9913_v54  ;;  %v3740_v54 = vrot.slane %v9926_v30, 1  ;;  %11665 = vst [vmem:[#allocation55_spill] sm:$0xff] %v9951_v39  ;;  %v3946_v23 = vrot.slane %v9966_v56, 1 }
 0x352   : > { %4188 = vmatmul.mubr.f32.gmra.mrb[64].mxu1 %v9890_v22 }
 0x353   : > { %4192 = vmatprep.mubr.f32.mxu1 %v9922_v49  ;;  %v9941_v49 = vsel %vm423_vm1, %v3740_v54, %v3741_v37  ;;  %v9956_v54 = vld [vmem:[#allocation2 + $0x178] sm:$0x3] }
 0x354   : > { %11664 = vst [vmem:[#allocation54_spill] sm:$0xff] %v9941_v49  ;;  %v3748_v27 = vrot.slane %v9956_v54, 1 }
 0x356   : > { %4193 = vmatmul.mubr.f32.gmra.mrb[66].mxu1 %v9907_v24  ;;  %v9970_v37 = vsel %vm423_vm1, %v3746_v29, %v3748_v27 }
 0x357   : > { %4197 = vmatprep.mubr.f32.mxu1 %v9932_v8  ;;  %v3745_v8 = vrot.slane %v9945_v28, 1  ;;  %11667 = vst [vmem:[#allocation57_spill] sm:$0xff] %v9970_v37 }
 0x35a   : > { %4198 = vmatmul.mubr.f32.gmra.mrb[68].mxu1 %v9909_v26 }
 0x35b   : > { %4202 = vmatprep.mubr.f32.mxu1 %v9941_v49  ;;  %v9960_v49 = vsel %vm423_vm1, %v3745_v8, %v3746_v29  ;;  %v9975_v8 = vld [vmem:[#allocation2 + $0x190] sm:$0x3]  ;;  %v3787_v29 = vrot.slane %v9567_v52, 2  ;;  %v3792_v52 = vrot.slane %v9587_v48, 2 }
 0x35c   : > { %11666 = vst [vmem:[#allocation56_spill] sm:$0xff] %v9960_v49  ;;  %v3948_v12 = vrot.slane %v9975_v8, 1 }
 0x35e   : > { %4203 = vmatmul.mubr.f32.gmra.mrb[70].mxu1 %v9926_v30  ;;  %v9985_v27 = vsel %vm423_vm1, %v3946_v23, %v3948_v12 }
 0x35f   : > { %4207 = vmatprep.mubr.f32.mxu1 %v9951_v39  ;;  %v3945_v39 = vrot.slane %v9964_v31, 1  ;;  %11669 = vst [vmem:[#allocation34_spill] sm:$0xff] %v9985_v27 }
 0x362   : > { %4208 = vmatmul.mubr.f32.gmra.mrb[72].mxu1 %v9928_v55 }
 0x363   : > { %4212 = vmatprep.mubr.f32.mxu1 %v9960_v49  ;;  %v9979_v49 = vsel %vm423_vm1, %v3945_v39, %v3946_v23  ;;  %v3894_v39 = vld [vmem:[%s11297_s4] sm:$0xff] }
 0x364   : > { %11668 = vst [vmem:[#allocation26_spill] sm:$0xff] %v9979_v49  ;;  %v7437_v23 = vpack.c.bf16 %v3895_v18, %v3894_v39  ;;  %v3798_v18 = vrot.slane %v9612_v6, 2 }
 0x366   : > { %4213 = vmatmul.mubr.f32.gmra.mrb[74].mxu1 %v9945_v28 }
 0x367   : > { %4217 = vmatprep.mubr.f32.mxu1 %v9970_v37  ;;  %v3788_v37 = vrot.slane %v9569_v19, 2  ;;  %v3793_v19 = vrot.slane %v9589_v53, 2  ;;  %v3797_v53 = vrot.slane %v9610_v15, 2  ;;  %v3800_v15 = vrot.slane %v9621_v32, 2  ;;  %v3901_v32 = vld [vmem:[%s11297_s4 + $0x38] sm:$0xff] }
 0x369   : > { %v9999_v12 = vsel %vm1156_vm3, %v3787_v29, %v3788_v37  ;;  %v3795_v29 = vrot.slane %v9598_v62, 2  ;;  %v10016_v48 = vsel %vm1156_vm3, %v3792_v52, %v3793_v19  ;;  %v3899_v62 = vld [vmem:[%s11297_s4 + $0x28] sm:$0xff]  ;;  %v10034_v6 = vsel %vm1156_vm3, %v3797_v53, %v3798_v18 }
 0x36a   : > { %4218 = vmatmul.mubr.f32.gmra.mrb[76].mxu1 %v9947_v47  ;;  %v3803_v52 = vrot.slane %v9657_v7, 2  ;;  %v3808_v53 = vrot.slane %v9648_v60, 2 }
 0x36b   : > { %4222 = vmatprep.mubr.f32.mxu1 %v9979_v49  ;;  %v3790_v49 = vrot.slane %v9563_v10, 2  ;;  %v3897_v10 = vld [vmem:[%s11297_s4 + $0x18] sm:$0xff] }
 0x36d   : > { %v10011_v11 = vsel %vm1156_vm3, %v3788_v37, %v3790_v49  ;;  %v3898_v49 = vld [vmem:[%s11297_s4 + $0x20] sm:$0xff]  ;;  %v10029_v37 = vsel %vm1156_vm3, %v3793_v19, %v3795_v29  ;;  %v3900_v19 = vld [vmem:[%s11297_s4 + $0x30] sm:$0xff]  ;;  %v3807_v29 = vrot.slane %v9646_v50, 2  ;;  %v3810_v50 = vrot.slane %v9636_v14, 2  ;;  %v3905_v14 = vld [vmem:[%s11297_s4 + $0x58] sm:$0xff] }
 0x36e   : > { %4223 = vmatmul.mubr.f32.gmra.mrb[78].mxu1 %v9964_v31 }
 0x36f   : > { %4227 = vmatprep.mubr.f32.mxu1 %v9985_v27  ;;  %v3896_v27 = vld [vmem:[%s11297_s4 + $0x10] sm:$0xff]  ;;  %v10070_v60 = vsel %vm1156_vm3, %v3807_v29, %v3808_v53  ;;  %v3906_v29 = vld [vmem:[%s11297_s4 + $0x60] sm:$0xff] }
 0x370   : > { %v7440_v39 = vpack.c.bf16 %v3897_v10, %v3896_v27  ;;  %v3802_v27 = vrot.slane %v9655_v25, 2  ;;  %v10047_v10 = vsel %vm1156_vm3, %v3798_v18, %v3800_v15  ;;  %v3805_v25 = vrot.slane %v9669_v3, 2  ;;  %v3902_v18 = vld [vmem:[%s11297_s4 + $0x40] sm:$0xff]  ;;  %v3903_v3 = vld [vmem:[%s11297_s4 + $0x48] sm:$0xff] }
 0x371   : > { %v3813_v15 = vrot.slane %v9681_v16, 2 }
 0x372   : > { %4228 = vmatmul.mubr.f32.gmra.mrb[80].mxu1 %v9966_v56  ;;  %v10052_v7 = vsel %vm1156_vm3, %v3802_v27, %v3803_v52  ;;  %v7449_v27 = vpack.c.bf16 %v3903_v3, %v3902_v18  ;;  %v3823_v18 = vrot.slane %v9776_v58, 2 }
 0x373   : > { %7148 = vmatprep.mubr.f32.mxu1 %v9999_v12 }
 0x376   : > { %7149 = vmatmul.mubr.f32.vlgmr.msra.gmra.mrb[82].mxu1 %v10011_v11 }
 0x377   : > { %7438 = vmatpush1.bf16.msra.mxu1 %v7437_v23  ;;  %7151 = vmatprep.mubr.f32.mxu1 %v10016_v48  ;;  %v7443_v23 = vpack.c.bf16 %v3899_v62, %v3898_v49  ;;  %v10065_v49 = vsel %vm1156_vm3, %v3803_v52, %v3805_v25  ;;  %v3812_v62 = vrot.slane %v9679_v13, 2  ;;  %v3904_v52 = vld [vmem:[%s11297_s4 + $0x50] sm:$0xff]  ;;  %v3815_v13 = vrot.slane %v9692_v57, 2  ;;  %v3907_v57 = vld [vmem:[%s11297_s4 + $0x68] sm:$0xff] }
 0x378   : > { %7439 = vmatprep.subr.bf16.mxu1 %v11653_v0  ;;  %v7452_v25 = vpack.c.bf16 %v3905_v14, %v3904_v52  ;;  %v7455_v3 = vpack.c.bf16 %v3907_v57, %v3906_v29  ;;  %v3827_v52 = vrot.slane %v9817_v33, 2  ;;  %v3828_v14 = vrot.slane %v9819_v42, 2 }
 0x379   : > { %v10088_v16 = vsel %vm1156_vm3, %v3812_v62, %v3813_v15  ;;  %v3832_v57 = vrot.slane %v9847_v51, 2 }
 0x37a   : > { %7152 = vmatmul.mubr.f32.gmra.mrb[84].mxu1 %v10029_v37  ;;  %v10142_v29 = vsel %vm1156_vm3, %v3827_v52, %v3828_v14  ;;  %v3838_v52 = vrot.slane %v9871_v44, 2 }
 0x37b   : > { %7441 = vmatpush1.bf16.msra.mxu1 %v7440_v39  ;;  %7154 = vmatprep.mubr.f32.mxu1 %v10034_v6  ;;  %v7446_v39 = vpack.c.bf16 %v3901_v32, %v3900_v19  ;;  %v3817_v19 = vrot.slane %v9725_v4, 2  ;;  %v3818_v32 = vrot.slane %v9727_v61, 2  ;;  %v3820_v4 = vrot.slane %v9744_v17, 2  ;;  %v3909_v17 = vld [vmem:[%s11297_s4 + $0x78] sm:$0xff] }
 0x37c   : > { %7442 = vmatprep.subr.bf16.mxu1 %v11653_v0 }
 0x37d   : > { %v10106_v61 = vsel %vm1156_vm3, %v3817_v19, %v3818_v32  ;;  %v10119_v62 = vsel %vm1156_vm3, %v3818_v32, %v3820_v4  ;;  %v3910_v19 = vld [vmem:[%s11297_s4 + $0x80] sm:$0xff]  ;;  %v3833_v4 = vrot.slane %v9849_v45, 2 }
 0x37e   : > { %7155 = vmatmul.mubr.f32.gmra.mrb[86].mxu1 %v10047_v10 }
 0x37f   : > { %7444 = vmatpush1.bf16.msra.mxu1 %v7443_v23  ;;  %7157 = vmatprep.mubr.f32.mxu1 %v10052_v7  ;;  %v10083_v23 = vsel %vm1156_vm3, %v3808_v53, %v3810_v50  ;;  %v10101_v53 = vsel %vm1156_vm3, %v3813_v15, %v3815_v13  ;;  %v3908_v50 = vld [vmem:[%s11297_s4 + $0x70] sm:$0xff]  ;;  %v3825_v15 = vrot.slane %v9789_v20, 2  ;;  %v3911_v20 = vld [vmem:[%s11297_s4 + $0x88] sm:$0xff] }
 0x380   : > { %7445 = vmatprep.subr.bf16.mxu1 %v11653_v0  ;;  %11670 = vst [vmem:[#allocation5_spill] sm:$0xff] %v10083_v23  ;;  %v7458_v13 = vpack.c.bf16 %v3909_v17, %v3908_v50  ;;  %v3835_v50 = vrot.slane %v9860_v21, 2  ;;  %v10160_v17 = vsel %vm1156_vm3, %v3832_v57, %v3833_v4  ;;  %v3915_v21 = vld [vmem:[%s11297_s4 + $0xa8] sm:$0xff]  ;;  %v3842_v57 = vrot.slane %v9888_v35, 2 }
 0x381   : > { %v10137_v32 = vsel %vm1156_vm3, %v3823_v18, %v3825_v15  ;;  %11671 = vst [vmem:[#allocation6_spill] sm:$0xff] %v10160_v17  ;;  %v3837_v15 = vrot.slane %v9869_v41, 2 }
 0x382   : > { %7158 = vmatmul.mubr.f32.gmra.mrb[88].mxu1 %v10065_v49 }
 0x383   : > { %7447 = vmatpush1.bf16.msra.mxu1 %v7446_v39  ;;  %7160 = vmatprep.mubr.f32.mxu1 %v10070_v60  ;;  %v3822_v39 = vrot.slane %v9774_v38, 2 }
 0x384   : > { %7448 = vmatprep.subr.bf16.mxu1 %v11653_v0 }
 0x386   : > { %7161 = vmatmul.mubr.f32.gmra.mrb[90].mxu1 %v10083_v23 }
 0x387   : > { %7450 = vmatpush1.bf16.msra.mxu1 %v7449_v27  ;;  %7163 = vmatprep.mubr.f32.mxu1 %v10088_v16  ;;  %v10124_v27 = vsel %vm1156_vm3, %v3822_v39, %v3823_v18  ;;  %v7461_v39 = vpack.c.bf16 %v3911_v20, %v3910_v19  ;;  %v3912_v18 = vld [vmem:[%s11297_s4 + $0x90] sm:$0xff]  ;;  %v10173_v19 = vsel %vm1156_vm3, %v3833_v4, %v3835_v50  ;;  %v3840_v20 = vrot.slane %v9880_v40, 2  ;;  %v3917_v40 = vld [vmem:[%s11297_s4 + $0xb8] sm:$0xff] }
 0x388   : > { %7451 = vmatprep.subr.bf16.mxu1 %v11653_v0  ;;  %11672 = vst [vmem:[#allocation7_spill] sm:$0xff] %v10173_v19  ;;  %v3916_v4 = vld [vmem:[%s11297_s4 + $0xb0] sm:$0xff]  ;;  %v3845_v50 = vrot.slane %v9899_v9, 2  ;;  %v3919_v9 = vld [vmem:[%s11297_s4 + $0xc8] sm:$0xff] }
 0x38a   : > { %7164 = vmatmul.mubr.f32.gmra.mrb[92].mxu1 %v10101_v53 }
 0x38b   : > { %7453 = vmatpush1.bf16.msra.mxu1 %v7452_v25  ;;  %7166 = vmatprep.mubr.f32.mxu1 %v10106_v61  ;;  %v3830_v25 = vrot.slane %v9834_v36, 2  ;;  %v3913_v36 = vld [vmem:[%s11297_s4 + $0x98] sm:$0xff] }
 0x38c   : > { %7454 = vmatprep.subr.bf16.mxu1 %v11653_v0 }
 0x38e   : > { %7167 = vmatmul.mubr.f32.gmra.mrb[94].mxu1 %v10119_v62 }
 0x38f   : > { %7456 = vmatpush1.bf16.msra.mxu1 %v7455_v3  ;;  %7169 = vmatprep.mubr.f32.mxu1 %v10124_v27  ;;  %v10155_v3 = vsel %vm1156_vm3, %v3828_v14, %v3830_v25  ;;  %v3914_v14 = vld [vmem:[%s11297_s4 + $0xa0] sm:$0xff]  ;;  %v10178_v25 = vsel %vm1156_vm3, %v3837_v15, %v3838_v52 }
 0x390   : > { %7457 = vmatprep.subr.bf16.mxu1 %v11653_v0  ;;  %11673 = vst [vmem:[#allocation8_spill] sm:$0xff] %v10178_v25 }
 0x392   : > { %7170 = vmatmul.mubr.f32.gmra.mrb[96].mxu1 %v10137_v32 }
 0x393   : > { %7459 = vmatpush1.bf16.msra.mxu1 %v7458_v13  ;;  %7172 = vmatprep.mubr.f32.mxu1 %v10142_v29  ;;  %v7464_v13 = vpack.c.bf16 %v3913_v36, %v3912_v18  ;;  %v7467_v18 = vpack.c.bf16 %v3915_v21, %v3914_v14  ;;  %v10191_v36 = vsel %vm1156_vm3, %v3838_v52, %v3840_v20  ;;  %v3848_v14 = vrot.slane %v9909_v26, 2  ;;  %v3918_v52 = vld [vmem:[%s11297_s4 + $0xc0] sm:$0xff] }
 0x394   : > { %7460 = vmatprep.subr.bf16.mxu1 %v11653_v0  ;;  %11674 = vst [vmem:[#allocation9_spill] sm:$0xff] %v10191_v36  ;;  %v7470_v21 = vpack.c.bf16 %v3917_v40, %v3916_v4  ;;  %v3852_v4 = vrot.slane %v9926_v30, 2  ;;  %v3853_v40 = vrot.slane %v9928_v55, 2 }
 0x396   : > { %7173 = vmatmul.mubr.f32.gmra.mrb[98].mxu1 %v10155_v3 }
 0x397   : > { %7462 = vmatpush1.bf16.msra.mxu1 %v7461_v39  ;;  %7175 = vmatprep.mubr.f32.mxu1 %v10160_v17  ;;  %v3843_v39 = vrot.slane %v9890_v22, 2 }
 0x398   : > { %7463 = vmatprep.subr.bf16.mxu1 %v11653_v0 }
 0x399   : > { %v10196_v15 = vsel %vm1156_vm3, %v3842_v57, %v3843_v39  ;;  %v10209_v20 = vsel %vm1156_vm3, %v3843_v39, %v3845_v50  ;;  %v3850_v57 = vrot.slane %v9918_v43, 2  ;;  %v3920_v39 = vld [vmem:[%s11297_s4 + $0xd0] sm:$0xff]  ;;  %v3921_v43 = vld [vmem:[%s11297_s4 + $0xd8] sm:$0xff] }
 0x39a   : > { %7176 = vmatmul.mubr.f32.gmra.mrb[100].mxu1 %v10173_v19  ;;  %11675 = vst [vmem:[#allocation10_spill] sm:$0xff] %v10196_v15  ;;  %11676 = vst [vmem:[#allocation11_spill] sm:$0xff] %v10209_v20 }
 0x39b   : > { %7465 = vmatpush1.bf16.msra.mxu1 %v7464_v13  ;;  %7178 = vmatprep.mubr.f32.mxu1 %v10178_v25  ;;  %v3847_v13 = vrot.slane %v9907_v24, 2  ;;  %v10227_v50 = vsel %vm1156_vm3, %v3848_v14, %v3850_v57 }
 0x39c   : > { %7466 = vmatprep.subr.bf16.mxu1 %v11653_v0  ;;  %11678 = vst [vmem:[#allocation13_spill] sm:$0xff] %v10227_v50 }
 0x39e   : > { %7179 = vmatmul.mubr.f32.gmra.mrb[102].mxu1 %v10191_v36 }
 0x39f   : > { %7468 = vmatpush1.bf16.msra.mxu1 %v7467_v18  ;;  %7181 = vmatprep.mubr.f32.mxu1 %v10196_v15  ;;  %v10214_v18 = vsel %vm1156_vm3, %v3847_v13, %v3848_v14  ;;  %v7473_v15 = vpack.c.bf16 %v3919_v9, %v3918_v52  ;;  %v3855_v13 = vrot.slane %v9937_v46, 2  ;;  %v3857_v52 = vrot.slane %v9945_v28, 2  ;;  %v3922_v14 = vld [vmem:[%s11297_s4 + $0xe0] sm:$0xff]  ;;  %v3923_v46 = vld [vmem:[%s11297_s4 + $0xe8] sm:$0xff] }
 0x3a0   : > { %7469 = vmatprep.subr.bf16.mxu1 %v11653_v0  ;;  %11677 = vst [vmem:[#allocation12_spill] sm:$0xff] %v10214_v18  ;;  %v3858_v9 = vrot.slane %v9947_v47, 2 }
 0x3a1   : > { %v10245_v57 = vsel %vm1156_vm3, %v3853_v40, %v3855_v13  ;;  %v10262_v13 = vld [vmem:[#allocation2] sm:$0xff] }
 0x3a2   : > { %7182 = vmatmul.mubr.f32.gmra.mrb[104].mxu1 %v10209_v20  ;;  %11680 = vst [vmem:[#allocation15_spill] sm:$0xff] %v10245_v57 }
 0x3a3   : > { %7471 = vmatpush1.bf16.msra.mxu1 %v7470_v21  ;;  %7184 = vmatprep.mubr.f32.mxu1 %v10214_v18  ;;  %v10232_v21 = vsel %vm1156_vm3, %v3852_v4, %v3853_v40  ;;  %v7476_v18 = vpack.c.bf16 %v3921_v43, %v3920_v39  ;;  %v3860_v4 = vrot.slane %v9956_v54, 2  ;;  %v3952_v39 = vrot.slane %v9964_v31, 2  ;;  %v3924_v40 = vld [vmem:[%s11297_s4 + $0xf0] sm:$0xff]  ;;  %v3925_v54 = vld [vmem:[%s11297_s4 + $0xf8] sm:$0xff] }
 0x3a4   : > { %7472 = vmatprep.subr.bf16.mxu1 %v11653_v0  ;;  %11679 = vst [vmem:[#allocation14_spill] sm:$0xff] %v10232_v21  ;;  %v3953_v43 = vrot.slane %v9966_v56, 2  ;;  %v3670_v31 = vrot.slane %v10262_v13, 1 }
 0x3a5   : > { %v10266_v56 = vsel %vm1156_vm3, %v3858_v9, %v3860_v4 }
 0x3a6   : > { %7185 = vmatmul.mubr.f32.gmra.mrb[106].mxu1 %v10227_v50  ;;  %11682 = vst [vmem:[#allocation17_spill] sm:$0xff] %v10266_v56  ;;  %v3928_v50 = vld [vmem:[%s11297_s4 + $0x110] sm:$0xff] }
 0x3a7   : > { %7474 = vmatpush1.bf16.msra.mxu1 %v7473_v15  ;;  %7187 = vmatprep.mubr.f32.mxu1 %v10232_v21  ;;  %v10250_v15 = vsel %vm1156_vm3, %v3857_v52, %v3858_v9  ;;  %v7479_v21 = vpack.c.bf16 %v3923_v46, %v3922_v14  ;;  %v3926_v52 = vld [vmem:[%s11297_s4 + $0x100] sm:$0xff]  ;;  %v3927_v14 = vld [vmem:[%s11297_s4 + $0x108] sm:$0xff]  ;;  %v10275_v46 = vld [vmem:[#allocation2 + $0x10] sm:$0x3]  ;;  %v7482_v9 = vpack.c.bf16 %v3925_v54, %v3924_v40 }
 0x3a8   : > { %7475 = vmatprep.subr.bf16.mxu1 %v11653_v0  ;;  %11681 = vst [vmem:[#allocation16_spill] sm:$0xff] %v10250_v15  ;;  %v3673_v4 = vrot.slane %v10275_v46, 1  ;;  %v3931_v54 = vld [vmem:[%s11297_s4 + $0x128] sm:$0xff] }
 0x3aa   : > { %7188 = vmatmul.mubr.f32.gmra.mrb[108].mxu1 %v10245_v57 }
 0x3ab   : > { %7477 = vmatpush1.bf16.msra.mxu1 %v7476_v18  ;;  %7190 = vmatprep.mubr.f32.mxu1 %v10250_v15  ;;  %v3955_v18 = vrot.slane %v9975_v8, 2  ;;  %v10279_v15 = vsel %vm1156_vm3, %v3952_v39, %v3953_v43  ;;  %v7484_v8 = vpack.c.bf16 %v3927_v14, %v3926_v52  ;;  %v3929_v39 = vld [vmem:[%s11297_s4 + $0x118] sm:$0xff]  ;;  %v3932_v52 = vld [vmem:[%s11297_s4 + $0x130] sm:$0xff]  ;;  %v3934_v14 = vld [vmem:[%s11297_s4 + $0x140] sm:$0xff] }
 0x3ac   : > { %7478 = vmatprep.subr.bf16.mxu1 %v11653_v0  ;;  %11683 = vst [vmem:[#allocation19_spill] sm:$0xff] %v10279_v15  ;;  %v7488_v40 = vpack.c.bf16 %v3929_v39, %v3928_v50  ;;  %v3933_v50 = vld [vmem:[%s11297_s4 + $0x138] sm:$0xff] }
 0x3ad   : > { %v10285_v57 = vsel %vm1156_vm3, %v3953_v43, %v3955_v18  ;;  %v3930_v43 = vld [vmem:[%s11297_s4 + $0x120] sm:$0xff]  ;;  %v3937_v39 = vld [vmem:[%s11297_s4 + $0x158] sm:$0xff] }
 0x3ae   : > { %7191 = vmatmul.mubr.f32.gmra.mrb[110].mxu1 %v10266_v56  ;;  %11684 = vst [vmem:[#allocation20_spill] sm:$0xff] %v10285_v57  ;;  %v7492_v18 = vpack.c.bf16 %v3931_v54, %v3930_v43  ;;  %v3939_v43 = vld [vmem:[%s11297_s4 + $0x168] sm:$0xff]  ;;  %v10330_v54 = vld [vmem:[#allocation2 + $0x30] sm:$0xff] }
 0x3af   : > { %7480 = vmatpush1.bf16.msra.mxu1 %v7479_v21  ;;  %7193 = vmatprep.mubr.f32.mxu1 %v10279_v15  ;;  %v3674_v21 = vsel %vm423_vm1, %v3670_v31, %v3673_v4  ;;  %11685 = vst [vmem:[#allocation23_spill] sm:$0xff] %v10330_v54 }
 0x3b0   : > { %7481 = vmatprep.subr.bf16.mxu1 %v11653_v0 }
 0x3b2   : > { %7194 = vmatmul.mubr.f32.gmra.mrb[112].mxu1 %v10285_v57 }
 0x3b3   : > { %7483 = vmatpush1.bf16.msra.mxu1 %v7482_v9  ;;  %4522 = vmatprep.mubr.f32.mxu1 %v3670_v31  ;;  %v7496_v31 = vpack.c.bf16 %v3933_v50, %v3932_v52  ;;  %v3935_v9 = vld [vmem:[%s11297_s4 + $0x148] sm:$0xff]  ;;  %v3940_v52 = vld [vmem:[%s11297_s4 + $0x170] sm:$0xff]  ;;  %v3941_v50 = vld [vmem:[%s11297_s4 + $0x178] sm:$0xff] }
 0x3b4   : > { %7485 = vmatprep.subr.bf16.mxu1 %v7484_v8  ;;  %v7500_v4 = vpack.c.bf16 %v3935_v9, %v3934_v14  ;;  %v7512_v14 = vpack.c.bf16 %v3941_v50, %v3940_v52  ;;  %v10344_v9 = vld [vmem:[#allocation2 + $0x48] sm:$0xff]  ;;  %v10365_v50 = vld [vmem:[#allocation2 + $0x78] sm:$0xff] }
 0x3b5   : > { %11687 = vst [vmem:[#allocation27_spill] sm:$0xff] %v10344_v9  ;;  %11694 = vst [vmem:[#allocation39_spill] sm:$0xff] %v10365_v50 }
 0x3b6   : > { %4523 = vmatmul.mubr.f32.vlgmr.msra.gmra.mrb[114].mxu1 %v10262_v13 }
 0x3b7   : > { %7487 = vmatpush3.bf16.msra.mxu1 %v7484_v8  ;;  %4527 = vmatprep.mubr.f32.mxu1 %v3674_v21  ;;  %v7946_v8 = vld [vmem:[#allocation2 + $0x18] sm:$0xff]  ;;  %v7947_v21 = vld [vmem:[#allocation2 + $0x20] sm:$0xff] }
 0x3b8   : > { %7489 = vmatprep.subr.bf16.mxu1 %v7488_v40 }
 0x3ba   : > { %4528 = vmatmul.mubr.f32.gmra.mrb[116].mxu1 %v10262_v13 }
 0x3bb   : > { %4532 = vmatprep.mubr.f32.mxu1 %v9579_v34  ;;  %7491 = vmatpush3.bf16.msra.mxu1 %v7488_v40  ;;  %v3936_v34 = vld [vmem:[%s11297_s4 + $0x150] sm:$0xff] }
 0x3bc   : > { %7493 = vmatprep.subr.bf16.mxu1 %v7492_v18  ;;  %v7504_v40 = vpack.c.bf16 %v3937_v39, %v3936_v34  ;;  %v10353_v34 = vld [vmem:[#allocation2 + $0x60] sm:$0xff]  ;;  %v11691_v39 = vld [vmem:[#allocation28_spill] sm:$0xff] }
 0x3bd   : > { %11690 = vst [vmem:[#allocation35_spill] sm:$0xff] %v10353_v34 }
 0x3be   : > { %4533 = vmatmul.mubr.f32.gmra.mrb[118].mxu1 %v7946_v8  ;;  %v10348_v8 = vld [vmem:[#allocation2 + $0x50] sm:$0xff] }
 0x3bf   : > { %4537 = vmatprep.mubr.f32.mxu1 %v9585_v1  ;;  %7495 = vmatpush3.bf16.msra.mxu1 %v7492_v18  ;;  %v3938_v1 = vld [vmem:[%s11297_s4 + $0x160] sm:$0xff]  ;;  %11688 = vst [vmem:[#allocation31_spill] sm:$0xff] %v10348_v8 }
 0x3c0   : > { %7497 = vmatprep.subr.bf16.mxu1 %v7496_v31  ;;  %v7508_v18 = vpack.c.bf16 %v3939_v43, %v3938_v1  ;;  %v10359_v1 = vld [vmem:[#allocation2 + $0x68] sm:$0xff] }
 0x3c1   : > { %11692 = vst [vmem:[#allocation36_spill] sm:$0xff] %v10359_v1  ;;  %v11693_v43 = vld [vmem:[#allocation42_spill] sm:$0xff] }
 0x3c2   : > { %4538 = vmatmul.mubr.f32.gmra.mrb[120].mxu1 %v7947_v21 }
 0x3c3   : > { %4542 = vmatprep.mubr.f32.mxu1 %v9607_v63  ;;  %7499 = vmatpush3.bf16.msra.mxu1 %v7496_v31  ;;  %v10340_v31 = vld [vmem:[#allocation2 + $0x38] sm:$0xff]  ;;  %v11708_v63 = vld [vmem:[#allocation25_spill] sm:$0xff] }
 0x3c4   : > { %7501 = vmatprep.subr.bf16.mxu1 %v7500_v4  ;;  %11686 = vst [vmem:[#allocation24_spill] sm:$0xff] %v10340_v31 }
 0x3c6   : > { %4543 = vmatmul.mubr.f32.gmra.mrb[122].mxu1 %v10330_v54 }
 0x3c7   : > { %4547 = vmatprep.mubr.f32.mxu1 %v9627_v59  ;;  %7503 = vmatpush3.bf16.msra.mxu1 %v7500_v4  ;;  %v11689_v4 = vld [vmem:[#allocation3_spill] sm:$0xff] }
 0x3c8   : > { %7505 = vmatprep.subr.bf16.mxu1 %v7504_v40 }
 0x3ca   : > { %4548 = vmatmul.mubr.f32.gmra.mrb[124].mxu1 %v10340_v31  ;;  %v10401_v31 = vld [vmem:[#allocation2 + $0xb0] sm:$0xff] }
 0x3cb   : > { %4552 = vmatprep.mubr.f32.mxu1 %v9644_v5  ;;  %7507 = vmatpush3.bf16.msra.mxu1 %v7504_v40  ;;  %11704 = vst [vmem:[#allocation59_spill] sm:$0xff] %v10401_v31 }
 0x3cc   : > { %7509 = vmatprep.subr.bf16.mxu1 %v7508_v18 }
 0x3ce   : > { %4553 = vmatmul.mubr.f32.gmra.mrb[126].mxu1 %v10344_v9  ;;  %v10393_v9 = vld [vmem:[#allocation2 + $0xa8] sm:$0xff] }
 0x3cf   : > { %4557 = vmatprep.mubr.f32.mxu1 %v9667_v2  ;;  %7511 = vmatpush3.bf16.msra.mxu1 %v7508_v18  ;;  %11702 = vst [vmem:[#allocation58_spill] sm:$0xff] %v10393_v9 }
 0x3d0   : > { %7513 = vmatprep.subr.bf16.mxu1 %v7512_v14 }
 0x3d2   : > { %4558 = vmatmul.mubr.f32.gmra.mrb[128].mxu1 %v10348_v8  ;;  %v10385_v8 = vld [vmem:[#allocation2 + $0x98] sm:$0xff] }
 0x3d3   : > { %4562 = vmatprep.mubr.f32.mxu1 %v11689_v4  ;;  %7515 = vmatpush3.bf16.msra.mxu1 %v7512_v14  ;;  %v11695_v14 = vld [vmem:[#allocation45_spill] sm:$0xff]  ;;  %11700 = vst [vmem:[#allocation47_spill] sm:$0xff] %v10385_v8 }
 0x3d4   : > { %7516 = vmatprep.subr.bf16.mxu1 %v11653_v0 }
 0x3d6   : > { %4563 = vmatmul.mubr.f32.gmra.mrb[130].mxu1 %v10353_v34  ;;  %v10377_v34 = vld [vmem:[#allocation2 + $0x90] sm:$0xff] }
 0x3d7   : > { %4567 = vmatprep.mubr.f32.mxu1 %v11691_v39  ;;  %v10371_v39 = vld [vmem:[#allocation2 + $0x80] sm:$0xff]  ;;  %11698 = vst [vmem:[#allocation43_spill] sm:$0xff] %v10377_v34 }
 0x3d8   : > { %11696 = vst [vmem:[#allocation40_spill] sm:$0xff] %v10371_v39 }
 0x3d9   : > { %v10357_v21 = vpop.f32.mrb[36].mxu0 }
 0x3da   : > { %v4076_v40 = vpop.f32.mrb[37].mxu0  ;;  %4568 = vmatmul.mubr.f32.gmra.mrb[132].mxu1 %v10359_v1 }
 0x3db   : > { %4572 = vmatprep.mubr.f32.mxu1 %v11693_v43  ;;  %v11697_v40 = vld [vmem:[#allocation4_spill] sm:$0xff] }
 0x3dd   : > { %v10363_v18 = vpop.f32.mrb[38].mxu0 }
 0x3de   : > { %v4081_v52 = vpop.f32.mrb[39].mxu0  ;;  %4573 = vmatmul.mubr.f32.gmra.mrb[134].mxu1 %v10365_v50 }
 0x3df   : > { %4577 = vmatprep.mubr.f32.mxu1 %v11695_v14  ;;  %v11699_v52 = vld [vmem:[#allocation32_spill] sm:$0xff] }
 0x3e1   : > { %v10369_v57 = vpop.f32.mrb[40].mxu0 }
 0x3e2   : > { %v4086_v15 = vpop.f32.mrb[41].mxu0  ;;  %4578 = vmatmul.mubr.f32.gmra.mrb[136].mxu1 %v10371_v39 }
 0x3e3   : > { %4582 = vmatprep.mubr.f32.mxu1 %v11697_v40  ;;  %v11701_v40 = vld [vmem:[#allocation46_spill] sm:$0xff] }
 0x3e5   : > { %v10375_v1 = vpop.f32.mrb[42].mxu0 }
 0x3e6   : > { %v4091_v43 = vpop.f32.mrb[43].mxu0  ;;  %4583 = vmatmul.mubr.f32.gmra.mrb[138].mxu1 %v10377_v34 }
 0x3e7   : > { %4587 = vmatprep.mubr.f32.mxu1 %v11699_v52  ;;  %v11703_v52 = vld [vmem:[#allocation49_spill] sm:$0xff] }
 0x3e9   : > { %v10381_v50 = vpop.f32.mrb[44].mxu0  ;;  %v10383_v14 = vpop.f32.mrb[34].mxu1 }
 0x3ea   : > { %v4096_v15 = vpop.f32.mrb[45].mxu0  ;;  %v4116_v4 = vpop.f32.mrb[35].mxu1  ;;  %4588 = vmatmul.mubr.f32.gmra.mrb[140].mxu1 %v10385_v8 }
 0x3eb   : > { %4592 = vmatprep.mubr.f32.mxu1 %v11701_v40  ;;  %v11705_v40 = vld [vmem:[#allocation18_spill] sm:$0xff] }
 0x3ed   : > { %v10389_v39 = vpop.f32.mrb[46].mxu0  ;;  %v10391_v43 = vpop.f32.mrb[36].mxu1 }
 0x3ee   : > { %v4101_v2 = vpop.f32.mrb[47].mxu0  ;;  %v4121_v34 = vpop.f32.mrb[37].mxu1  ;;  %4593 = vmatmul.mubr.f32.gmra.mrb[142].mxu1 %v10393_v9 }
 0x3ef   : > { %4597 = vmatprep.mubr.f32.mxu1 %v11703_v52  ;;  %v11706_v52 = vld [vmem:[#allocation21_spill] sm:$0xff] }
 0x3f1   : > { %v10397_v15 = vpop.f32.mrb[48].mxu0  ;;  %v10399_v4 = vpop.f32.mrb[38].mxu1 }
 0x3f2   : > { %v4106_v5 = vpop.f32.mrb[49].mxu0  ;;  %v4126_v8 = vpop.f32.mrb[39].mxu1  ;;  %4598 = vmatmul.mubr.f32.gmra.mrb[144].mxu1 %v10401_v31 }
 0x3f3   : > { %4602 = vmatprep.mubr.f32.mxu1 %v11705_v40  ;;  %v11707_v8 = vld [vmem:[#allocation22_spill] sm:$0xff] }
 0x3f5   : > { %v10405_v2 = vpop.f32.mrb[50].mxu0  ;;  %v10407_v34 = vpop.f32.mrb[40].mxu1 }
 0x3f6   : > { %v4111_v59 = vpop.f32.mrb[51].mxu0  ;;  %v4131_v9 = vpop.f32.mrb[41].mxu1  ;;  %4603 = vmatmul.mubr.f32.gmra.mrb[146].mxu1 %v9774_v38  ;;  %v11709_v38 = vld [vmem:[#allocation29_spill] sm:$0xff] }
 0x3f7   : > { %4607 = vmatprep.mubr.f32.mxu1 %v11706_v52 }
 0x3f9   : > { %v10411_v54 = vpop.f32.mrb[42].mxu1 }
 0x3fa   : > { %v4136_v5 = vpop.f32.mrb[43].mxu1  ;;  %4608 = vmatmul.mubr.f32.gmra.mrb[148].mxu1 %v9776_v58  ;;  %v11710_v58 = vld [vmem:[#allocation30_spill] sm:$0xff] }
 0x3fb   : > { %4612 = vmatprep.mubr.f32.mxu1 %v11707_v8 }
 0x3fd   : > { %v10415_v31 = vpop.f32.mrb[44].mxu1 }
 0x3fe   : > { %v4141_v40 = vpop.f32.mrb[45].mxu1  ;;  %4613 = vmatmul.mubr.f32.gmra.mrb[150].mxu1 %v9817_v33  ;;  %v11711_v33 = vld [vmem:[#allocation33_spill] sm:$0xff] }
 0x3ff   : > { %4617 = vmatprep.mubr.f32.mxu1 %v11708_v63 }
 0x401   : > { %v10419_v59 = vpop.f32.mrb[46].mxu1 }
 0x402   : > { %v4146_v9 = vpop.f32.mrb[47].mxu1  ;;  %4618 = vmatmul.mubr.f32.gmra.mrb[152].mxu1 %v9819_v42  ;;  %v11712_v42 = vld [vmem:[#allocation48_spill] sm:$0xff] }
 0x403   : > { %4622 = vmatprep.mubr.f32.mxu1 %v11709_v38 }
 0x405   : > { %v10423_v52 = vpop.f32.mrb[48].mxu1 }
 0x406   : > { %v4151_v5 = vpop.f32.mrb[49].mxu1  ;;  %4623 = vmatmul.mubr.f32.gmra.mrb[154].mxu1 %v9847_v51  ;;  %v11713_v51 = vld [vmem:[#allocation50_spill] sm:$0xff] }
 0x407   : > { %4627 = vmatprep.mubr.f32.mxu1 %v11710_v58 }
 0x409   : > { %v10427_v8 = vpop.f32.mrb[50].mxu1 }
 0x40a   : > { %v4156_v40 = vpop.f32.mrb[51].mxu1  ;;  %4628 = vmatmul.mubr.f32.gmra.mrb[156].mxu1 %v9849_v45  ;;  %v11714_v45 = vld [vmem:[#allocation51_spill] sm:$0xff] }
 0x40b   : > { %4632 = vmatprep.mubr.f32.mxu1 %v11711_v33 }
 0x40d   : > { %v10431_v63 = vpop.f32.mrb[52].mxu1 }
 0x40e   : > { %v4161_v9 = vpop.f32.mrb[53].mxu1  ;;  %4633 = vmatmul.mubr.f32.gmra.mrb[158].mxu1 %v9869_v41  ;;  %v11715_v41 = vld [vmem:[#allocation52_spill] sm:$0xff] }
 0x40f   : > { %4637 = vmatprep.mubr.f32.mxu1 %v11712_v42 }
 0x411   : > { %v10435_v38 = vpop.f32.mrb[54].mxu1 }
 0x412   : > { %v4166_v5 = vpop.f32.mrb[55].mxu1  ;;  %4638 = vmatmul.mubr.f32.gmra.mrb[160].mxu1 %v9871_v44  ;;  %v11716_v44 = vld [vmem:[#allocation53_spill] sm:$0xff] }
 0x413   : > { %4642 = vmatprep.mubr.f32.mxu1 %v11713_v51 }
 0x415   : > { %v10439_v58 = vpop.f32.mrb[56].mxu1 }
 0x416   : > { %v4171_v40 = vpop.f32.mrb[57].mxu1  ;;  %4643 = vmatmul.mubr.f32.gmra.mrb[162].mxu1 %v9888_v35  ;;  %v11717_v35 = vld [vmem:[#allocation54_spill] sm:$0xff] }
 0x417   : > { %4647 = vmatprep.mubr.f32.mxu1 %v11714_v45 }
 0x419   : > { %v10443_v33 = vpop.f32.mrb[58].mxu1 }
 0x41a   : > { %v4176_v9 = vpop.f32.mrb[59].mxu1  ;;  %4648 = vmatmul.mubr.f32.gmra.mrb[164].mxu1 %v9890_v22  ;;  %v11718_v22 = vld [vmem:[#allocation55_spill] sm:$0xff] }
 0x41b   : > { %4652 = vmatprep.mubr.f32.mxu1 %v11715_v41 }
 0x41d   : > { %v10447_v42 = vpop.f32.mrb[60].mxu1 }
 0x41e   : > { %v4181_v5 = vpop.f32.mrb[61].mxu1  ;;  %4653 = vmatmul.mubr.f32.gmra.mrb[166].mxu1 %v9907_v24  ;;  %v11719_v24 = vld [vmem:[#allocation56_spill] sm:$0xff] }
 0x41f   : > { %4657 = vmatprep.mubr.f32.mxu1 %v11716_v44 }
 0x421   : > { %v10451_v51 = vpop.f32.mrb[62].mxu1 }
 0x422   : > { %v4186_v40 = vpop.f32.mrb[63].mxu1  ;;  %4658 = vmatmul.mubr.f32.gmra.mrb[168].mxu1 %v9909_v26 }
 0x423   : > { %4662 = vmatprep.mubr.f32.mxu1 %v11717_v35  ;;  %v10464_v40 = vrot.slane %v10262_v13, 2 }
 0x425   : > { %v10455_v45 = vpop.f32.mrb[64].mxu1  ;;  %11720 = vst [vmem:[#allocation60_spill] sm:$0xff] %v10464_v40 }
 0x426   : > { %v4191_v9 = vpop.f32.mrb[65].mxu1  ;;  %4663 = vmatmul.mubr.f32.gmra.mrb[170].mxu1 %v9926_v30  ;;  %v11721_v30 = vld [vmem:[#allocation57_spill] sm:$0xff] }
 0x427   : > { %4667 = vmatprep.mubr.f32.mxu1 %v11718_v22  ;;  %v3785_v9 = vrot.slane %v10275_v46, 2 }
 0x429   : > { %v10459_v41 = vpop.f32.mrb[66].mxu1 }
 0x42a   : > { %v4196_v5 = vpop.f32.mrb[67].mxu1  ;;  %4668 = vmatmul.mubr.f32.gmra.mrb[172].mxu1 %v9928_v55  ;;  %v6083_v55 = vld [vmem:[%s11297_s4 + $0x308] sm:$0xff] }
 0x42b   : > { %4672 = vmatprep.mubr.f32.mxu1 %v11719_v24  ;;  %v6082_v5 = vld [vmem:[%s11297_s4 + $0x300] sm:$0xff] }
 0x42c   : > { %v7517_v46 = vpack.c.bf16 %v6083_v55, %v6082_v5  ;;  %v6087_v5 = vld [vmem:[%s11297_s4 + $0x328] sm:$0xff] }
 0x42d   : > { %v10466_v26 = vpop.f32.mrb[68].mxu1 }
 0x42e   : > { %v4201_v35 = vpop.f32.mrb[69].mxu1  ;;  %4673 = vmatmul.mubr.f32.gmra.mrb[174].mxu1 %v9945_v28  ;;  %v3786_v28 = vsel %vm1156_vm3, %v10464_v40, %v3785_v9  ;;  %v6086_v9 = vld [vmem:[%s11297_s4 + $0x320] sm:$0xff] }
 0x42f   : > { %4677 = vmatprep.mubr.f32.mxu1 %v11721_v30  ;;  %v6084_v35 = vld [vmem:[%s11297_s4 + $0x310] sm:$0xff]  ;;  %v6085_v30 = vld [vmem:[%s11297_s4 + $0x318] sm:$0xff] }
 0x431   : > { %v10477_v24 = vpop.f32.mrb[70].mxu1 }
 0x432   : > { %v4206_v13 = vpop.f32.mrb[71].mxu1  ;;  %4678 = vmatmul.mubr.f32.gmra.mrb[176].mxu1 %v9947_v47  ;;  %v7520_v47 = vpack.c.bf16 %v6085_v30, %v6084_v35  ;;  %v6089_v30 = vld [vmem:[%s11297_s4 + $0x338] sm:$0xff]  ;;  %v6090_v35 = vld [vmem:[%s11297_s4 + $0x340] sm:$0xff] }
 0x433   : > { %7228 = vmatprep.mubr.f32.mxu1 %v10464_v40 }
 0x435   : > { %v10489_v22 = vpop.f32.mrb[72].mxu1 }
 0x436   : > { %v4211_v44 = vpop.f32.mrb[73].mxu1  ;;  %7229 = vmatmul.mubr.f32.vlgmr.msra.gmra.mrb[178].mxu1 %v3786_v28 }
 0x437   : > { %7518 = vmatpush1.bf16.msra.mxu1 %v7517_v46  ;;  %7231 = vmatprep.mubr.f32.mxu1 %v9999_v12  ;;  %v7523_v12 = vpack.c.bf16 %v6087_v5, %v6086_v9  ;;  %v6088_v44 = vld [vmem:[%s11297_s4 + $0x330] sm:$0xff] }
 0x438   : > { %7519 = vmatprep.subr.bf16.mxu1 %v11653_v0 }
 0x439   : > { %v10499_v55 = vpop.f32.mrb[74].mxu1 }
 0x43a   : > { %v4216_v13 = vpop.f32.mrb[75].mxu1  ;;  %7232 = vmatmul.mubr.f32.gmra.mrb[180].mxu1 %v10011_v11  ;;  %v7526_v11 = vpack.c.bf16 %v6089_v30, %v6088_v44  ;;  %v6093_v44 = vld [vmem:[%s11297_s4 + $0x358] sm:$0xff] }
 0x43b   : > { %7521 = vmatpush1.bf16.msra.mxu1 %v7520_v47  ;;  %7234 = vmatprep.mubr.f32.mxu1 %v10016_v48  ;;  %v6091_v47 = vld [vmem:[%s11297_s4 + $0x348] sm:$0xff] }
 0x43c   : > { %7522 = vmatprep.subr.bf16.mxu1 %v11653_v0  ;;  %v7529_v13 = vpack.c.bf16 %v6091_v47, %v6090_v35  ;;  %v6094_v35 = vld [vmem:[%s11297_s4 + $0x360] sm:$0xff]  ;;  %v6095_v47 = vld [vmem:[%s11297_s4 + $0x368] sm:$0xff] }
 0x43d   : > { %v10510_v28 = vpop.f32.mrb[76].mxu1 }
 0x43e   : > { %v4221_v46 = vpop.f32.mrb[77].mxu1  ;;  %7235 = vmatmul.mubr.f32.gmra.mrb[182].mxu1 %v10029_v37 }
 0x43f   : > { %7524 = vmatpush1.bf16.msra.mxu1 %v7523_v12  ;;  %7237 = vmatprep.mubr.f32.mxu1 %v10034_v6  ;;  %v6092_v12 = vld [vmem:[%s11297_s4 + $0x350] sm:$0xff] }
 0x440   : > { %7525 = vmatprep.subr.bf16.mxu1 %v11653_v0 }
 0x441   : > { %v10521_v9 = vpop.f32.mrb[78].mxu1 }
 0x442   : > { %v4226_v5 = vpop.f32.mrb[79].mxu1  ;;  %7238 = vmatmul.mubr.f32.gmra.mrb[184].mxu1 %v10047_v10 }
 0x443   : > { %7527 = vmatpush1.bf16.msra.mxu1 %v7526_v11  ;;  %7240 = vmatprep.mubr.f32.mxu1 %v10052_v7  ;;  %v7532_v11 = vpack.c.bf16 %v6093_v44, %v6092_v12  ;;  %v7535_v12 = vpack.c.bf16 %v6095_v47, %v6094_v35  ;;  %v6096_v44 = vld [vmem:[%s11297_s4 + $0x370] sm:$0xff]  ;;  %v6098_v47 = vld [vmem:[%s11297_s4 + $0x380] sm:$0xff] }
 0x444   : > { %7528 = vmatprep.subr.bf16.mxu1 %v11653_v0 }
 0x445   : > { %v10532_v30 = vpop.f32.mrb[80].mxu1 }
 0x446   : > { %v4231_v46 = vpop.f32.mrb[81].mxu1  ;;  %7241 = vmatmul.mubr.f32.gmra.mrb[186].mxu1 %v10065_v49 }
 0x447   : > { %7530 = vmatpush1.bf16.msra.mxu1 %v7529_v13  ;;  %7243 = vmatprep.mubr.f32.mxu1 %v10070_v60 }
 0x448   : > { %7531 = vmatprep.subr.bf16.mxu1 %v11653_v0 }
 0x449   : > { %v7150_v5 = vpop.f32.mrb[82].mxu1 }
 0x44a   : > { %v10544_v40 = vadd.f32 %v7150_v5, %v10363_v18  ;;  %v4299_v46 = vpop.f32.mrb[83].mxu1  ;;  %7244 = vmatmul.mubr.f32.gmra.mrb[188].mxu1 %v10083_v23  ;;  %v6097_v18 = vld [vmem:[%s11297_s4 + $0x378] sm:$0xff] }
 0x44b   : > { %v10548_v13 = vadd.f32 %v4299_v46, %v10357_v21  ;;  %7533 = vmatpush1.bf16.msra.mxu1 %v7532_v11  ;;  %7246 = vmatprep.mubr.f32.mxu1 %v10088_v16  ;;  %v7538_v35 = vpack.c.bf16 %v6097_v18, %v6096_v44  ;;  %v6100_v18 = vld [vmem:[%s11297_s4 + $0x390] sm:$0xff] }
 0x44c   : > { %7534 = vmatprep.subr.bf16.mxu1 %v11653_v0 }
 0x44d   : > { %v7153_v5 = vpop.f32.mrb[84].mxu1 }
 0x44e   : > { %v10559_v23 = vadd.f32 %v7153_v5, %v10375_v1  ;;  %v4309_v21 = vpop.f32.mrb[85].mxu1  ;;  %7247 = vmatmul.mubr.f32.gmra.mrb[190].mxu1 %v10101_v53  ;;  %v6099_v1 = vld [vmem:[%s11297_s4 + $0x388] sm:$0xff] }
 0x44f   : > { %v10563_v11 = vadd.f32 %v4309_v21, %v10369_v57  ;;  %7536 = vmatpush1.bf16.msra.mxu1 %v7535_v12  ;;  %7249 = vmatprep.mubr.f32.mxu1 %v10106_v61  ;;  %v7541_v44 = vpack.c.bf16 %v6099_v1, %v6098_v47  ;;  %v6102_v1 = vld [vmem:[%s11297_s4 + $0x3a0] sm:$0xff] }
 0x450   : > { %7537 = vmatprep.subr.bf16.mxu1 %v11653_v0 }
 0x451   : > { %v7156_v46 = vpop.f32.mrb[86].mxu1 }
 0x452   : > { %v10574_v5 = vadd.f32 %v7156_v46, %v10389_v39  ;;  %v4319_v57 = vpop.f32.mrb[87].mxu1  ;;  %7250 = vmatmul.mubr.f32.gmra.mrb[192].mxu1 %v10119_v62  ;;  %v6101_v39 = vld [vmem:[%s11297_s4 + $0x398] sm:$0xff] }
 0x453   : > { %v10578_v12 = vadd.f32 %v4319_v57, %v10381_v50  ;;  %7539 = vmatpush1.bf16.msra.mxu1 %v7538_v35  ;;  %7252 = vmatprep.mubr.f32.mxu1 %v10124_v27  ;;  %v7544_v47 = vpack.c.bf16 %v6101_v39, %v6100_v18  ;;  %v6104_v39 = vld [vmem:[%s11297_s4 + $0x3b0] sm:$0xff] }
 0x454   : > { %7540 = vmatprep.subr.bf16.mxu1 %v11653_v0 }
 0x455   : > { %v7159_v21 = vpop.f32.mrb[88].mxu1 }
 0x456   : > { %v10589_v46 = vadd.f32 %v7159_v21, %v10405_v2  ;;  %v4329_v50 = vpop.f32.mrb[89].mxu1  ;;  %7253 = vmatmul.mubr.f32.gmra.mrb[194].mxu1 %v10137_v32  ;;  %v6103_v2 = vld [vmem:[%s11297_s4 + $0x3a8] sm:$0xff] }
 0x457   : > { %v10593_v35 = vadd.f32 %v4329_v50, %v10397_v15  ;;  %7542 = vmatpush1.bf16.msra.mxu1 %v7541_v44  ;;  %7255 = vmatprep.mubr.f32.mxu1 %v10142_v29  ;;  %v7547_v18 = vpack.c.bf16 %v6103_v2, %v6102_v1  ;;  %v6106_v2 = vld [vmem:[%s11297_s4 + $0x3c0] sm:$0xff] }
 0x458   : > { %7543 = vmatprep.subr.bf16.mxu1 %v11653_v0 }
 0x459   : > { %v7162_v57 = vpop.f32.mrb[90].mxu1 }
 0x45a   : > { %v10604_v21 = vadd.f32 %v7162_v57, %v10391_v43  ;;  %v4339_v15 = vpop.f32.mrb[91].mxu1  ;;  %7256 = vmatmul.mubr.f32.gmra.mrb[196].mxu1 %v10155_v3  ;;  %v6105_v43 = vld [vmem:[%s11297_s4 + $0x3b8] sm:$0xff] }
 0x45b   : > { %v10608_v44 = vadd.f32 %v4339_v15, %v10383_v14  ;;  %7545 = vmatpush1.bf16.msra.mxu1 %v7544_v47  ;;  %7258 = vmatprep.mubr.f32.mxu1 %v10160_v17  ;;  %v7550_v1 = vpack.c.bf16 %v6105_v43, %v6104_v39  ;;  %v11722_v39 = vld [vmem:[#allocation10_spill] sm:$0xff]  ;;  %v6116_v17 = vld [vmem:[%s11297_s4 + $0x410] sm:$0xff] }
 0x45c   : > { %7546 = vmatprep.subr.bf16.mxu1 %v11653_v0 }
 0x45d   : > { %v7165_v50 = vpop.f32.mrb[92].mxu1 }
 0x45e   : > { %v10619_v57 = vadd.f32 %v7165_v50, %v10407_v34  ;;  %v4349_v14 = vpop.f32.mrb[93].mxu1  ;;  %7259 = vmatmul.mubr.f32.gmra.mrb[198].mxu1 %v10173_v19  ;;  %v6107_v34 = vld [vmem:[%s11297_s4 + $0x3c8] sm:$0xff] }
 0x45f   : > { %v10623_v47 = vadd.f32 %v4349_v14, %v10399_v4  ;;  %7548 = vmatpush1.bf16.msra.mxu1 %v7547_v18  ;;  %7261 = vmatprep.mubr.f32.mxu1 %v10178_v25  ;;  %v7553_v43 = vpack.c.bf16 %v6107_v34, %v6106_v2  ;;  %v6108_v14 = vld [vmem:[%s11297_s4 + $0x3d0] sm:$0xff]  ;;  %v11723_v2 = vld [vmem:[#allocation12_spill] sm:$0xff] }
 0x460   : > { %7549 = vmatprep.subr.bf16.mxu1 %v11653_v0 }
 0x461   : > { %v7168_v15 = vpop.f32.mrb[94].mxu1 }
 0x462   : > { %v10634_v50 = vadd.f32 %v7168_v15, %v10415_v31  ;;  %v4359_v4 = vpop.f32.mrb[95].mxu1  ;;  %7262 = vmatmul.mubr.f32.gmra.mrb[200].mxu1 %v10191_v36  ;;  %v6109_v31 = vld [vmem:[%s11297_s4 + $0x3d8] sm:$0xff] }
 0x463   : > { %v10638_v18 = vadd.f32 %v4359_v4, %v10411_v54  ;;  %7551 = vmatpush1.bf16.msra.mxu1 %v7550_v1  ;;  %7264 = vmatprep.mubr.f32.mxu1 %v11722_v39  ;;  %v7556_v34 = vpack.c.bf16 %v6109_v31, %v6108_v14  ;;  %v6110_v4 = vld [vmem:[%s11297_s4 + $0x3e0] sm:$0xff]  ;;  %v11725_v14 = vld [vmem:[#allocation14_spill] sm:$0xff] }
 0x464   : > { %7552 = vmatprep.subr.bf16.mxu1 %v11653_v0 }
 0x465   : > { %v7171_v15 = vpop.f32.mrb[96].mxu1 }
 0x466   : > { %v10649_v36 = vadd.f32 %v7171_v15, %v10423_v52  ;;  %v4369_v54 = vpop.f32.mrb[97].mxu1  ;;  %7265 = vmatmul.mubr.f32.gmra.mrb[202].mxu1 %v10209_v20  ;;  %v6111_v52 = vld [vmem:[%s11297_s4 + $0x3e8] sm:$0xff] }
 0x467   : > { %v10653_v1 = vadd.f32 %v4369_v54, %v10419_v59  ;;  %7554 = vmatpush1.bf16.msra.mxu1 %v7553_v43  ;;  %7267 = vmatprep.mubr.f32.mxu1 %v11723_v2  ;;  %v11724_v54 = vld [vmem:[#allocation13_spill] sm:$0xff]  ;;  %v7559_v31 = vpack.c.bf16 %v6111_v52, %v6110_v4  ;;  %v6112_v2 = vld [vmem:[%s11297_s4 + $0x3f0] sm:$0xff] }
 0x468   : > { %7555 = vmatprep.subr.bf16.mxu1 %v11653_v0 }
 0x469   : > { %v7174_v15 = vpop.f32.mrb[98].mxu1 }
 0x46a   : > { %v10664_v20 = vadd.f32 %v7174_v15, %v10431_v63  ;;  %v4379_v59 = vpop.f32.mrb[99].mxu1  ;;  %7268 = vmatmul.mubr.f32.gmra.mrb[204].mxu1 %v11724_v54  ;;  %v6113_v63 = vld [vmem:[%s11297_s4 + $0x3f8] sm:$0xff] }
 0x46b   : > { %v10668_v43 = vadd.f32 %v4379_v59, %v10427_v8  ;;  %7557 = vmatpush1.bf16.msra.mxu1 %v7556_v34  ;;  %7270 = vmatprep.mubr.f32.mxu1 %v11725_v14  ;;  %v6114_v8 = vld [vmem:[%s11297_s4 + $0x400] sm:$0xff]  ;;  %v6115_v34 = vld [vmem:[%s11297_s4 + $0x408] sm:$0xff]  ;;  %v11726_v59 = vld [vmem:[#allocation15_spill] sm:$0xff]  ;;  %v7562_v39 = vpack.c.bf16 %v6113_v63, %v6112_v2 }
 0x46c   : > { %7558 = vmatprep.subr.bf16.mxu1 %v11653_v0  ;;  %v11727_v54 = vld [vmem:[#allocation16_spill] sm:$0xff]  ;;  %v7564_v25 = vpack.c.bf16 %v6115_v34, %v6114_v8  ;;  %v6118_v8 = vld [vmem:[%s11297_s4 + $0x420] sm:$0xff] }
 0x46d   : > { %v7177_v15 = vpop.f32.mrb[100].mxu1 }
 0x46e   : > { %v10685_v4 = vadd.f32 %v7177_v15, %v10439_v58  ;;  %v4389_v52 = vpop.f32.mrb[101].mxu1  ;;  %7271 = vmatmul.mubr.f32.gmra.mrb[206].mxu1 %v11726_v59  ;;  %v6117_v58 = vld [vmem:[%s11297_s4 + $0x418] sm:$0xff] }
 0x46f   : > { %v10689_v14 = vadd.f32 %v4389_v52, %v10435_v38  ;;  %7560 = vmatpush1.bf16.msra.mxu1 %v7559_v31  ;;  %7273 = vmatprep.mubr.f32.mxu1 %v11727_v54  ;;  %v7568_v31 = vpack.c.bf16 %v6117_v58, %v6116_v17  ;;  %v11730_v17 = vld [vmem:[#allocation38_spill] sm:$0xff] }
 0x470   : > { %7561 = vmatprep.subr.bf16.mxu1 %v11653_v0  ;;  %v11728_v0 = vld [vmem:[#allocation37_spill] sm:$0xff] }
 0x471   : > { %v7180_v19 = vpop.f32.mrb[102].mxu1 }
 0x472   : > { %v10700_v15 = vadd.f32 %v7180_v19, %v10447_v42  ;;  %v4399_v38 = vpop.f32.mrb[103].mxu1  ;;  %7274 = vmatmul.mubr.f32.gmra.mrb[208].mxu1 %v10266_v56  ;;  %v6119_v19 = vld [vmem:[%s11297_s4 + $0x428] sm:$0xff]  ;;  %v11742_v56 = vld [vmem:[#allocation45_spill] sm:$0xff] }
 0x473   : > { %v10704_v2 = vadd.f32 %v4399_v38, %v10443_v33  ;;  %7563 = vmatpush1.bf16.msra.mxu1 %v7562_v39  ;;  %5038 = vmatprep.mubr.f32.mxu1 %v11728_v0  ;;  %v11729_v33 = vld [vmem:[#allocation23_spill] sm:$0xff]  ;;  %v7572_v52 = vpack.c.bf16 %v6119_v19, %v6118_v8 }
 0x474   : > { %7565 = vmatprep.subr.bf16.mxu1 %v7564_v25  ;;  %v6120_v38 = vld [vmem:[%s11297_s4 + $0x430] sm:$0xff] }
 0x475   : > { %v7183_v63 = vpop.f32.mrb[104].mxu1 }
 0x476   : > { %v10714_v42 = vadd.f32 %v7183_v63, %v10455_v45  ;;  %v4409_v34 = vpop.f32.mrb[105].mxu1  ;;  %5039 = vmatmul.mubr.f32.vlgmr.msra.gmra.mrb[210].mxu1 %v11729_v33  ;;  %v6121_v45 = vld [vmem:[%s11297_s4 + $0x438] sm:$0xff]  ;;  %v6122_v33 = vld [vmem:[%s11297_s4 + $0x440] sm:$0xff] }
 0x477   : > { %v10718_v39 = vadd.f32 %v4409_v34, %v10451_v51  ;;  %7567 = vmatpush3.bf16.msra.mxu1 %v7564_v25  ;;  %5043 = vmatprep.mubr.f32.mxu1 %v11730_v17  ;;  %v11731_v51 = vld [vmem:[#allocation24_spill] sm:$0xff]  ;;  %v11732_v34 = vld [vmem:[#allocation41_spill] sm:$0xff]  ;;  %v7576_v8 = vpack.c.bf16 %v6121_v45, %v6120_v38 }
 0x478   : > { %7569 = vmatprep.subr.bf16.mxu1 %v7568_v31 }
 0x479   : > { %v7186_v58 = vpop.f32.mrb[106].mxu1 }
 0x47a   : > { %v10728_v0 = vadd.f32 %v7186_v58, %v10466_v26  ;;  %v4419_v63 = vpop.f32.mrb[107].mxu1  ;;  %5044 = vmatmul.mubr.f32.gmra.mrb[212].mxu1 %v11731_v51  ;;  %v6123_v26 = vld [vmem:[%s11297_s4 + $0x448] sm:$0xff]  ;;  %v6124_v51 = vld [vmem:[%s11297_s4 + $0x450] sm:$0xff] }
 0x47b   : > { %v10732_v25 = vadd.f32 %v4419_v63, %v10459_v41  ;;  %5048 = vmatprep.mubr.f32.mxu1 %v11732_v34  ;;  %7571 = vmatpush3.bf16.msra.mxu1 %v7568_v31  ;;  %v11733_v41 = vld [vmem:[#allocation27_spill] sm:$0xff]  ;;  %v11734_v31 = vld [vmem:[#allocation44_spill] sm:$0xff]  ;;  %v7580_v38 = vpack.c.bf16 %v6123_v26, %v6122_v33 }
 0x47c   : > { %7573 = vmatprep.subr.bf16.mxu1 %v7572_v52 }
 0x47d   : > { %v7189_v19 = vpop.f32.mrb[108].mxu1 }
 0x47e   : > { %v10742_v17 = vadd.f32 %v7189_v19, %v10489_v22  ;;  %v4429_v58 = vpop.f32.mrb[109].mxu1  ;;  %5049 = vmatmul.mubr.f32.gmra.mrb[214].mxu1 %v11733_v41  ;;  %v6125_v22 = vld [vmem:[%s11297_s4 + $0x458] sm:$0xff]  ;;  %v6126_v41 = vld [vmem:[%s11297_s4 + $0x460] sm:$0xff] }
 0x47f   : > { %v10746_v63 = vadd.f32 %v4429_v58, %v10477_v24  ;;  %5053 = vmatprep.mubr.f32.mxu1 %v11734_v31  ;;  %7575 = vmatpush3.bf16.msra.mxu1 %v7572_v52  ;;  %v11735_v24 = vld [vmem:[#allocation31_spill] sm:$0xff]  ;;  %v7584_v33 = vpack.c.bf16 %v6125_v22, %v6124_v51 }
 0x480   : > { %7577 = vmatprep.subr.bf16.mxu1 %v7576_v8  ;;  %v11736_v52 = vld [vmem:[#allocation3_spill] sm:$0xff] }
 0x481   : > { %v7192_v45 = vpop.f32.mrb[110].mxu1 }
 0x482   : > { %v10756_v34 = vadd.f32 %v7192_v45, %v10510_v28  ;;  %v4439_v19 = vpop.f32.mrb[111].mxu1  ;;  %5054 = vmatmul.mubr.f32.gmra.mrb[216].mxu1 %v11735_v24  ;;  %v6127_v28 = vld [vmem:[%s11297_s4 + $0x468] sm:$0xff]  ;;  %v6128_v24 = vld [vmem:[%s11297_s4 + $0x470] sm:$0xff] }
 0x483   : > { %v10760_v58 = vadd.f32 %v4439_v19, %v10499_v55  ;;  %5058 = vmatprep.mubr.f32.mxu1 %v11736_v52  ;;  %7579 = vmatpush3.bf16.msra.mxu1 %v7576_v8  ;;  %v11737_v55 = vld [vmem:[#allocation35_spill] sm:$0xff]  ;;  %v11738_v8 = vld [vmem:[#allocation28_spill] sm:$0xff]  ;;  %v7588_v51 = vpack.c.bf16 %v6127_v28, %v6126_v41 }
 0x484   : > { %7581 = vmatprep.subr.bf16.mxu1 %v7580_v38 }
 0x485   : > { %v7195_v26 = vpop.f32.mrb[112].mxu1 }
 0x486   : > { %v10770_v31 = vadd.f32 %v7195_v26, %v10532_v30  ;;  %v4449_v45 = vpop.f32.mrb[113].mxu1  ;;  %5059 = vmatmul.mubr.f32.gmra.mrb[218].mxu1 %v11737_v55  ;;  %v6129_v30 = vld [vmem:[%s11297_s4 + $0x478] sm:$0xff] }
 0x487   : > { %v10774_v19 = vadd.f32 %v4449_v45, %v10521_v9  ;;  %5063 = vmatprep.mubr.f32.mxu1 %v11738_v8  ;;  %7583 = vmatpush3.bf16.msra.mxu1 %v7580_v38  ;;  %v11739_v9 = vld [vmem:[#allocation36_spill] sm:$0xff]  ;;  %v11740_v45 = vld [vmem:[#allocation42_spill] sm:$0xff]  ;;  %v7592_v38 = vpack.c.bf16 %v6129_v30, %v6128_v24  ;;  %v11741_v8 = vld [vmem:[#allocation39_spill] sm:$0xff] }
 0x488   : > { %7585 = vmatprep.subr.bf16.mxu1 %v7584_v33 }
 0x489   : > { %v4524_v22 = vpop.f32.mrb[114].mxu1 }
 0x48a   : > { %v10784_v52 = vadd.f32 %v4524_v22, %v10548_v13  ;;  %v4526_v26 = vpop.f32.mrb[115].mxu1  ;;  %5064 = vmatmul.mubr.f32.gmra.mrb[220].mxu1 %v11739_v9  ;;  %v11743_v9 = vld [vmem:[#allocation40_spill] sm:$0xff] }
 0x48b   : > { %5068 = vmatprep.mubr.f32.mxu1 %v11740_v45  ;;  %7587 = vmatpush3.bf16.msra.mxu1 %v7584_v33  ;;  %v11744_v33 = vld [vmem:[#allocation4_spill] sm:$0xff]  ;;  %v11745_v45 = vld [vmem:[#allocation43_spill] sm:$0xff] }
 0x48c   : > { %7589 = vmatprep.subr.bf16.mxu1 %v7588_v51 }
 0x48d   : > { %v4529_v41 = vpop.f32.mrb[116].mxu1 }
 0x48e   : > { %v10789_v28 = vadd.f32 %v4529_v41, %v10544_v40  ;;  %v4531_v55 = vpop.f32.mrb[117].mxu1  ;;  %5069 = vmatmul.mubr.f32.gmra.mrb[222].mxu1 %v11741_v8  ;;  %v11748_v8 = vld [vmem:[#allocation46_spill] sm:$0xff] }
 0x48f   : > { %5073 = vmatprep.mubr.f32.mxu1 %v11742_v56  ;;  %7591 = vmatpush3.bf16.msra.mxu1 %v7588_v51  ;;  %v11746_v56 = vld [vmem:[#allocation32_spill] sm:$0xff]  ;;  %v11747_v55 = vld [vmem:[#allocation47_spill] sm:$0xff] }
 0x490   : > { %7593 = vmatprep.subr.bf16.mxu1 %v7592_v38 }
 0x491   : > { %v4534_v13 = vpop.f32.mrb[118].mxu1 }
 0x492   : > { %v10794_v22 = vadd.f32 %v4534_v13, %v10563_v11  ;;  %v4536_v26 = vpop.f32.mrb[119].mxu1  ;;  %5074 = vmatmul.mubr.f32.gmra.mrb[224].mxu1 %v11743_v9  ;;  %v11750_v9 = vld [vmem:[#allocation49_spill] sm:$0xff] }
 0x493   : > { %5078 = vmatprep.mubr.f32.mxu1 %v11744_v33  ;;  %7595 = vmatpush3.bf16.msra.mxu1 %v7592_v38  ;;  %v11749_v26 = vld [vmem:[#allocation58_spill] sm:$0xff] }
 0x495   : > { %v4539_v24 = vpop.f32.mrb[120].mxu1 }
 0x496   : > { %v10799_v40 = vadd.f32 %v4539_v24, %v10559_v23  ;;  %v4541_v30 = vpop.f32.mrb[121].mxu1  ;;  %5079 = vmatmul.mubr.f32.gmra.mrb[226].mxu1 %v11745_v45  ;;  %v11752_v45 = vld [vmem:[#allocation18_spill] sm:$0xff] }
 0x497   : > { %5083 = vmatprep.mubr.f32.mxu1 %v11746_v56  ;;  %v11751_v30 = vld [vmem:[#allocation59_spill] sm:$0xff] }
 0x499   : > { %v4544_v51 = vpop.f32.mrb[122].mxu1 }
 0x49a   : > { %v10804_v41 = vadd.f32 %v4544_v51, %v10578_v12  ;;  %v4546_v11 = vpop.f32.mrb[123].mxu1  ;;  %5084 = vmatmul.mubr.f32.gmra.mrb[228].mxu1 %v11747_v55  ;;  %v11753_v55 = vld [vmem:[#allocation21_spill] sm:$0xff] }
 0x49b   : > { %5088 = vmatprep.mubr.f32.mxu1 %v11748_v8  ;;  %v7960_v11 = vld [vmem:[#allocation2 + $0xc0] sm:$0xff] }
 0x49d   : > { %v4549_v13 = vpop.f32.mrb[124].mxu1 }
 0x49e   : > { %v10809_v38 = vadd.f32 %v4549_v13, %v10574_v5  ;;  %v4551_v23 = vpop.f32.mrb[125].mxu1  ;;  %5089 = vmatmul.mubr.f32.gmra.mrb[230].mxu1 %v11749_v26  ;;  %v11754_v26 = vld [vmem:[#allocation22_spill] sm:$0xff] }
 0x49f   : > { %5093 = vmatprep.mubr.f32.mxu1 %v11750_v9  ;;  %v7961_v23 = vld [vmem:[#allocation2 + $0xc8] sm:$0xff] }
 0x4a1   : > { %v4554_v33 = vpop.f32.mrb[126].mxu1 }
 0x4a2   : > { %v10814_v24 = vadd.f32 %v4554_v33, %v10593_v35  ;;  %v4556_v12 = vpop.f32.mrb[127].mxu1  ;;  %5094 = vmatmul.mubr.f32.gmra.mrb[232].mxu1 %v11751_v30  ;;  %v11755_v30 = vld [vmem:[#allocation25_spill] sm:$0xff] }
 0x4a3   : > { %5098 = vmatprep.mubr.f32.mxu1 %v11752_v45  ;;  %v7962_v12 = vld [vmem:[#allocation2 + $0xd8] sm:$0xff] }
 0x4a5   : > { %v4559_v56 = vpop.f32.mrb[128].mxu1 }
 0x4a6   : > { %v10819_v51 = vadd.f32 %v4559_v56, %v10589_v46  ;;  %v4561_v5 = vpop.f32.mrb[129].mxu1  ;;  %5099 = vmatmul.mubr.f32.gmra.mrb[234].mxu1 %v7960_v11  ;;  %v11756_v11 = vld [vmem:[#allocation29_spill] sm:$0xff] }
 0x4a7   : > { %5103 = vmatprep.mubr.f32.mxu1 %v11753_v55  ;;  %v7963_v5 = vld [vmem:[#allocation2 + $0xe0] sm:$0xff] }
 0x4a9   : > { %v4564_v8 = vpop.f32.mrb[130].mxu1 }
 0x4aa   : > { %v10823_v13 = vadd.f32 %v4564_v8, %v10608_v44  ;;  %v4566_v35 = vpop.f32.mrb[131].mxu1  ;;  %5104 = vmatmul.mubr.f32.gmra.mrb[236].mxu1 %v7961_v23  ;;  %v11757_v23 = vld [vmem:[#allocation30_spill] sm:$0xff] }
 0x4ab   : > { %5108 = vmatprep.mubr.f32.mxu1 %v11754_v26  ;;  %v7964_v35 = vld [vmem:[#allocation2 + $0xf0] sm:$0xff] }
 0x4ad   : > { %v4569_v9 = vpop.f32.mrb[132].mxu1 }
 0x4ae   : > { %v10827_v33 = vadd.f32 %v4569_v9, %v10604_v21  ;;  %v4571_v46 = vpop.f32.mrb[133].mxu1  ;;  %5109 = vmatmul.mubr.f32.gmra.mrb[238].mxu1 %v7962_v12  ;;  %v11758_v12 = vld [vmem:[#allocation33_spill] sm:$0xff] }
 0x4af   : > { %5113 = vmatprep.mubr.f32.mxu1 %v11755_v30  ;;  %v7965_v46 = vld [vmem:[#allocation2 + $0xf8] sm:$0xff] }
 0x4b1   : > { %v4574_v45 = vpop.f32.mrb[134].mxu1 }
 0x4b2   : > { %v10831_v56 = vadd.f32 %v4574_v45, %v10623_v47  ;;  %v4576_v44 = vpop.f32.mrb[135].mxu1  ;;  %5114 = vmatmul.mubr.f32.gmra.mrb[240].mxu1 %v7963_v5  ;;  %v11759_v5 = vld [vmem:[#allocation48_spill] sm:$0xff] }
 0x4b3   : > { %5118 = vmatprep.mubr.f32.mxu1 %v11756_v11  ;;  %v7966_v44 = vld [vmem:[#allocation2 + $0x108] sm:$0xff] }
 0x4b5   : > { %v4579_v55 = vpop.f32.mrb[136].mxu1 }
 0x4b6   : > { %v10835_v8 = vadd.f32 %v4579_v55, %v10619_v57  ;;  %v4581_v21 = vpop.f32.mrb[137].mxu1  ;;  %5119 = vmatmul.mubr.f32.gmra.mrb[242].mxu1 %v7964_v35  ;;  %v11760_v35 = vld [vmem:[#allocation50_spill] sm:$0xff] }
 0x4b7   : > { %5123 = vmatprep.mubr.f32.mxu1 %v11757_v23  ;;  %v7967_v21 = vld [vmem:[#allocation2 + $0x110] sm:$0xff] }
 0x4b9   : > { %v4584_v26 = vpop.f32.mrb[138].mxu1 }
 0x4ba   : > { %v10839_v9 = vadd.f32 %v4584_v26, %v10638_v18  ;;  %v4586_v47 = vpop.f32.mrb[139].mxu1  ;;  %5124 = vmatmul.mubr.f32.gmra.mrb[244].mxu1 %v7965_v46  ;;  %v11761_v46 = vld [vmem:[#allocation51_spill] sm:$0xff] }
 0x4bb   : > { %5128 = vmatprep.mubr.f32.mxu1 %v11758_v12  ;;  %v7968_v47 = vld [vmem:[#allocation2 + $0x120] sm:$0xff] }
 0x4bd   : > { %v4589_v30 = vpop.f32.mrb[140].mxu1 }
 0x4be   : > { %v10843_v45 = vadd.f32 %v4589_v30, %v10634_v50  ;;  %v4591_v57 = vpop.f32.mrb[141].mxu1  ;;  %5129 = vmatmul.mubr.f32.gmra.mrb[246].mxu1 %v7966_v44  ;;  %v11762_v44 = vld [vmem:[#allocation52_spill] sm:$0xff] }
 0x4bf   : > { %5133 = vmatprep.mubr.f32.mxu1 %v11759_v5  ;;  %v7969_v57 = vld [vmem:[#allocation2 + $0x128] sm:$0xff] }
 0x4c1   : > { %v4594_v11 = vpop.f32.mrb[142].mxu1 }
 0x4c2   : > { %v10847_v55 = vadd.f32 %v4594_v11, %v10653_v1  ;;  %v4596_v18 = vpop.f32.mrb[143].mxu1  ;;  %5134 = vmatmul.mubr.f32.gmra.mrb[248].mxu1 %v7967_v21  ;;  %v11763_v21 = vld [vmem:[#allocation53_spill] sm:$0xff] }
 0x4c3   : > { %5138 = vmatprep.mubr.f32.mxu1 %v11760_v35  ;;  %v7970_v18 = vld [vmem:[#allocation2 + $0x138] sm:$0xff] }
 0x4c5   : > { %v4599_v23 = vpop.f32.mrb[144].mxu1 }
 0x4c6   : > { %v10851_v26 = vadd.f32 %v4599_v23, %v10649_v36  ;;  %v4601_v50 = vpop.f32.mrb[145].mxu1  ;;  %5139 = vmatmul.mubr.f32.gmra.mrb[250].mxu1 %v7968_v47  ;;  %v11764_v47 = vld [vmem:[#allocation54_spill] sm:$0xff] }
 0x4c7   : > { %5143 = vmatprep.mubr.f32.mxu1 %v11761_v46  ;;  %v7971_v50 = vld [vmem:[#allocation2 + $0x140] sm:$0xff] }
 0x4c9   : > { %v4604_v12 = vpop.f32.mrb[146].mxu1 }
 0x4ca   : > { %v10855_v30 = vadd.f32 %v4604_v12, %v10668_v43  ;;  %v4606_v1 = vpop.f32.mrb[147].mxu1  ;;  %5144 = vmatmul.mubr.f32.gmra.mrb[252].mxu1 %v7969_v57  ;;  %v11765_v57 = vld [vmem:[#allocation55_spill] sm:$0xff] }
 0x4cb   : > { %5148 = vmatprep.mubr.f32.mxu1 %v11762_v44  ;;  %v7972_v1 = vld [vmem:[#allocation2 + $0x150] sm:$0xff] }
 0x4cd   : > { %v4609_v5 = vpop.f32.mrb[148].mxu1 }
 0x4ce   : > { %v10859_v11 = vadd.f32 %v4609_v5, %v10664_v20  ;;  %v4611_v36 = vpop.f32.mrb[149].mxu1  ;;  %5149 = vmatmul.mubr.f32.gmra.mrb[254].mxu1 %v7970_v18  ;;  %v11766_v18 = vld [vmem:[#allocation56_spill] sm:$0xff] }
 0x4cf   : > { %5153 = vmatprep.mubr.f32.mxu1 %v11763_v21  ;;  %v7973_v36 = vld [vmem:[#allocation2 + $0x158] sm:$0xff] }
 0x4d1   : > { %v4614_v35 = vpop.f32.mrb[150].mxu1 }
 0x4d2   : > { %v10863_v23 = vadd.f32 %v4614_v35, %v10689_v14  ;;  %v4616_v43 = vpop.f32.mrb[151].mxu1  ;;  %5154 = vmatmul.mubr.f32.gmra.mrb[0].mxu1 %v7971_v50  ;;  %v11767_v50 = vld [vmem:[#allocation57_spill] sm:$0xff] }
 0x4d3   : > { %5158 = vmatprep.mubr.f32.mxu1 %v11764_v47  ;;  %v7974_v43 = vld [vmem:[#allocation2 + $0x168] sm:$0xff] }
 0x4d5   : > { %v4619_v46 = vpop.f32.mrb[152].mxu1 }
 0x4d6   : > { %v10867_v12 = vadd.f32 %v4619_v46, %v10685_v4  ;;  %v4621_v20 = vpop.f32.mrb[153].mxu1  ;;  %5159 = vmatmul.mubr.f32.gmra.mrb[2].mxu1 %v7972_v1  ;;  %v11768_v1 = vld [vmem:[#allocation26_spill] sm:$0xff] }
 0x4d7   : > { %5163 = vmatprep.mubr.f32.mxu1 %v11765_v57  ;;  %v7975_v20 = vld [vmem:[#allocation2 + $0x170] sm:$0xff]  ;;  %v7976_v57 = vld [vmem:[#allocation2] sm:$0xff] }
 0x4d9   : > { %v4624_v44 = vpop.f32.mrb[154].mxu1 }
 0x4da   : > { %v10871_v5 = vadd.f32 %v4624_v44, %v10704_v2  ;;  %v4626_v14 = vpop.f32.mrb[155].mxu1  ;;  %5164 = vmatmul.mubr.f32.gmra.mrb[4].mxu1 %v7973_v36  ;;  %v4911_v44 = vrot.slane %v7976_v57, 1  ;;  %v10882_v36 = vld [vmem:[#allocation2 + $0x1a8] sm:$0x3] }
 0x4db   : > { %5168 = vmatprep.mubr.f32.mxu1 %v11766_v18 }
 0x4dd   : > { %v4629_v21 = vpop.f32.mrb[156].mxu1 }
 0x4de   : > { %v10875_v35 = vadd.f32 %v4629_v21, %v10700_v15  ;;  %v4631_v4 = vpop.f32.mrb[157].mxu1  ;;  %5169 = vmatmul.mubr.f32.gmra.mrb[6].mxu1 %v7974_v43  ;;  %v7977_v21 = vld [vmem:[#allocation2 + $0x180] sm:$0xff] }
 0x4df   : > { %5173 = vmatprep.mubr.f32.mxu1 %v11767_v50  ;;  %v11769_v4 = vld [vmem:[#allocation34_spill] sm:$0xff] }
 0x4e1   : > { %v4634_v47 = vpop.f32.mrb[158].mxu1 }
 0x4e2   : > { %v10879_v46 = vadd.f32 %v4634_v47, %v10718_v39  ;;  %v4636_v2 = vpop.f32.mrb[159].mxu1  ;;  %5174 = vmatmul.mubr.f32.gmra.mrb[8].mxu1 %v7975_v20  ;;  %v4914_v39 = vrot.slane %v10882_v36, 1 }
 0x4e3   : > { %5178 = vmatprep.mubr.f32.mxu1 %v11768_v1  ;;  %v7978_v2 = vld [vmem:[#allocation2 + $0x188] sm:$0xff] }
 0x4e4   : > { %v4915_v20 = vsel %vm423_vm1, %v4911_v44, %v4914_v39 }
 0x4e5   : > { %v4639_v14 = vpop.f32.mrb[160].mxu1 }
 0x4e6   : > { %v10885_v15 = vadd.f32 %v4639_v14, %v10714_v42  ;;  %v4641_v18 = vpop.f32.mrb[161].mxu1  ;;  %5179 = vmatmul.mubr.f32.gmra.mrb[10].mxu1 %v7977_v21 }
 0x4e7   : > { %5183 = vmatprep.mubr.f32.mxu1 %v11769_v4 }
 0x4e9   : > { %v4644_v43 = vpop.f32.mrb[162].mxu1 }
 0x4ea   : > { %v10890_v50 = vadd.f32 %v4644_v43, %v10732_v25  ;;  %v4646_v47 = vpop.f32.mrb[163].mxu1  ;;  %5184 = vmatmul.mubr.f32.gmra.mrb[12].mxu1 %v7978_v2 }
 0x4eb   : > { %5188 = vmatprep.mubr.f32.mxu1 %v4911_v44 }
 0x4ed   : > { %v4649_v1 = vpop.f32.mrb[164].mxu1 }
 0x4ee   : > { %v10894_v42 = vadd.f32 %v4649_v1, %v10728_v0  ;;  %v4651_v14 = vpop.f32.mrb[165].mxu1  ;;  %5189 = vmatmul.mubr.f32.gmra.mrb[14].mxu1 %v7976_v57  ;;  %v11772_v1 = vld [vmem:[#allocation7_spill] sm:$0xff] }
 0x4ef   : > { %5193 = vmatprep.mubr.f32.mxu1 %v4915_v20 }
 0x4f1   : > { %v4654_v18 = vpop.f32.mrb[166].mxu1 }
 0x4f2   : > { %v10897_v21 = vadd.f32 %v4654_v18, %v10746_v63  ;;  %v4656_v4 = vpop.f32.mrb[167].mxu1  ;;  %5194 = vmatmul.mubr.f32.gmra.mrb[16].mxu1 %v7976_v57  ;;  %v11770_v57 = vld [vmem:[#allocation5_spill] sm:$0xff] }
 0x4f3   : > { %7308 = vmatprep.mubr.f32.mxu1 %v10016_v48  ;;  %v11774_v18 = vld [vmem:[#allocation9_spill] sm:$0xff] }
 0x4f5   : > { %v4659_v25 = vpop.f32.mrb[168].mxu1 }
 0x4f6   : > { %v10901_v43 = vadd.f32 %v4659_v25, %v10742_v17  ;;  %v4661_v44 = vpop.f32.mrb[169].mxu1  ;;  %7309 = vmatmul.mubr.f32.vlgmr.msra.gmra.mrb[18].mxu1 %v10029_v37 }
 0x4f7   : > { %7311 = vmatprep.mubr.f32.mxu1 %v10034_v6 }
 0x4f9   : > { %v4664_v0 = vpop.f32.mrb[170].mxu1 }
 0x4fa   : > { %v10906_v39 = vadd.f32 %v4664_v0, %v10760_v58  ;;  %v4666_v47 = vpop.f32.mrb[171].mxu1  ;;  %7312 = vmatmul.mubr.f32.gmra.mrb[20].mxu1 %v10047_v10  ;;  %v11776_v0 = vld [vmem:[#allocation11_spill] sm:$0xff] }
 0x4fb   : > { %7314 = vmatprep.mubr.f32.mxu1 %v10052_v7 }
 0x4fd   : > { %v4669_v63 = vpop.f32.mrb[172].mxu1 }
 0x4fe   : > { %v10911_v48 = vadd.f32 %v4669_v63, %v10756_v34  ;;  %v4671_v17 = vpop.f32.mrb[173].mxu1  ;;  %7315 = vmatmul.mubr.f32.gmra.mrb[22].mxu1 %v10065_v49 }
 0x4ff   : > { %7317 = vmatprep.mubr.f32.mxu1 %v10070_v60 }
 0x501   : > { %v4674_v37 = vpop.f32.mrb[174].mxu1 }
 0x502   : > { %v10916_v6 = vadd.f32 %v4674_v37, %v10774_v19  ;;  %v4676_v58 = vpop.f32.mrb[175].mxu1  ;;  %7318 = vmatmul.mubr.f32.gmra.mrb[24].mxu1 %v11770_v57  ;;  %v11778_v37 = vld [vmem:[#allocation13_spill] sm:$0xff] }
 0x503   : > { %7320 = vmatprep.mubr.f32.mxu1 %v10088_v16 }
 0x505   : > { %v4679_v10 = vpop.f32.mrb[176].mxu1 }
 0x506   : > { %v10921_v7 = vadd.f32 %v4679_v10, %v10770_v31  ;;  %v4681_v34 = vpop.f32.mrb[177].mxu1  ;;  %7321 = vmatmul.mubr.f32.gmra.mrb[26].mxu1 %v10101_v53 }
 0x507   : > { %7323 = vmatprep.mubr.f32.mxu1 %v10106_v61 }
 0x509   : > { %v7230_v49 = vpop.f32.mrb[178].mxu1 }
 0x50a   : > { %v10926_v60 = vadd.f32 %v7230_v49, %v10789_v28  ;;  %v4749_v19 = vpop.f32.mrb[179].mxu1  ;;  %7324 = vmatmul.mubr.f32.gmra.mrb[28].mxu1 %v10119_v62  ;;  %v11771_v28 = vld [vmem:[#allocation6_spill] sm:$0xff] }
 0x50b   : > { %v10930_v2 = vadd.f32 %v4749_v19, %v10784_v52  ;;  %7326 = vmatprep.mubr.f32.mxu1 %v10124_v27  ;;  %v11780_v19 = vld [vmem:[#allocation17_spill] sm:$0xff] }
 0x50d   : > { %v7233_v16 = vpop.f32.mrb[180].mxu1 }
 0x50e   : > { %v10934_v31 = vadd.f32 %v7233_v16, %v10799_v40  ;;  %v4759_v20 = vpop.f32.mrb[181].mxu1  ;;  %7327 = vmatmul.mubr.f32.gmra.mrb[30].mxu1 %v10137_v32  ;;  %v4921_v16 = vrot.slane %v10882_v36, 2 }
 0x50f   : > { %v10938_v53 = vadd.f32 %v4759_v20, %v10794_v22  ;;  %7329 = vmatprep.mubr.f32.mxu1 %v10142_v29  ;;  %v11781_v20 = vld [vmem:[#allocation19_spill] sm:$0xff] }
 0x511   : > { %v7236_v61 = vpop.f32.mrb[182].mxu1 }
 0x512   : > { %v10942_v62 = vadd.f32 %v7236_v61, %v10809_v38  ;;  %v4769_v52 = vpop.f32.mrb[183].mxu1  ;;  %7330 = vmatmul.mubr.f32.gmra.mrb[32].mxu1 %v10155_v3  ;;  %v11773_v38 = vld [vmem:[#allocation8_spill] sm:$0xff] }
 0x513   : > { %v10946_v27 = vadd.f32 %v4769_v52, %v10804_v41  ;;  %7332 = vmatprep.mubr.f32.mxu1 %v11771_v28  ;;  %v11783_v52 = vld [vmem:[#allocation60_spill] sm:$0xff] }
 0x514   : > { %v4922_v36 = vsel %vm1156_vm3, %v11783_v52, %v4921_v16 }
 0x515   : > { %v7239_v40 = vpop.f32.mrb[184].mxu1 }
 0x516   : > { %v10950_v32 = vadd.f32 %v7239_v40, %v10819_v51  ;;  %v4779_v22 = vpop.f32.mrb[185].mxu1  ;;  %7333 = vmatmul.mubr.f32.gmra.mrb[34].mxu1 %v11772_v1  ;;  %v11775_v51 = vld [vmem:[#allocation10_spill] sm:$0xff] }
 0x517   : > { %v10954_v29 = vadd.f32 %v4779_v22, %v10814_v24  ;;  %7335 = vmatprep.mubr.f32.mxu1 %v11773_v38 }
 0x519   : > { %v7242_v14 = vpop.f32.mrb[186].mxu1 }
 0x51a   : > { %v10958_v3 = vadd.f32 %v7242_v14, %v10827_v33  ;;  %v4789_v41 = vpop.f32.mrb[187].mxu1  ;;  %7336 = vmatmul.mubr.f32.gmra.mrb[36].mxu1 %v11774_v18  ;;  %v11777_v33 = vld [vmem:[#allocation12_spill] sm:$0xff] }
 0x51b   : > { %v10962_v4 = vadd.f32 %v4789_v41, %v10823_v13  ;;  %7338 = vmatprep.mubr.f32.mxu1 %v11775_v51 }
 0x51d   : > { %v7245_v25 = vpop.f32.mrb[188].mxu1 }
 0x51e   : > { %v10966_v44 = vadd.f32 %v7245_v25, %v10835_v8  ;;  %v4799_v24 = vpop.f32.mrb[189].mxu1  ;;  %7339 = vmatmul.mubr.f32.gmra.mrb[38].mxu1 %v11776_v0  ;;  %v11779_v8 = vld [vmem:[#allocation14_spill] sm:$0xff] }
 0x51f   : > { %v10970_v47 = vadd.f32 %v4799_v24, %v10831_v56  ;;  %7341 = vmatprep.mubr.f32.mxu1 %v11777_v33 }
 0x521   : > { %v7248_v63 = vpop.f32.mrb[190].mxu1 }
 0x522   : > { %v10974_v17 = vadd.f32 %v7248_v63, %v10843_v45  ;;  %v4809_v13 = vpop.f32.mrb[191].mxu1  ;;  %7342 = vmatmul.mubr.f32.gmra.mrb[40].mxu1 %v11778_v37 }
 0x523   : > { %v10978_v58 = vadd.f32 %v4809_v13, %v10839_v9  ;;  %7344 = vmatprep.mubr.f32.mxu1 %v11779_v8 }
 0x525   : > { %v7251_v57 = vpop.f32.mrb[192].mxu1 }
 0x526   : > { %v10982_v10 = vadd.f32 %v7251_v57, %v10851_v26  ;;  %v4819_v56 = vpop.f32.mrb[193].mxu1  ;;  %7345 = vmatmul.mubr.f32.gmra.mrb[42].mxu1 %v11726_v59 }
 0x527   : > { %v10986_v34 = vadd.f32 %v4819_v56, %v10847_v55  ;;  %7347 = vmatprep.mubr.f32.mxu1 %v11727_v54  ;;  %v11782_v54 = vld [vmem:[#allocation20_spill] sm:$0xff] }
 0x529   : > { %v7254_v45 = vpop.f32.mrb[194].mxu1 }
 0x52a   : > { %v10990_v49 = vadd.f32 %v7254_v45, %v10859_v11  ;;  %v4829_v9 = vpop.f32.mrb[195].mxu1  ;;  %7348 = vmatmul.mubr.f32.gmra.mrb[44].mxu1 %v11780_v19 }
 0x52b   : > { %v10995_v26 = vadd.f32 %v4829_v9, %v10855_v30  ;;  %7350 = vmatprep.mubr.f32.mxu1 %v11781_v20 }
 0x52d   : > { %v7257_v59 = vpop.f32.mrb[196].mxu1 }
 0x52e   : > { %v10999_v55 = vadd.f32 %v7257_v59, %v10867_v12  ;;  %v4839_v61 = vpop.f32.mrb[197].mxu1  ;;  %7351 = vmatmul.mubr.f32.gmra.mrb[46].mxu1 %v11782_v54 }
 0x52f   : > { %v11003_v11 = vadd.f32 %v4839_v61, %v10863_v23  ;;  %7353 = vmatprep.mubr.f32.mxu1 %v11783_v52 }
 0x531   : > { %v7260_v28 = vpop.f32.mrb[198].mxu1 }
 0x532   : > { %v11009_v30 = vadd.f32 %v7260_v28, %v10875_v35  ;;  %v4849_v40 = vpop.f32.mrb[199].mxu1  ;;  %7354 = vmatmul.mubr.f32.gmra.mrb[48].mxu1 %v4922_v36 }
 0x533   : > { %v11012_v12 = vadd.f32 %v4849_v40, %v10871_v5 }
 0x535   : > { %v7263_v22 = vpop.f32.mrb[200].mxu1 }
 0x536   : > { %v11015_v1 = vadd.f32 %v7263_v22, %v10885_v15  ;;  %v4859_v23 = vpop.f32.mrb[201].mxu1 }
 0x537   : > { %v11018_v38 = vadd.f32 %v4859_v23, %v10879_v46 }
 0x539   : > { %v7266_v14 = vpop.f32.mrb[202].mxu1 }
 0x53a   : > { %v11021_v41 = vadd.f32 %v7266_v14, %v10894_v42  ;;  %v4869_v18 = vpop.f32.mrb[203].mxu1 }
 0x53b   : > { %v11024_v35 = vadd.f32 %v4869_v18, %v10890_v50 }
 0x53d   : > { %11784 = vst [vmem:[#allocation15_spill] sm:$0xff] %v11024_v35  ;;  %v7269_v51 = vpop.f32.mrb[204].mxu1 }
 0x53e   : > { %v11027_v5 = vadd.f32 %v7269_v51, %v10901_v43  ;;  %v4879_v25 = vpop.f32.mrb[205].mxu1 }
 0x53f   : > { %v11030_v15 = vadd.f32 %v4879_v25, %v10897_v21 }
 0x540   : > { %11785 = vst [vmem:[#allocation16_spill] sm:$0xff] %v11027_v5 }
 0x541   : > { %11786 = vst [vmem:[#allocation37_spill] sm:$0xff] %v11030_v15  ;;  %v7272_v24 = vpop.f32.mrb[206].mxu1 }
 0x542   : > { %v11033_v46 = vadd.f32 %v7272_v24, %v10911_v48  ;;  %v4889_v0 = vpop.f32.mrb[207].mxu1 }
 0x543   : > { %v11036_v42 = vadd.f32 %v4889_v0, %v10906_v39 }
 0x544   : > { %11787 = vst [vmem:[#allocation23_spill] sm:$0xff] %v11033_v46 }
 0x545   : > { %11788 = vst [vmem:[#allocation38_spill] sm:$0xff] %v11036_v42  ;;  %v7275_v33 = vpop.f32.mrb[208].mxu1 }
 0x546   : > { %v11039_v50 = vadd.f32 %v7275_v33, %v10921_v7  ;;  %v4899_v63 = vpop.f32.mrb[209].mxu1 }
 0x547   : > { %v11042_v43 = vadd.f32 %v4899_v63, %v10916_v6 }
 0x548   : > { %11789 = vst [vmem:[#allocation24_spill] sm:$0xff] %v11039_v50 }
 0x549   : > { %11790 = vst [vmem:[#allocation41_spill] sm:$0xff] %v11042_v43  ;;  %v11044_v13 = vpop.f32.mrb[210].mxu1 }
 0x54a   : > { %v5042_v21 = vpop.f32.mrb[211].mxu1 }
 0x54d   : > { %v11046_v37 = vpop.f32.mrb[212].mxu1 }
 0x54e   : > { %v5047_v8 = vpop.f32.mrb[213].mxu1 }
 0x551   : > { %v11048_v48 = vpop.f32.mrb[214].mxu1 }
 0x552   : > { %v5052_v57 = vpop.f32.mrb[215].mxu1 }
 0x555   : > { %v11050_v56 = vpop.f32.mrb[216].mxu1 }
 0x556   : > { %v5057_v39 = vpop.f32.mrb[217].mxu1 }
 0x559   : > { %v11052_v45 = vpop.f32.mrb[218].mxu1 }
 0x55a   : > { %v5062_v7 = vpop.f32.mrb[219].mxu1 }
 0x55d   : > { %v11054_v9 = vpop.f32.mrb[220].mxu1 }
 0x55e   : > { %v5067_v19 = vpop.f32.mrb[221].mxu1 }
 0x561   : > { %v11056_v6 = vpop.f32.mrb[222].mxu1 }
 0x562   : > { %v5072_v16 = vpop.f32.mrb[223].mxu1 }
 0x565   : > { %v11058_v20 = vpop.f32.mrb[224].mxu1 }
 0x566   : > { %v5077_v59 = vpop.f32.mrb[225].mxu1 }
 0x569   : > { %v11060_v61 = vpop.f32.mrb[226].mxu1 }
 0x56a   : > { %v5082_v54 = vpop.f32.mrb[227].mxu1 }
 0x56d   : > { %v11062_v52 = vpop.f32.mrb[228].mxu1 }
 0x56e   : > { %v5087_v36 = vpop.f32.mrb[229].mxu1 }
 0x571   : > { %v11064_v28 = vpop.f32.mrb[230].mxu1 }
 0x572   : > { %v5092_v40 = vpop.f32.mrb[231].mxu1 }
 0x575   : > { %v11066_v22 = vpop.f32.mrb[232].mxu1 }
 0x576   : > { %v5097_v23 = vpop.f32.mrb[233].mxu1 }
 0x579   : > { %v11068_v14 = vpop.f32.mrb[234].mxu1 }
 0x57a   : > { %v5102_v18 = vpop.f32.mrb[235].mxu1 }
 0x57d   : > { %v11070_v51 = vpop.f32.mrb[236].mxu1 }
 0x57e   : > { %v5107_v25 = vpop.f32.mrb[237].mxu1 }
 0x581   : > { %v11072_v24 = vpop.f32.mrb[238].mxu1 }
 0x582   : > { %v5112_v0 = vpop.f32.mrb[239].mxu1 }
 0x585   : > { %v11074_v33 = vpop.f32.mrb[240].mxu1 }
 0x586   : > { %v5117_v63 = vpop.f32.mrb[241].mxu1 }
 0x589   : > { %v11076_v21 = vpop.f32.mrb[242].mxu1 }
 0x58a   : > { %v5122_v8 = vpop.f32.mrb[243].mxu1 }
 0x58d   : > { %v11078_v57 = vpop.f32.mrb[244].mxu1 }
 0x58e   : > { %v5127_v39 = vpop.f32.mrb[245].mxu1 }
 0x591   : > { %v11080_v7 = vpop.f32.mrb[246].mxu1 }
 0x592   : > { %v5132_v19 = vpop.f32.mrb[247].mxu1 }
 0x595   : > { %v11082_v16 = vpop.f32.mrb[248].mxu1 }
 0x596   : > { %v5137_v59 = vpop.f32.mrb[249].mxu1 }
 0x599   : > { %v11084_v54 = vpop.f32.mrb[250].mxu1 }
 0x59a   : > { %v5142_v36 = vpop.f32.mrb[251].mxu1 }
 0x59d   : > { %v11086_v40 = vpop.f32.mrb[252].mxu1 }
 0x59e   : > { %v5147_v23 = vpop.f32.mrb[253].mxu1 }
 0x5a1   : > { %v11088_v18 = vpop.f32.mrb[254].mxu1 }
 0x5a2   : > { %v5152_v25 = vpop.f32.mrb[255].mxu1 }
 0x5a5   : > { %v11090_v0 = vpop.f32.mrb[0].mxu1 }
 0x5a6   : > { %v5157_v63 = vpop.f32.mrb[1].mxu1 }
 0x5a9   : > { %v11092_v8 = vpop.f32.mrb[2].mxu1 }
 0x5aa   : > { %v5162_v39 = vpop.f32.mrb[3].mxu1 }
 0x5ad   : > { %v11094_v43 = vpop.f32.mrb[4].mxu1 }
 0x5ae   : > { %v5167_v19 = vpop.f32.mrb[5].mxu1 }
 0x5b1   : > { %v11096_v50 = vpop.f32.mrb[6].mxu1 }
 0x5b2   : > { %11791 = vst [vmem:[#allocation27_spill] sm:$0xff] %v11096_v50  ;;  %v5172_v59 = vpop.f32.mrb[7].mxu1 }
 0x5b5   : > { %v11098_v42 = vpop.f32.mrb[8].mxu1 }
 0x5b6   : > { %v5177_v36 = vpop.f32.mrb[9].mxu1 }
 0x5b7   : > { %v11112_v36 = vld [vmem:[%s11298_s5] ss:$0 sm:$0xff] }
 0x5b9   : > { %v11100_v46 = vpop.f32.mrb[10].mxu1 }
 0x5ba   : > { %11792 = vst [vmem:[#allocation44_spill] sm:$0xff] %v11100_v46  ;;  %v5182_v23 = vpop.f32.mrb[11].mxu1 }
 0x5bd   : > { %v11102_v25 = vpop.f32.mrb[12].mxu1 }
 0x5be   : > { %v5187_v15 = vpop.f32.mrb[13].mxu1 }
 0x5c1   : > { %v11104_v63 = vpop.f32.mrb[14].mxu1 }
 0x5c2   : > { %11793 = vst [vmem:[#allocation31_spill] sm:$0xff] %v11104_v63  ;;  %v5192_v5 = vpop.f32.mrb[15].mxu1 }
 0x5c3   : > { %v11119_v5 = vld [vmem:[%s11299_s6] ss:$0 sm:$0xff] }
 0x5c5   : > { %v11106_v39 = vpop.f32.mrb[16].mxu1 }
 0x5c6   : > { %11794 = vst [vmem:[#allocation3_spill] sm:$0xff] %v11106_v39  ;;  %v5197_v35 = vpop.f32.mrb[17].mxu1 }
 0x5c9   : > { %v7310_v19 = vpop.f32.mrb[18].mxu1 }
 0x5ca   : > { %v5271_v50 = vadd.f32 %v7310_v19, %v11046_v37  ;;  %v5265_v59 = vpop.f32.mrb[19].mxu1 }
 0x5cb   : > { %v5266_v23 = vadd.f32 %v5265_v59, %v11044_v13 }
 0x5cc   : > { %v5425_v46 = vadd.f32 %v5271_v50, %v10926_v60 }
 0x5cd   : > { %v5424_v35 = vadd.f32 %v5266_v23, %v10930_v2  ;;  %v7313_v15 = vpop.f32.mrb[20].mxu1 }
 0x5ce   : > { %v5464_v37 = vmul.f32 %v11112_v36, %v5425_v46  ;;  %v5281_v19 = vadd.f32 %v7313_v15, %v11050_v56  ;;  %v5275_v63 = vpop.f32.mrb[21].mxu1 }
 0x5cf   : > { %v5463_v39 = vmul.f32 %v11112_v36, %v5424_v35  ;;  %v5276_v13 = vadd.f32 %v5275_v63, %v11048_v48 }
 0x5d0   : > { %v5503_v60 = vadd.f32 %v11119_v5, %v5464_v37  ;;  %v5427_v50 = vadd.f32 %v5281_v19, %v10934_v31 }
 0x5d1   : > { %v5502_v2 = vadd.f32 %v11119_v5, %v5463_v39  ;;  %v5426_v46 = vadd.f32 %v5276_v13, %v10938_v53  ;;  %v7316_v56 = vpop.f32.mrb[22].mxu1 }
 0x5d2   : > { %v5535_v59 = vmax.f32 %v5503_v60, 0.0  ;;  %v5466_v23 = vmul.f32 %v11112_v36, %v5427_v50  ;;  %v5291_v48 = vadd.f32 %v7316_v56, %v11054_v9  ;;  %v5285_v63 = vpop.f32.mrb[23].mxu1 }
 0x5d3   : > { %v5534_v35 = vmax.f32 %v5502_v2, 0.0  ;;  %v5465_v31 = vmul.f32 %v11112_v36, %v5426_v46  ;;  %v5286_v15 = vadd.f32 %v5285_v63, %v11052_v45 }
 0x5d4   : > { %5567 = vst [vmem:[%s11132_s18 + $0x8] sm:$0xff] %v5535_v59  ;;  %v5505_v37 = vadd.f32 %v11119_v5, %v5466_v23  ;;  %v5429_v39 = vadd.f32 %v5291_v48, %v10942_v62 }
 0x5d5   : > { %5566 = vst [vmem:[%s11132_s18] sm:$0xff] %v5534_v35  ;;  %v5504_v53 = vadd.f32 %v11119_v5, %v5465_v31  ;;  %v5428_v19 = vadd.f32 %v5286_v15, %v10946_v27  ;;  %v7319_v13 = vpop.f32.mrb[24].mxu1 }
 0x5d6   : > { %v5537_v9 = vmax.f32 %v5505_v37, 0.0  ;;  %v5468_v60 = vmul.f32 %v11112_v36, %v5429_v39  ;;  %v5301_v50 = vadd.f32 %v7319_v13, %v11058_v20  ;;  %v5295_v2 = vpop.f32.mrb[25].mxu1 }
 0x5d7   : > { %v5536_v46 = vmax.f32 %v5504_v53, 0.0  ;;  %v5467_v45 = vmul.f32 %v11112_v36, %v5428_v19  ;;  %v5296_v56 = vadd.f32 %v5295_v2, %v11056_v6 }
 0x5d8   : > { %5569 = vst [vmem:[%s11132_s18 + $0x18] sm:$0xff] %v5537_v9  ;;  %v5507_v62 = vadd.f32 %v11119_v5, %v5468_v60  ;;  %v5431_v59 = vadd.f32 %v5301_v50, %v10950_v32 }
 0x5d9   : > { %5568 = vst [vmem:[%s11132_s18 + $0x10] sm:$0xff] %v5536_v46  ;;  %v5506_v27 = vadd.f32 %v11119_v5, %v5467_v45  ;;  %v5430_v23 = vadd.f32 %v5296_v56, %v10954_v29  ;;  %v7322_v48 = vpop.f32.mrb[26].mxu1 }
 0x5da   : > { %v5539_v20 = vmax.f32 %v5507_v62, 0.0  ;;  %v5470_v63 = vmul.f32 %v11112_v36, %v5431_v59  ;;  %v5311_v35 = vadd.f32 %v7322_v48, %v11062_v52  ;;  %v5305_v31 = vpop.f32.mrb[27].mxu1 }
 0x5db   : > { %v5538_v15 = vmax.f32 %v5506_v27, 0.0  ;;  %v5469_v6 = vmul.f32 %v11112_v36, %v5430_v23  ;;  %v5306_v37 = vadd.f32 %v5305_v31, %v11060_v61 }
 0x5dc   : > { %5571 = vst [vmem:[%s11132_s18 + $0x28] sm:$0xff] %v5539_v20  ;;  %v5509_v32 = vadd.f32 %v11119_v5, %v5470_v63  ;;  %v5433_v39 = vadd.f32 %v5311_v35, %v10958_v3 }
 0x5dd   : > { %5570 = vst [vmem:[%s11132_s18 + $0x20] sm:$0xff] %v5538_v15  ;;  %v5508_v29 = vadd.f32 %v11119_v5, %v5469_v6  ;;  %v5432_v53 = vadd.f32 %v5306_v37, %v10962_v4  ;;  %v7325_v19 = vpop.f32.mrb[28].mxu1 }
 0x5de   : > { %v5541_v52 = vmax.f32 %v5509_v32, 0.0  ;;  %v5472_v13 = vmul.f32 %v11112_v36, %v5433_v39  ;;  %v5321_v9 = vadd.f32 %v7325_v19, %v11066_v22  ;;  %v5315_v60 = vpop.f32.mrb[29].mxu1 }
 0x5df   : > { %v5540_v50 = vmax.f32 %v5508_v29, 0.0  ;;  %v5471_v61 = vmul.f32 %v11112_v36, %v5432_v53  ;;  %v5316_v2 = vadd.f32 %v5315_v60, %v11064_v28 }
 0x5e0   : > { %5573 = vst [vmem:[%s11132_s18 + $0x38] sm:$0xff] %v5541_v52  ;;  %v5511_v3 = vadd.f32 %v11119_v5, %v5472_v13  ;;  %v5435_v46 = vadd.f32 %v5321_v9, %v10966_v44 }
 0x5e1   : > { %5572 = vst [vmem:[%s11132_s18 + $0x30] sm:$0xff] %v5540_v50  ;;  %v5510_v4 = vadd.f32 %v11119_v5, %v5471_v61  ;;  %v5434_v45 = vadd.f32 %v5316_v2, %v10970_v47  ;;  %v7328_v56 = vpop.f32.mrb[30].mxu1 }
 0x5e2   : > { %v5543_v22 = vmax.f32 %v5511_v3, 0.0  ;;  %v5474_v62 = vmul.f32 %v11112_v36, %v5435_v46  ;;  %v5331_v59 = vadd.f32 %v7328_v56, %v11070_v51  ;;  %v5325_v27 = vpop.f32.mrb[31].mxu1 }
 0x5e3   : > { %v5542_v23 = vmax.f32 %v5510_v4, 0.0  ;;  %v5473_v28 = vmul.f32 %v11112_v36, %v5434_v45  ;;  %v5326_v48 = vadd.f32 %v5325_v27, %v11068_v14 }
 0x5e4   : > { %5575 = vst [vmem:[%s11132_s18 + $0x48] sm:$0xff] %v5543_v22  ;;  %v5513_v44 = vadd.f32 %v11119_v5, %v5474_v62  ;;  %v5437_v20 = vadd.f32 %v5331_v59, %v10974_v17 }
 0x5e5   : > { %5574 = vst [vmem:[%s11132_s18 + $0x40] sm:$0xff] %v5542_v23  ;;  %v5512_v47 = vadd.f32 %v11119_v5, %v5473_v28  ;;  %v5436_v63 = vadd.f32 %v5326_v48, %v10978_v58  ;;  %v7331_v35 = vpop.f32.mrb[32].mxu1 }
 0x5e6   : > { %v5545_v51 = vmax.f32 %v5513_v44, 0.0  ;;  %v5476_v31 = vmul.f32 %v11112_v36, %v5437_v20  ;;  %v5341_v15 = vadd.f32 %v7331_v35, %v11074_v33  ;;  %v5335_v6 = vpop.f32.mrb[33].mxu1 }
 0x5e7   : > { %v5544_v37 = vmax.f32 %v5512_v47, 0.0  ;;  %v5475_v14 = vmul.f32 %v11112_v36, %v5436_v63  ;;  %v5336_v32 = vadd.f32 %v5335_v6, %v11072_v24 }
 0x5e8   : > { %5577 = vst [vmem:[%s11132_s18 + $0x58] sm:$0xff] %v5545_v51  ;;  %v5515_v17 = vadd.f32 %v11119_v5, %v5476_v31  ;;  %v5439_v39 = vadd.f32 %v5341_v15, %v10982_v10 }
 0x5e9   : > { %5576 = vst [vmem:[%s11132_s18 + $0x50] sm:$0xff] %v5544_v37  ;;  %v5514_v58 = vadd.f32 %v11119_v5, %v5475_v14  ;;  %v5438_v29 = vadd.f32 %v5336_v32, %v10986_v34  ;;  %v7334_v53 = vpop.f32.mrb[34].mxu1 }
 0x5ea   : > { %v5547_v33 = vmax.f32 %v5515_v17, 0.0  ;;  %v5478_v19 = vmul.f32 %v11112_v36, %v5439_v39  ;;  %v5351_v52 = vadd.f32 %v7334_v53, %v11078_v57  ;;  %v5345_v13 = vpop.f32.mrb[35].mxu1 }
 0x5eb   : > { %v5546_v9 = vmax.f32 %v5514_v58, 0.0  ;;  %v5477_v24 = vmul.f32 %v11112_v36, %v5438_v29  ;;  %v5346_v60 = vadd.f32 %v5345_v13, %v11076_v21 }
 0x5ec   : > { %5579 = vst [vmem:[%s11132_s18 + $0x68] sm:$0xff] %v5547_v33  ;;  %v5517_v10 = vadd.f32 %v11119_v5, %v5478_v19  ;;  %v5441_v50 = vadd.f32 %v5351_v52, %v10990_v49  ;;  %v11795_v19 = vld [vmem:[#allocation15_spill] sm:$0xff] }
 0x5ed   : > { %5578 = vst [vmem:[%s11132_s18 + $0x60] sm:$0xff] %v5546_v9  ;;  %v5516_v34 = vadd.f32 %v11119_v5, %v5477_v24  ;;  %v5440_v61 = vadd.f32 %v5346_v60, %v10995_v26  ;;  %v7337_v2 = vpop.f32.mrb[36].mxu1 }
 0x5ee   : > { %v5549_v57 = vmax.f32 %v5517_v10, 0.0  ;;  %v5480_v3 = vmul.f32 %v11112_v36, %v5441_v50  ;;  %v5361_v46 = vadd.f32 %v7337_v2, %v11082_v16  ;;  %v5355_v4 = vpop.f32.mrb[37].mxu1  ;;  %v11796_v50 = vld [vmem:[#allocation27_spill] sm:$0xff] }
 0x5ef   : > { %v5548_v45 = vmax.f32 %v5516_v34, 0.0  ;;  %v5479_v21 = vmul.f32 %v11112_v36, %v5440_v61  ;;  %v5356_v56 = vadd.f32 %v5355_v4, %v11080_v7  ;;  %v11797_v61 = vld [vmem:[#allocation16_spill] sm:$0xff] }
 0x5f0   : > { %5581 = vst [vmem:[%s11132_s18 + $0x78] sm:$0xff] %v5549_v57  ;;  %v5519_v49 = vadd.f32 %v11119_v5, %v5480_v3  ;;  %v5443_v22 = vadd.f32 %v5361_v46, %v10999_v55  ;;  %v11798_v3 = vld [vmem:[#allocation37_spill] sm:$0xff] }
 0x5f1   : > { %5580 = vst [vmem:[%s11132_s18 + $0x70] sm:$0xff] %v5548_v45  ;;  %v5518_v26 = vadd.f32 %v11119_v5, %v5479_v21  ;;  %v5442_v62 = vadd.f32 %v5356_v56, %v11003_v11  ;;  %v7340_v59 = vpop.f32.mrb[38].mxu1 }
 0x5f2   : > { %v5551_v16 = vmax.f32 %v5519_v49, 0.0  ;;  %v5482_v27 = vmul.f32 %v11112_v36, %v5443_v22  ;;  %v5371_v23 = vadd.f32 %v7340_v59, %v11086_v40  ;;  %v5365_v28 = vpop.f32.mrb[39].mxu1 }
 0x5f3   : > { %v5550_v48 = vmax.f32 %v5518_v26, 0.0  ;;  %v5481_v7 = vmul.f32 %v11112_v36, %v5442_v62  ;;  %v5366_v44 = vadd.f32 %v5365_v28, %v11084_v54  ;;  %v11799_v26 = vld [vmem:[#allocation44_spill] sm:$0xff]  ;;  %v11801_v28 = vld [vmem:[#allocation38_spill] sm:$0xff] }
 0x5f4   : > { %5583 = vst [vmem:[%s11132_s18 + $0x88] sm:$0xff] %v5551_v16  ;;  %v5521_v55 = vadd.f32 %v11119_v5, %v5482_v27  ;;  %v5445_v20 = vadd.f32 %v5371_v23, %v11009_v30  ;;  %v11800_v16 = vld [vmem:[#allocation23_spill] sm:$0xff] }
 0x5f5   : > { %5582 = vst [vmem:[%s11132_s18 + $0x80] sm:$0xff] %v5550_v48  ;;  %v5520_v11 = vadd.f32 %v11119_v5, %v5481_v7  ;;  %v5444_v47 = vadd.f32 %v5366_v44, %v11012_v12  ;;  %v7343_v63 = vpop.f32.mrb[40].mxu1 }
 0x5f6   : > { %v5553_v40 = vmax.f32 %v5521_v55, 0.0  ;;  %v5484_v35 = vmul.f32 %v11112_v36, %v5445_v20  ;;  %v5381_v51 = vadd.f32 %v7343_v63, %v11090_v0  ;;  %v5375_v31 = vpop.f32.mrb[41].mxu1  ;;  %v11802_v55 = vld [vmem:[#allocation3_spill] sm:$0xff] }
 0x5f7   : > { %v5552_v15 = vmax.f32 %v5520_v11, 0.0  ;;  %v5483_v54 = vmul.f32 %v11112_v36, %v5444_v47  ;;  %v5376_v6 = vadd.f32 %v5375_v31, %v11088_v18  ;;  %v11804_v31 = vld [vmem:[#allocation24_spill] sm:$0xff] }
 0x5f8   : > { %5585 = vst [vmem:[%s11132_s18 + $0x98] sm:$0xff] %v5553_v40  ;;  %v5523_v30 = vadd.f32 %v11119_v5, %v5484_v35  ;;  %v5447_v37 = vadd.f32 %v5381_v51, %v11015_v1  ;;  %v11803_v40 = vld [vmem:[#allocation31_spill] sm:$0xff] }
 0x5f9   : > { %5584 = vst [vmem:[%s11132_s18 + $0x90] sm:$0xff] %v5552_v15  ;;  %v5522_v12 = vadd.f32 %v11119_v5, %v5483_v54  ;;  %v5446_v14 = vadd.f32 %v5376_v6, %v11018_v38  ;;  %v7346_v32 = vpop.f32.mrb[42].mxu1  ;;  %v11805_v6 = vld [vmem:[#allocation41_spill] sm:$0xff] }
 0x5fa   : > { %v5555_v0 = vmax.f32 %v5523_v30, 0.0  ;;  %v5486_v17 = vmul.f32 %v11112_v36, %v5447_v37  ;;  %v5391_v39 = vadd.f32 %v7346_v32, %v11094_v43  ;;  %v5385_v58 = vpop.f32.mrb[43].mxu1 }
 0x5fb   : > { %v5554_v29 = vmax.f32 %v5522_v12, 0.0  ;;  %v5485_v18 = vmul.f32 %v11112_v36, %v5446_v14  ;;  %v5386_v53 = vadd.f32 %v5385_v58, %v11092_v8 }
 0x5fc   : > { %5587 = vst [vmem:[%s11132_s18 + $0xa8] sm:$0xff] %v5555_v0  ;;  %v5525_v1 = vadd.f32 %v11119_v5, %v5486_v17  ;;  %v5449_v33 = vadd.f32 %v5391_v39, %v11021_v41 }
 0x5fd   : > { %5586 = vst [vmem:[%s11132_s18 + $0xa0] sm:$0xff] %v5554_v29  ;;  %v5524_v38 = vadd.f32 %v11119_v5, %v5485_v18  ;;  %v5448_v52 = vadd.f32 %v5386_v53, %v11795_v19  ;;  %v7349_v13 = vpop.f32.mrb[44].mxu1 }
 0x5fe   : > { %v5557_v43 = vmax.f32 %v5525_v1, 0.0  ;;  %v5488_v9 = vmul.f32 %v11112_v36, %v5449_v33  ;;  %v5401_v24 = vadd.f32 %v7349_v13, %v11098_v42  ;;  %v5395_v60 = vpop.f32.mrb[45].mxu1 }
 0x5ff   : > { %v5556_v10 = vmax.f32 %v5524_v38, 0.0  ;;  %v5487_v8 = vmul.f32 %v11112_v36, %v5448_v52  ;;  %v5396_v34 = vadd.f32 %v5395_v60, %v11796_v50 }
 0x600   : > { %5589 = vst [vmem:[%s11132_s18 + $0xb8] sm:$0xff] %v5557_v43  ;;  %v5527_v41 = vadd.f32 %v11119_v5, %v5488_v9  ;;  %v5451_v2 = vadd.f32 %v5401_v24, %v11797_v61 }
 0x601   : > { %5588 = vst [vmem:[%s11132_s18 + $0xb0] sm:$0xff] %v5556_v10  ;;  %v5526_v57 = vadd.f32 %v11119_v5, %v5487_v8  ;;  %v5450_v46 = vadd.f32 %v5396_v34, %v11798_v3  ;;  %v7352_v4 = vpop.f32.mrb[46].mxu1 }
 0x602   : > { %v5559_v42 = vmax.f32 %v5527_v41, 0.0  ;;  %v5490_v45 = vmul.f32 %v11112_v36, %v5451_v2  ;;  %v5411_v21 = vadd.f32 %v7352_v4, %v11102_v25  ;;  %v5405_v56 = vpop.f32.mrb[47].mxu1 }
 0x603   : > { %v5558_v49 = vmax.f32 %v5526_v57, 0.0  ;;  %v5489_v22 = vmul.f32 %v11112_v36, %v5450_v46  ;;  %v5406_v62 = vadd.f32 %v5405_v56, %v11799_v26 }
 0x604   : > { %5591 = vst [vmem:[%s11132_s18 + $0xc8] sm:$0xff] %v5559_v42  ;;  %v5529_v59 = vadd.f32 %v11119_v5, %v5490_v45  ;;  %v5453_v27 = vadd.f32 %v5411_v21, %v11800_v16 }
 0x605   : > { %5590 = vst [vmem:[%s11132_s18 + $0xc0] sm:$0xff] %v5558_v49  ;;  %v5528_v23 = vadd.f32 %v11119_v5, %v5489_v22  ;;  %v5452_v48 = vadd.f32 %v5406_v62, %v11801_v28  ;;  %v7355_v7 = vpop.f32.mrb[48].mxu1 }
 0x606   : > { %v5561_v25 = vmax.f32 %v5529_v59, 0.0  ;;  %v5492_v44 = vmul.f32 %v11112_v36, %v5453_v27  ;;  %v5421_v20 = vadd.f32 %v7355_v7, %v11802_v55  ;;  %v5415_v11 = vpop.f32.mrb[49].mxu1 }
 0x607   : > { %v5560_v47 = vmax.f32 %v5528_v23, 0.0  ;;  %v5491_v63 = vmul.f32 %v11112_v36, %v5452_v48  ;;  %v5416_v35 = vadd.f32 %v5415_v11, %v11803_v40 }
 0x608   : > { %5593 = vst [vmem:[%s11132_s18 + $0xd8] sm:$0xff] %v5561_v25  ;;  %v5531_v51 = vadd.f32 %v11119_v5, %v5492_v44  ;;  %v5455_v15 = vadd.f32 %v5421_v20, %v11804_v31 }
 0x609   : > { %5592 = vst [vmem:[%s11132_s18 + $0xd0] sm:$0xff] %v5560_v47  ;;  %v5530_v54 = vadd.f32 %v11119_v5, %v5491_v63  ;;  %v5454_v30 = vadd.f32 %v5416_v35, %v11805_v6 }
 0x60a   : > { %v5563_v37 = vmax.f32 %v5531_v51, 0.0  ;;  %v5494_v12 = vmul.f32 %v11112_v36, %v5455_v15 }
 0x60b   : > { %v5562_v14 = vmax.f32 %v5530_v54, 0.0  ;;  %v5493_v32 = vmul.f32 %v11112_v36, %v5454_v30 }
 0x60c   : > { %5595 = vst [vmem:[%s11132_s18 + $0xe8] sm:$0xff] %v5563_v37  ;;  %v5533_v0 = vadd.f32 %v11119_v5, %v5494_v12 }
 0x60d   : > { %5594 = vst [vmem:[%s11132_s18 + $0xe0] sm:$0xff] %v5562_v14  ;;  %v5532_v17 = vadd.f32 %v11119_v5, %v5493_v32 }
 0x60e   : > { %v5565_v39 = vmax.f32 %v5533_v0, 0.0 }
 0x60f   : > { %v5564_v58 = vmax.f32 %v5532_v17, 0.0 }
 0x610   : > { %5597 = vst [vmem:[%s11132_s18 + $0xf8] sm:$0xff] %v5565_v39 }
 0x611   : > { %5596 = vst [vmem:[%s11132_s18 + $0xf0] sm:$0xff] %v5564_v58 }
 0x612 PF: > { %s17_s26 = sadd.s32 1, %s8001_s26   ;;  %s11806_s24 = smov %s7997_s25 }
 0x613   : > { %p14_p5 = scmp.ge.s32.totalorder %s17_s26, 4   ;;  %s11807_s25 = smov %s11809_s27 }
 0x615   :  { %16 = sbr.rel (!%p14_p5) target bundleno = 2 (0x2), region = 88 }

</bundles_post_ra>
